<compile_context>
chip_gen: v6e
topology: v6e:2x2x1
jax: 0.10.0
libtpu: 0.0.40
codegen_flags: <defaults>
</compile_context>

<pallas_src>
import jax
import jax.numpy as jnp
from jax.experimental import pallas as pl
from jax.experimental.pallas import tpu as pltpu


def res_transpose_kernel(x_top_ref, x_mid_ref, x_bot_ref, w1_ref, b1_ref, w2_ref,
                         b2_ref, o_ref, ybuf_ref):
    # x_top_ref: (1, 1, W, C)      f32   image row just above the strip (clamped at top edge)
    # x_mid_ref: (1, S, W, C)      f32   the strip's input rows
    # x_bot_ref: (1, 1, W, C)      f32   image row just below the strip (clamped at bottom edge)
    # w1_ref   : (C, 4*Co)         bf16  fused ConvTranspose2d weights, cols = (2a+b)*Co + co
    # b1_ref   : (1, 4*Co)         f32   deconv bias tiled per phase
    # w2_ref   : (9, 4*Co, 4*Co)   bf16  3x3-conv phase-coupling matrices, t = 3*(si+1)+(sj+1)
    # b2_ref   : (1, 4*Co)         f32   conv bias tiled per phase
    # o_ref    : (1, S, W, 4*Co)   bf16  output strip, phase layout
    # ybuf_ref : (3, R+2, W, 4*Co) bf16  scratch: column-shift (-1, 0, +1) copies of y1
    s = pl.program_id(1)
    n_s = pl.num_programs(1)
    S, W, C = x_mid_ref.shape[1], x_mid_ref.shape[2], x_mid_ref.shape[3]
    C4 = o_ref.shape[3]
    R = ybuf_ref.shape[1] - 2
    n_chunks = S // R

    w1 = w1_ref[...]
    b1 = b1_ref[...]
    b2 = b2_ref[...]

    for c in range(n_chunks):                    # static chunk loop bounds register pressure
        c0 = c * R
        first, last = (c0 == 0), (c0 + R == S)

        # ---- deconv1 (ConvTranspose2d k=2 s=2) for chunk rows + 1-row halos: ONE matmul
        top = x_top_ref[0] if first else x_mid_ref[0, pl.ds(c0 - 1, 1)]
        bot = x_bot_ref[0] if last else x_mid_ref[0, pl.ds(c0 + R, 1)]
        x_ext = jnp.concatenate([top, x_mid_ref[0, pl.ds(c0, R)], bot], axis=0)  # (R+2, W, C)
        y = jnp.dot(x_ext.reshape((R + 2) * W, C).astype(jnp.bfloat16), w1,
                    preferred_element_type=jnp.float32) + b1
        ybuf_ref[1] = jnp.maximum(y, 0.0).astype(jnp.bfloat16).reshape(R + 2, W, C4)

        # halo rows outside the 2H x 2W image are the conv's zero padding -> zero them
        if first:
            @pl.when(s == 0)
            def _():
                ybuf_ref[1, 0] = jnp.zeros((W, C4), jnp.bfloat16)
        if last:
            @pl.when(s == n_s - 1)
            def _():
                ybuf_ref[1, R + 1] = jnp.zeros((W, C4), jnp.bfloat16)

        # ---- +/-1 column-shift copies (the 3x3 conv's column taps), built once per chunk
        # TODO(synk): pltpu.roll(axis=1) + an iota edge mask would push these shifts to the XLU.
        y0 = ybuf_ref[1]                                             # (R+2, W, C4) bf16, masked
        zc = jnp.zeros_like(y0[:, :1, :])
        ybuf_ref[0] = jnp.concatenate([zc, y0[:, :-1, :]], axis=1)   # [.., j] = y[.., j-1]
        ybuf_ref[2] = jnp.concatenate([y0[:, 1:, :], zc], axis=1)    # [.., j] = y[.., j+1]

        # ---- 3x3 conv in phase space: 9 adjacent accumulating MXU dots (M=R*W, K=N=4*Co)
        # TODO(synk): on v6e/v7x, concatenating the 3 row-shift matrices along N (N=3*C4)
        # would fill more of the 256-wide MXU at the cost of a 9-way row-offset combine.
        acc = jnp.zeros((R * W, C4), jnp.float32)
        for t in range(9):
            si, sj = t // 3 - 1, t % 3 - 1
            op = ybuf_ref[sj + 1, pl.ds(si + 1, R)]                  # (R, W, C4) bf16, free slice
            acc = acc + jnp.dot(op.reshape(R * W, C4), w2_ref[t],
                                preferred_element_type=jnp.float32)

        # ---- fused residual: nearest-neighbour upsample == replicate x over the 4 phases
        xc = x_mid_ref[0, pl.ds(c0, R)].reshape(R * W, C)            # exact f32
        x_rep = jnp.concatenate([xc] * 4, axis=1)                    # (R*W, 4*C), C == Co
        out = jnp.maximum(x_rep + acc + b2, 0.0)
        o_ref[0, pl.ds(c0, R)] = out.reshape(R, W, C4).astype(o_ref.dtype)


def _phase_weights(w1, b1, w2, b2):
    """Rewrite module parameters into phase-space operands (bf16 matmul weights)."""
    Ci, Co = w1.shape[0], w1.shape[1]
    # ConvTranspose2d(k=2, s=2): out[2i+a, 2j+b, co] += x[i, j, ci] * w1[ci, co, a, b]
    w1f = jnp.transpose(w1, (0, 2, 3, 1)).reshape(Ci, 4 * Co)        # cols = (2a+b)*Co + co
    b1f = jnp.tile(b1, 4).reshape(1, 4 * Co)
    b2f = jnp.tile(b2, 4).reshape(1, 4 * Co)
    # 3x3 conv: output phase (a,b) at (i,j) sums, over row/col shifts (si,sj) in {-1,0,1},
    # input phase (a',b') at (i+si, j+sj) with tap (dh,dw) = (2si+a'-a, 2sj+b'-b) if valid.
    m = jnp.zeros((9, 4 * Ci, 4 * Co), w2.dtype)
    for si in (-1, 0, 1):
        for sj in (-1, 0, 1):
            t = 3 * (si + 1) + (sj + 1)
            for a in (0, 1):
                for ap in (0, 1):
                    dh = 2 * si + ap - a
                    if dh not in (-1, 0, 1):
                        continue
                    for b in (0, 1):
                        for bp in (0, 1):
                            dw = 2 * sj + bp - b
                            if dw not in (-1, 0, 1):
                                continue
                            blk = jnp.transpose(w2[:, :, dh + 1, dw + 1])   # (ci, co)
                            m = m.at[t,
                                     (2 * ap + bp) * Ci:(2 * ap + bp + 1) * Ci,
                                     (2 * a + b) * Co:(2 * a + b + 1) * Co].set(blk)
    return (w1f.astype(jnp.bfloat16), b1f.astype(jnp.float32),
            m.astype(jnp.bfloat16), b2f.astype(jnp.float32))


def _largest_divisor_leq(n, cap):
    cap = max(1, min(n, cap))
    for d in range(cap, 0, -1):
        if n % d == 0:
            return d
    return 1


def res_transpose(x_nchw, w1, b1, w2, b2, *, out_dtype=jnp.bfloat16):
    """ResTranspose forward. x_nchw: (B, Cin, H, W); returns (B, Cout, 2H, 2W)."""
    B, C, H, W = x_nchw.shape
    Ci, Co = w1.shape[0], w1.shape[1]
    assert C == Ci and Ci == Co, "residual add requires channels_in == channels_out"
    C4 = 4 * Co

    # input rows per grid step: big enough to amortize the ~0.35us/step cost, always a
    # divisor of H (no S=H fallback), blocks kept modest so the pipeline stays in VMEM.
    S = _largest_divisor_leq(H, max(1, 4096 // max(W, 1)))
    n_strips = H // S
    # rows per in-kernel chunk: keeps the f32 accumulator (R*W x C4) inside the vregs.
    R = _largest_divisor_leq(S, max(1, 256 // max(W, 1)))

    x = jnp.transpose(x_nchw, (0, 2, 3, 1)).astype(jnp.float32)       # NCHW -> NHWC
    w1f, b1f, w2m, b2f = _phase_weights(w1, b1, w2, b2)

    # scoped-VMEM limit: count 128-lane padding of the C-wide x blocks and the
    # double-buffered pipeline blocks; cap at ~0.8x this generation's physical VMEM.
    cpad = -(-C // 128) * 128
    est_bytes = (
        2 * (S * W * cpad * 4)                          # x strip block (2 bufs, lane-padded)
        + 2 * 2 * (W * cpad * 4)                        # 1-row halo blocks
        + 2 * (S * W * C4 * 2)                          # bf16 output strip block (2 bufs)
        + 2 * ((C * C4 + 9 * C4 * C4) * 2 + 2 * C4 * 4)  # weights + biases (2 bufs each)
        + 3 * (R + 2) * W * C4 * 2                      # bf16 column-shift scratch
        + 2 * (R * W * C4 * 4)                          # f32 accumulator / deconv live values
        + (8 << 20)                                     # Mosaic internal scratch / spill headroom
    )
    try:
        vmem_cap = int(getattr(pltpu.get_tpu_info(), "vmem_capacity_bytes", 64 << 20))
    except Exception:
        vmem_cap = 64 << 20
    vmem_limit = int(min(int(0.8 * vmem_cap), max(est_bytes, 16 << 20)))

    out = pl.pallas_call(
        res_transpose_kernel,
        out_shape=jax.ShapeDtypeStruct((B, H, W, C4), out_dtype),
        grid_spec=pltpu.PrefetchScalarGridSpec(
            num_scalar_prefetch=0,
            grid=(B, n_strips),
            in_specs=[
                # 1-row halos just above / below the strip (clamped at the image edges;
                # the kernel zero-masks their deconv output at the true boundaries).
                pl.BlockSpec((1, 1, W, C),
                             lambda b, s: (b, jnp.maximum(s * S - 1, 0), 0, 0)),
                pl.BlockSpec((1, S, W, C), lambda b, s: (b, s, 0, 0)),
                pl.BlockSpec((1, 1, W, C),
                             lambda b, s: (b, jnp.minimum((s + 1) * S, H - 1), 0, 0)),
                # grid-invariant operands (fetched once per call).
                # TODO(synk): pipeline_mode=pl.Buffered(1) here would also drop their
                # second revolving buffer once single-buffered invariants are supported.
                pl.BlockSpec((C, C4), lambda b, s: (0, 0)),
                pl.BlockSpec((1, C4), lambda b, s: (0, 0)),
                pl.BlockSpec((9, C4, C4), lambda b, s: (0, 0, 0)),
                pl.BlockSpec((1, C4), lambda b, s: (0, 0)),
            ],
            out_specs=pl.BlockSpec((1, S, W, C4), lambda b, s: (b, s, 0, 0)),
            scratch_shapes=[pltpu.VMEM((3, R + 2, W, C4), jnp.bfloat16)],
        ),
        compiler_params=pltpu.CompilerParams(
            dimension_semantics=("parallel", "parallel"),
            vmem_limit_bytes=vmem_limit,
        ),
    )(x, x, x, w1f, b1f, w2m, b2f)

    # de-interleave phases (bf16 layout plumbing): (B,H,W,2,2,Co) -> (B,Co,2H,2W)
    out = out.reshape(B, H, W, 2, 2, Co)
    out = jnp.transpose(out, (0, 5, 1, 3, 2, 4)).reshape(B, Co, 2 * H, 2 * W)
    return out


def ref_forward(x_nchw, w1, b1, w2, b2):
    """Pure-JAX reference (XLA convs, NCHW, f32) mirroring the PyTorch module."""
    # ConvTranspose2d(k=2, s=2) == dilated conv with swapped/flipped kernel.
    w1_conv = jnp.transpose(w1, (1, 0, 2, 3))[:, :, ::-1, ::-1]       # (Cout, Cin, 2, 2)
    y = jax.lax.conv_general_dilated(
        x_nchw, w1_conv, window_strides=(1, 1), padding=((1, 1), (1, 1)),
        lhs_dilation=(2, 2), dimension_numbers=("NCHW", "OIHW", "NCHW"))
    y = jnp.maximum(y + b1[None, :, None, None], 0.0)
    z = jax.lax.conv_general_dilated(
        y, w2, window_strides=(1, 1), padding=((1, 1), (1, 1)),
        dimension_numbers=("NCHW", "OIHW", "NCHW")) + b2[None, :, None, None]
    xu = jnp.repeat(jnp.repeat(x_nchw, 2, axis=2), 2, axis=3)         # sizematch
    return jnp.maximum(xu + z, 0.0)


if __name__ == "__main__":
    key = jax.random.PRNGKey(0)
    B, Cin, Cout, H, W = 2, 32, 32, 16, 16
    k1, k2, k3, k4, k5 = jax.random.split(key, 5)

    x = jax.random.normal(k1, (B, Cin, H, W), jnp.float32)

    # deterministic "init" matching the module's parameter shapes
    s1 = 1.0 / (Cin * 2 * 2) ** 0.5
    w1 = jax.random.uniform(k2, (Cin, Cout, 2, 2), jnp.float32, -s1, s1)
    b1 = jax.random.uniform(k3, (Cout,), jnp.float32, -s1, s1)
    s2 = 1.0 / (Cout * 3 * 3) ** 0.5
    w2 = jax.random.uniform(k4, (Cout, Cout, 3, 3), jnp.float32, -s2, s2)
    b2 = jax.random.uniform(k5, (Cout,), jnp.float32, -s2, s2)

    out = jax.block_until_ready(res_transpose(x, w1, b1, w2, b2))
    assert out.shape == (B, Cout, 2 * H, 2 * W), out.shape

    ref = ref_forward(x, w1, b1, w2, b2)
    max_err = float(jnp.max(jnp.abs(out.astype(jnp.float32) - ref)))
    # bf16 MXU operands + bf16 activation output (f32 accumulation / exact-f32 residual inside)
    assert max_err < 5e-2, f"mismatch vs reference: max abs err = {max_err}"

    print("KERNEL_OK")
</pallas_src>

<mosaic_0001>
module attributes {stable_mosaic.version = 11 : i64} {
  func.func @res_transpose_kernel(%arg0: i32, %arg1: i32, %arg2: memref<1x1x16x32xf32, #tpu.memory_space<vmem>>, %arg3: memref<1x16x16x32xf32, #tpu.memory_space<vmem>>, %arg4: memref<1x1x16x32xf32, #tpu.memory_space<vmem>>, %arg5: memref<32x128xbf16, #tpu.memory_space<vmem>>, %arg6: memref<1x128xf32, #tpu.memory_space<vmem>>, %arg7: memref<9x128x128xbf16, #tpu.memory_space<vmem>>, %arg8: memref<1x128xf32, #tpu.memory_space<vmem>>, %arg9: memref<1x16x16x128xbf16, #tpu.memory_space<vmem>>, %arg10: memref<3x18x16x128xbf16, #tpu.memory_space<vmem>>) attributes {dimension_semantics = [#tpu.dimension_semantics<parallel>, #tpu.dimension_semantics<parallel>], iteration_bounds = array<i64: 2, 1>, scalar_prefetch = 0 : i64, scratch_operands = 1 : i64, tpu.core_type = #tpu.core_type<tc>, window_params = [{transform_indices = @transform_0, window_bounds = array<i64: 1, 1, 16, 32>}, {transform_indices = @transform_1, window_bounds = array<i64: 1, 16, 16, 32>}, {transform_indices = @transform_2, window_bounds = array<i64: 1, 1, 16, 32>}, {pipeline_mode = #tpu.pipeline_mode<synchronous>, transform_indices = @transform_3, window_bounds = array<i64: 32, 128>}, {pipeline_mode = #tpu.pipeline_mode<synchronous>, transform_indices = @transform_4, window_bounds = array<i64: 1, 128>}, {pipeline_mode = #tpu.pipeline_mode<synchronous>, transform_indices = @transform_5, window_bounds = array<i64: 9, 128, 128>}, {pipeline_mode = #tpu.pipeline_mode<synchronous>, transform_indices = @transform_6, window_bounds = array<i64: 1, 128>}, {transform_indices = @transform_7, window_bounds = array<i64: 1, 16, 16, 128>}]} {
    %c0 = arith.constant 0 : index
    %c0_0 = arith.constant 0 : index
    %0 = vector.load %arg5[%c0, %c0_0] : memref<32x128xbf16, #tpu.memory_space<vmem>>, vector<32x128xbf16>
    %c0_1 = arith.constant 0 : index
    %c0_2 = arith.constant 0 : index
    %1 = vector.load %arg6[%c0_1, %c0_2] : memref<1x128xf32, #tpu.memory_space<vmem>>, vector<1x128xf32>
    %c0_3 = arith.constant 0 : index
    %c0_4 = arith.constant 0 : index
    %2 = vector.load %arg8[%c0_3, %c0_4] : memref<1x128xf32, #tpu.memory_space<vmem>>, vector<1x128xf32>
    %c0_5 = arith.constant 0 : index
    %c0_6 = arith.constant 0 : index
    %c0_7 = arith.constant 0 : index
    %c0_8 = arith.constant 0 : index
    %3 = vector.load %arg2[%c0_5, %c0_6, %c0_7, %c0_8] : memref<1x1x16x32xf32, #tpu.memory_space<vmem>>, vector<1x1x16x32xf32>
    %4 = vector.shape_cast %3 : vector<1x1x16x32xf32> to vector<1x16x32xf32>
    %c0_9 = arith.constant 0 : index
    %c0_10 = arith.constant 0 : index
    %c0_11 = arith.constant 0 : index
    %c0_12 = arith.constant 0 : index
    %5 = vector.load %arg4[%c0_9, %c0_10, %c0_11, %c0_12] : memref<1x1x16x32xf32, #tpu.memory_space<vmem>>, vector<1x1x16x32xf32>
    %6 = vector.shape_cast %5 : vector<1x1x16x32xf32> to vector<1x16x32xf32>
    %c0_13 = arith.constant 0 : index
    %c0_14 = arith.constant 0 : index
    %c0_15 = arith.constant 0 : index
    %c0_16 = arith.constant 0 : index
    %7 = vector.load %arg3[%c0_13, %c0_14, %c0_15, %c0_16] : memref<1x16x16x32xf32, #tpu.memory_space<vmem>>, vector<1x16x16x32xf32>
    %8 = vector.shape_cast %7 : vector<1x16x16x32xf32> to vector<16x16x32xf32>
    %9 = tpu.concatenate %4, %8, %6 in 0 : vector<1x16x32xf32>, vector<16x16x32xf32>, vector<1x16x32xf32> -> vector<18x16x32xf32>
    %10 = vector.shape_cast %9 : vector<18x16x32xf32> to vector<288x32xf32>
    %11 = arith.truncf %10 : vector<288x32xf32> to vector<288x32xbf16>
    %cst = arith.constant dense<0.000000e+00> : vector<288x128xf32>
    %12 = tpu.matmul %11, %0, %cst {dimension_numbers = #tpu.dot_dimension_numbers<[1], [0], [0], [1], [0, 0, 1, 1], [], []>} : vector<288x32xbf16>, vector<32x128xbf16>, vector<288x128xf32> -> vector<288x128xf32>
    %13 = vector.broadcast %1 : vector<1x128xf32> to vector<288x128xf32>
    %14 = arith.addf %12, %13 : vector<288x128xf32>
    %cst_17 = arith.constant 0.000000e+00 : f32
    %15 = vector.broadcast %cst_17 : f32 to vector<288x128xf32>
    %16 = arith.maximumf %14, %15 : vector<288x128xf32>
    %17 = arith.truncf %16 : vector<288x128xf32> to vector<288x128xbf16>
    %18 = vector.shape_cast %17 : vector<288x128xbf16> to vector<18x16x128xbf16>
    %c1 = arith.constant 1 : index
    %c0_18 = arith.constant 0 : index
    %c0_19 = arith.constant 0 : index
    %c0_20 = arith.constant 0 : index
    %19 = vector.load %arg10[%c1, %c0_18, %c0_19, %c0_20] : memref<3x18x16x128xbf16, #tpu.memory_space<vmem>>, vector<1x18x16x128xbf16>
    %20 = vector.shape_cast %19 : vector<1x18x16x128xbf16> to vector<18x16x128xbf16>
    %21 = vector.shape_cast %18 : vector<18x16x128xbf16> to vector<1x18x16x128xbf16>
    tpu.vector_store %arg10[%c1, %c0_18, %c0_19, %c0_20], %21 {strides = array<i32>} : memref<3x18x16x128xbf16, #tpu.memory_space<vmem>>, vector<1x18x16x128xbf16>,
    %c0_i32 = arith.constant 0 : i32
    %22 = arith.cmpi eq, %arg1, %c0_i32 : i32
    %23 = arith.extui %22 : i1 to i32
    %c0_i32_21 = arith.constant 0 : i32
    %24 = arith.cmpi ne, %23, %c0_i32_21 : i32
    scf.if %24 {
      %cst_112 = arith.constant 0.000000e+00 : bf16
      %119 = vector.broadcast %cst_112 : bf16 to vector<16x128xbf16>
      %c1_113 = arith.constant 1 : index
      %c0_114 = arith.constant 0 : index
      %c0_115 = arith.constant 0 : index
      %c0_116 = arith.constant 0 : index
      %120 = vector.load %arg10[%c1_113, %c0_114, %c0_115, %c0_116] : memref<3x18x16x128xbf16, #tpu.memory_space<vmem>>, vector<1x1x16x128xbf16>
      %121 = vector.shape_cast %120 : vector<1x1x16x128xbf16> to vector<16x128xbf16>
      %122 = vector.shape_cast %119 : vector<16x128xbf16> to vector<1x1x16x128xbf16>
      tpu.vector_store %arg10[%c1_113, %c0_114, %c0_115, %c0_116], %122 {strides = array<i32>} : memref<3x18x16x128xbf16, #tpu.memory_space<vmem>>, vector<1x1x16x128xbf16>,
    } else {
    }
    %c0_i32_22 = arith.constant 0 : i32
    %25 = arith.cmpi eq, %arg1, %c0_i32_22 : i32
    %26 = arith.extui %25 : i1 to i32
    %c0_i32_23 = arith.constant 0 : i32
    %27 = arith.cmpi ne, %26, %c0_i32_23 : i32
    scf.if %27 {
      %cst_112 = arith.constant 0.000000e+00 : bf16
      %119 = vector.broadcast %cst_112 : bf16 to vector<16x128xbf16>
      %c1_113 = arith.constant 1 : index
      %c17 = arith.constant 17 : index
      %c0_114 = arith.constant 0 : index
      %c0_115 = arith.constant 0 : index
      %120 = vector.load %arg10[%c1_113, %c17, %c0_114, %c0_115] : memref<3x18x16x128xbf16, #tpu.memory_space<vmem>>, vector<1x1x16x128xbf16>
      %121 = vector.shape_cast %120 : vector<1x1x16x128xbf16> to vector<16x128xbf16>
      %122 = vector.shape_cast %119 : vector<16x128xbf16> to vector<1x1x16x128xbf16>
      tpu.vector_store %arg10[%c1_113, %c17, %c0_114, %c0_115], %122 {strides = array<i32>} : memref<3x18x16x128xbf16, #tpu.memory_space<vmem>>, vector<1x1x16x128xbf16>,
    } else {
    }
    %c1_24 = arith.constant 1 : index
    %c0_25 = arith.constant 0 : index
    %c0_26 = arith.constant 0 : index
    %c0_27 = arith.constant 0 : index
    %28 = vector.load %arg10[%c1_24, %c0_25, %c0_26, %c0_27] : memref<3x18x16x128xbf16, #tpu.memory_space<vmem>>, vector<1x18x16x128xbf16>
    %29 = vector.shape_cast %28 : vector<1x18x16x128xbf16> to vector<18x16x128xbf16>
    %cst_28 = arith.constant 0.000000e+00 : bf16
    %30 = vector.broadcast %cst_28 : bf16 to vector<18x1x128xbf16>
    %31 = vector.extract_strided_slice %29 {offsets = [0, 0, 0], sizes = [18, 15, 128], strides = [1, 1, 1]} : vector<18x16x128xbf16> to vector<18x15x128xbf16>
    %32 = tpu.concatenate %30, %31 in 1 : vector<18x1x128xbf16>, vector<18x15x128xbf16> -> vector<18x16x128xbf16>
    %c0_29 = arith.constant 0 : index
    %c0_30 = arith.constant 0 : index
    %c0_31 = arith.constant 0 : index
    %c0_32 = arith.constant 0 : index
    %33 = vector.load %arg10[%c0_29, %c0_30, %c0_31, %c0_32] : memref<3x18x16x128xbf16, #tpu.memory_space<vmem>>, vector<1x18x16x128xbf16>
    %34 = vector.shape_cast %33 : vector<1x18x16x128xbf16> to vector<18x16x128xbf16>
    %35 = vector.shape_cast %32 : vector<18x16x128xbf16> to vector<1x18x16x128xbf16>
    tpu.vector_store %arg10[%c0_29, %c0_30, %c0_31, %c0_32], %35 {strides = array<i32>} : memref<3x18x16x128xbf16, #tpu.memory_space<vmem>>, vector<1x18x16x128xbf16>,
    %36 = vector.extract_strided_slice %29 {offsets = [0, 1, 0], sizes = [18, 15, 128], strides = [1, 1, 1]} : vector<18x16x128xbf16> to vector<18x15x128xbf16>
    %37 = tpu.concatenate %36, %30 in 1 : vector<18x15x128xbf16>, vector<18x1x128xbf16> -> vector<18x16x128xbf16>
    %c2 = arith.constant 2 : index
    %c0_33 = arith.constant 0 : index
    %c0_34 = arith.constant 0 : index
    %c0_35 = arith.constant 0 : index
    %38 = vector.load %arg10[%c2, %c0_33, %c0_34, %c0_35] : memref<3x18x16x128xbf16, #tpu.memory_space<vmem>>, vector<1x18x16x128xbf16>
    %39 = vector.shape_cast %38 : vector<1x18x16x128xbf16> to vector<18x16x128xbf16>
    %40 = vector.shape_cast %37 : vector<18x16x128xbf16> to vector<1x18x16x128xbf16>
    tpu.vector_store %arg10[%c2, %c0_33, %c0_34, %c0_35], %40 {strides = array<i32>} : memref<3x18x16x128xbf16, #tpu.memory_space<vmem>>, vector<1x18x16x128xbf16>,
    %cst_36 = arith.constant 0.000000e+00 : f32
    %41 = vector.broadcast %cst_36 : f32 to vector<256x128xf32>
    %c0_37 = arith.constant 0 : index
    %c0_38 = arith.constant 0 : index
    %c0_39 = arith.constant 0 : index
    %c0_40 = arith.constant 0 : index
    %42 = vector.load %arg10[%c0_37, %c0_38, %c0_39, %c0_40] : memref<3x18x16x128xbf16, #tpu.memory_space<vmem>>, vector<1x16x16x128xbf16>
    %43 = vector.shape_cast %42 : vector<1x16x16x128xbf16> to vector<16x16x128xbf16>
    %44 = vector.shape_cast %43 : vector<16x16x128xbf16> to vector<256x128xbf16>
    %c0_41 = arith.constant 0 : index
    %c0_42 = arith.constant 0 : index
    %c0_43 = arith.constant 0 : index
    %45 = vector.load %arg7[%c0_41, %c0_42, %c0_43] : memref<9x128x128xbf16, #tpu.memory_space<vmem>>, vector<1x128x128xbf16>
    %46 = vector.shape_cast %45 : vector<1x128x128xbf16> to vector<128x128xbf16>
    %cst_44 = arith.constant dense<0.000000e+00> : vector<256x128xf32>
    %47 = tpu.matmul %44, %46, %cst_44 {dimension_numbers = #tpu.dot_dimension_numbers<[1], [0], [0], [1], [0, 0, 1, 1], [], []>} : vector<256x128xbf16>, vector<128x128xbf16>, vector<256x128xf32> -> vector<256x128xf32>
    %48 = arith.addf %41, %47 : vector<256x128xf32>
    %c1_45 = arith.constant 1 : index
    %c0_46 = arith.constant 0 : index
    %c0_47 = arith.constant 0 : index
    %c0_48 = arith.constant 0 : index
    %49 = vector.load %arg10[%c1_45, %c0_46, %c0_47, %c0_48] : memref<3x18x16x128xbf16, #tpu.memory_space<vmem>>, vector<1x16x16x128xbf16>
    %50 = vector.shape_cast %49 : vector<1x16x16x128xbf16> to vector<16x16x128xbf16>
    %51 = vector.shape_cast %50 : vector<16x16x128xbf16> to vector<256x128xbf16>
    %c1_49 = arith.constant 1 : index
    %c0_50 = arith.constant 0 : index
    %c0_51 = arith.constant 0 : index
    %52 = vector.load %arg7[%c1_49, %c0_50, %c0_51] : memref<9x128x128xbf16, #tpu.memory_space<vmem>>, vector<1x128x128xbf16>
    %53 = vector.shape_cast %52 : vector<1x128x128xbf16> to vector<128x128xbf16>
    %cst_52 = arith.constant dense<0.000000e+00> : vector<256x128xf32>
    %54 = tpu.matmul %51, %53, %cst_52 {dimension_numbers = #tpu.dot_dimension_numbers<[1], [0], [0], [1], [0, 0, 1, 1], [], []>} : vector<256x128xbf16>, vector<128x128xbf16>, vector<256x128xf32> -> vector<256x128xf32>
    %55 = arith.addf %48, %54 : vector<256x128xf32>
    %c2_53 = arith.constant 2 : index
    %c0_54 = arith.constant 0 : index
    %c0_55 = arith.constant 0 : index
    %c0_56 = arith.constant 0 : index
    %56 = vector.load %arg10[%c2_53, %c0_54, %c0_55, %c0_56] : memref<3x18x16x128xbf16, #tpu.memory_space<vmem>>, vector<1x16x16x128xbf16>
    %57 = vector.shape_cast %56 : vector<1x16x16x128xbf16> to vector<16x16x128xbf16>
    %58 = vector.shape_cast %57 : vector<16x16x128xbf16> to vector<256x128xbf16>
    %c2_57 = arith.constant 2 : index
    %c0_58 = arith.constant 0 : index
    %c0_59 = arith.constant 0 : index
    %59 = vector.load %arg7[%c2_57, %c0_58, %c0_59] : memref<9x128x128xbf16, #tpu.memory_space<vmem>>, vector<1x128x128xbf16>
    %60 = vector.shape_cast %59 : vector<1x128x128xbf16> to vector<128x128xbf16>
    %cst_60 = arith.constant dense<0.000000e+00> : vector<256x128xf32>
    %61 = tpu.matmul %58, %60, %cst_60 {dimension_numbers = #tpu.dot_dimension_numbers<[1], [0], [0], [1], [0, 0, 1, 1], [], []>} : vector<256x128xbf16>, vector<128x128xbf16>, vector<256x128xf32> -> vector<256x128xf32>
    %62 = arith.addf %55, %61 : vector<256x128xf32>
    %c0_61 = arith.constant 0 : index
    %c1_62 = arith.constant 1 : index
    %c0_63 = arith.constant 0 : index
    %c0_64 = arith.constant 0 : index
    %63 = vector.load %arg10[%c0_61, %c1_62, %c0_63, %c0_64] : memref<3x18x16x128xbf16, #tpu.memory_space<vmem>>, vector<1x16x16x128xbf16>
    %64 = vector.shape_cast %63 : vector<1x16x16x128xbf16> to vector<16x16x128xbf16>
    %65 = vector.shape_cast %64 : vector<16x16x128xbf16> to vector<256x128xbf16>
    %c3 = arith.constant 3 : index
    %c0_65 = arith.constant 0 : index
    %c0_66 = arith.constant 0 : index
    %66 = vector.load %arg7[%c3, %c0_65, %c0_66] : memref<9x128x128xbf16, #tpu.memory_space<vmem>>, vector<1x128x128xbf16>
    %67 = vector.shape_cast %66 : vector<1x128x128xbf16> to vector<128x128xbf16>
    %cst_67 = arith.constant dense<0.000000e+00> : vector<256x128xf32>
    %68 = tpu.matmul %65, %67, %cst_67 {dimension_numbers = #tpu.dot_dimension_numbers<[1], [0], [0], [1], [0, 0, 1, 1], [], []>} : vector<256x128xbf16>, vector<128x128xbf16>, vector<256x128xf32> -> vector<256x128xf32>
    %69 = arith.addf %62, %68 : vector<256x128xf32>
    %c1_68 = arith.constant 1 : index
    %c1_69 = arith.constant 1 : index
    %c0_70 = arith.constant 0 : index
    %c0_71 = arith.constant 0 : index
    %70 = vector.load %arg10[%c1_68, %c1_69, %c0_70, %c0_71] : memref<3x18x16x128xbf16, #tpu.memory_space<vmem>>, vector<1x16x16x128xbf16>
    %71 = vector.shape_cast %70 : vector<1x16x16x128xbf16> to vector<16x16x128xbf16>
    %72 = vector.shape_cast %71 : vector<16x16x128xbf16> to vector<256x128xbf16>
    %c4 = arith.constant 4 : index
    %c0_72 = arith.constant 0 : index
    %c0_73 = arith.constant 0 : index
    %73 = vector.load %arg7[%c4, %c0_72, %c0_73] : memref<9x128x128xbf16, #tpu.memory_space<vmem>>, vector<1x128x128xbf16>
    %74 = vector.shape_cast %73 : vector<1x128x128xbf16> to vector<128x128xbf16>
    %cst_74 = arith.constant dense<0.000000e+00> : vector<256x128xf32>
    %75 = tpu.matmul %72, %74, %cst_74 {dimension_numbers = #tpu.dot_dimension_numbers<[1], [0], [0], [1], [0, 0, 1, 1], [], []>} : vector<256x128xbf16>, vector<128x128xbf16>, vector<256x128xf32> -> vector<256x128xf32>
    %76 = arith.addf %69, %75 : vector<256x128xf32>
    %c2_75 = arith.constant 2 : index
    %c1_76 = arith.constant 1 : index
    %c0_77 = arith.constant 0 : index
    %c0_78 = arith.constant 0 : index
    %77 = vector.load %arg10[%c2_75, %c1_76, %c0_77, %c0_78] : memref<3x18x16x128xbf16, #tpu.memory_space<vmem>>, vector<1x16x16x128xbf16>
    %78 = vector.shape_cast %77 : vector<1x16x16x128xbf16> to vector<16x16x128xbf16>
    %79 = vector.shape_cast %78 : vector<16x16x128xbf16> to vector<256x128xbf16>
    %c5 = arith.constant 5 : index
    %c0_79 = arith.constant 0 : index
    %c0_80 = arith.constant 0 : index
    %80 = vector.load %arg7[%c5, %c0_79, %c0_80] : memref<9x128x128xbf16, #tpu.memory_space<vmem>>, vector<1x128x128xbf16>
    %81 = vector.shape_cast %80 : vector<1x128x128xbf16> to vector<128x128xbf16>
    %cst_81 = arith.constant dense<0.000000e+00> : vector<256x128xf32>
    %82 = tpu.matmul %79, %81, %cst_81 {dimension_numbers = #tpu.dot_dimension_numbers<[1], [0], [0], [1], [0, 0, 1, 1], [], []>} : vector<256x128xbf16>, vector<128x128xbf16>, vector<256x128xf32> -> vector<256x128xf32>
    %83 = arith.addf %76, %82 : vector<256x128xf32>
    %c0_82 = arith.constant 0 : index
    %c2_83 = arith.constant 2 : index
    %c0_84 = arith.constant 0 : index
    %c0_85 = arith.constant 0 : index
    %84 = vector.load %arg10[%c0_82, %c2_83, %c0_84, %c0_85] : memref<3x18x16x128xbf16, #tpu.memory_space<vmem>>, vector<1x16x16x128xbf16>
    %85 = vector.shape_cast %84 : vector<1x16x16x128xbf16> to vector<16x16x128xbf16>
    %86 = vector.shape_cast %85 : vector<16x16x128xbf16> to vector<256x128xbf16>
    %c6 = arith.constant 6 : index
    %c0_86 = arith.constant 0 : index
    %c0_87 = arith.constant 0 : index
    %87 = vector.load %arg7[%c6, %c0_86, %c0_87] : memref<9x128x128xbf16, #tpu.memory_space<vmem>>, vector<1x128x128xbf16>
    %88 = vector.shape_cast %87 : vector<1x128x128xbf16> to vector<128x128xbf16>
    %cst_88 = arith.constant dense<0.000000e+00> : vector<256x128xf32>
    %89 = tpu.matmul %86, %88, %cst_88 {dimension_numbers = #tpu.dot_dimension_numbers<[1], [0], [0], [1], [0, 0, 1, 1], [], []>} : vector<256x128xbf16>, vector<128x128xbf16>, vector<256x128xf32> -> vector<256x128xf32>
    %90 = arith.addf %83, %89 : vector<256x128xf32>
    %c1_89 = arith.constant 1 : index
    %c2_90 = arith.constant 2 : index
    %c0_91 = arith.constant 0 : index
    %c0_92 = arith.constant 0 : index
    %91 = vector.load %arg10[%c1_89, %c2_90, %c0_91, %c0_92] : memref<3x18x16x128xbf16, #tpu.memory_space<vmem>>, vector<1x16x16x128xbf16>
    %92 = vector.shape_cast %91 : vector<1x16x16x128xbf16> to vector<16x16x128xbf16>
    %93 = vector.shape_cast %92 : vector<16x16x128xbf16> to vector<256x128xbf16>
    %c7 = arith.constant 7 : index
    %c0_93 = arith.constant 0 : index
    %c0_94 = arith.constant 0 : index
    %94 = vector.load %arg7[%c7, %c0_93, %c0_94] : memref<9x128x128xbf16, #tpu.memory_space<vmem>>, vector<1x128x128xbf16>
    %95 = vector.shape_cast %94 : vector<1x128x128xbf16> to vector<128x128xbf16>
    %cst_95 = arith.constant dense<0.000000e+00> : vector<256x128xf32>
    %96 = tpu.matmul %93, %95, %cst_95 {dimension_numbers = #tpu.dot_dimension_numbers<[1], [0], [0], [1], [0, 0, 1, 1], [], []>} : vector<256x128xbf16>, vector<128x128xbf16>, vector<256x128xf32> -> vector<256x128xf32>
    %97 = arith.addf %90, %96 : vector<256x128xf32>
    %c2_96 = arith.constant 2 : index
    %c2_97 = arith.constant 2 : index
    %c0_98 = arith.constant 0 : index
    %c0_99 = arith.constant 0 : index
    %98 = vector.load %arg10[%c2_96, %c2_97, %c0_98, %c0_99] : memref<3x18x16x128xbf16, #tpu.memory_space<vmem>>, vector<1x16x16x128xbf16>
    %99 = vector.shape_cast %98 : vector<1x16x16x128xbf16> to vector<16x16x128xbf16>
    %100 = vector.shape_cast %99 : vector<16x16x128xbf16> to vector<256x128xbf16>
    %c8 = arith.constant 8 : index
    %c0_100 = arith.constant 0 : index
    %c0_101 = arith.constant 0 : index
    %101 = vector.load %arg7[%c8, %c0_100, %c0_101] : memref<9x128x128xbf16, #tpu.memory_space<vmem>>, vector<1x128x128xbf16>
    %102 = vector.shape_cast %101 : vector<1x128x128xbf16> to vector<128x128xbf16>
    %cst_102 = arith.constant dense<0.000000e+00> : vector<256x128xf32>
    %103 = tpu.matmul %100, %102, %cst_102 {dimension_numbers = #tpu.dot_dimension_numbers<[1], [0], [0], [1], [0, 0, 1, 1], [], []>} : vector<256x128xbf16>, vector<128x128xbf16>, vector<256x128xf32> -> vector<256x128xf32>
    %104 = arith.addf %97, %103 : vector<256x128xf32>
    %c0_103 = arith.constant 0 : index
    %c0_104 = arith.constant 0 : index
    %c0_105 = arith.constant 0 : index
    %c0_106 = arith.constant 0 : index
    %105 = vector.load %arg3[%c0_103, %c0_104, %c0_105, %c0_106] : memref<1x16x16x32xf32, #tpu.memory_space<vmem>>, vector<1x16x16x32xf32>
    %106 = vector.shape_cast %105 : vector<1x16x16x32xf32> to vector<16x16x32xf32>
    %107 = vector.shape_cast %106 : vector<16x16x32xf32> to vector<256x32xf32>
    %108 = tpu.concatenate %107, %107, %107, %107 in 1 : vector<256x32xf32>, vector<256x32xf32>, vector<256x32xf32>, vector<256x32xf32> -> vector<256x128xf32>
    %109 = arith.addf %108, %104 : vector<256x128xf32>
    %110 = vector.broadcast %2 : vector<1x128xf32> to vector<256x128xf32>
    %111 = arith.addf %109, %110 : vector<256x128xf32>
    %cst_107 = arith.constant 0.000000e+00 : f32
    %112 = vector.broadcast %cst_107 : f32 to vector<256x128xf32>
    %113 = arith.maximumf %111, %112 : vector<256x128xf32>
    %114 = vector.shape_cast %113 : vector<256x128xf32> to vector<16x16x128xf32>
    %115 = arith.truncf %114 : vector<16x16x128xf32> to vector<16x16x128xbf16>
    %c0_108 = arith.constant 0 : index
    %c0_109 = arith.constant 0 : index
    %c0_110 = arith.constant 0 : index
    %c0_111 = arith.constant 0 : index
    %116 = vector.load %arg9[%c0_108, %c0_109, %c0_110, %c0_111] : memref<1x16x16x128xbf16, #tpu.memory_space<vmem>>, vector<1x16x16x128xbf16>
    %117 = vector.shape_cast %116 : vector<1x16x16x128xbf16> to vector<16x16x128xbf16>
    %118 = vector.shape_cast %115 : vector<16x16x128xbf16> to vector<1x16x16x128xbf16>
    tpu.vector_store %arg9[%c0_108, %c0_109, %c0_110, %c0_111], %118 {strides = array<i32>} : memref<1x16x16x128xbf16, #tpu.memory_space<vmem>>, vector<1x16x16x128xbf16>,
    return
  }
  func.func @transform_0(%arg0: i32, %arg1: i32) -> (i32, i32, i32, i32) {
    %c16_i32 = arith.constant 16 : i32
    %0 = arith.muli %arg1, %c16_i32 : i32
    %c1_i32 = arith.constant 1 : i32
    %1 = arith.subi %0, %c1_i32 : i32
    %c0_i32 = arith.constant 0 : i32
    %2 = arith.maxsi %1, %c0_i32 : i32
    %c0_i32_0 = arith.constant 0 : i32
    %c0_i32_1 = arith.constant 0 : i32
    %c0_i32_2 = arith.constant 0 : i32
    return %arg0, %2, %c0_i32_0, %c0_i32_1 : i32, i32, i32, i32
  }
  func.func @transform_1(%arg0: i32, %arg1: i32) -> (i32, i32, i32, i32) {
    %c0_i32 = arith.constant 0 : i32
    %c0_i32_0 = arith.constant 0 : i32
    %c0_i32_1 = arith.constant 0 : i32
    return %arg0, %arg1, %c0_i32, %c0_i32_0 : i32, i32, i32, i32
  }
  func.func @transform_2(%arg0: i32, %arg1: i32) -> (i32, i32, i32, i32) {
    %c1_i32 = arith.constant 1 : i32
    %0 = arith.addi %arg1, %c1_i32 : i32
    %c16_i32 = arith.constant 16 : i32
    %1 = arith.muli %0, %c16_i32 : i32
    %c15_i32 = arith.constant 15 : i32
    %2 = arith.minsi %1, %c15_i32 : i32
    %c0_i32 = arith.constant 0 : i32
    %c0_i32_0 = arith.constant 0 : i32
    %c0_i32_1 = arith.constant 0 : i32
    return %arg0, %2, %c0_i32, %c0_i32_0 : i32, i32, i32, i32
  }
  func.func @transform_3(%arg0: i32, %arg1: i32) -> (i32, i32) {
    %c0_i32 = arith.constant 0 : i32
    %c0_i32_0 = arith.constant 0 : i32
    %c0_i32_1 = arith.constant 0 : i32
    return %c0_i32, %c0_i32_0 : i32, i32
  }
  func.func @transform_4(%arg0: i32, %arg1: i32) -> (i32, i32) {
    %c0_i32 = arith.constant 0 : i32
    %c0_i32_0 = arith.constant 0 : i32
    %c0_i32_1 = arith.constant 0 : i32
    return %c0_i32, %c0_i32_0 : i32, i32
  }
  func.func @transform_5(%arg0: i32, %arg1: i32) -> (i32, i32, i32) {
    %c0_i32 = arith.constant 0 : i32
    %c0_i32_0 = arith.constant 0 : i32
    %c0_i32_1 = arith.constant 0 : i32
    %c0_i32_2 = arith.constant 0 : i32
    return %c0_i32, %c0_i32_0, %c0_i32_1 : i32, i32, i32
  }
  func.func @transform_6(%arg0: i32, %arg1: i32) -> (i32, i32) {
    %c0_i32 = arith.constant 0 : i32
    %c0_i32_0 = arith.constant 0 : i32
    %c0_i32_1 = arith.constant 0 : i32
    return %c0_i32, %c0_i32_0 : i32, i32
  }
  func.func @transform_7(%arg0: i32, %arg1: i32) -> (i32, i32, i32, i32) {
    %c0_i32 = arith.constant 0 : i32
    %c0_i32_0 = arith.constant 0 : i32
    %c0_i32_1 = arith.constant 0 : i32
    return %arg0, %arg1, %c0_i32, %c0_i32_0 : i32, i32, i32, i32
  }
}

</mosaic_0001>

<bundles_post_ra>
// kernel: tpu_custom_call.1
= control target key start
LH: loop header
LB: loop body
LE: loop exit
PB: predicated region body
PF: predicated region fallthrough
CT: control target
= control target key end

     0   :  { %s10226_s0 = inlined_call_operand.hbm [shape: f32[2,16,16,32], index: 0, kind: input, shape index: {}]   ;;  %s10227_s1 = inlined_call_operand.hbm [shape: f32[2,16,16,32], index: 1, kind: input, shape index: {}]   ;;  %s10228_s2 = inlined_call_operand.hbm [shape: f32[2,16,16,32], index: 2, kind: input, shape index: {}]   ;;  %s10229_s3 = inlined_call_operand.hbm [shape: bf16[32,128], index: 3, kind: input, shape index: {}]   ;;  %s10230_s4 = inlined_call_operand.vmem [shape: f32[1,128], index: 4, kind: input, shape index: {}]   ;;  %s10231_s5 = inlined_call_operand.hbm [shape: bf16[9,128,128], index: 5, kind: input, shape index: {}]   ;;  %s10232_s6 = inlined_call_operand.vmem [shape: f32[1,128], index: 6, kind: input, shape index: {}]   ;;  %s10233_s7 = inlined_call_operand.hbm [shape: bf16[2,16,16,128], index: 7, kind: output, shape index: {}]  }
   0x1   :  { %10248 = sst [smem:[#allocation108_spill]] %s10227_s1 }
   0x2   :  { %10249 = sst [smem:[#allocation109_spill]] %s10229_s3 }
   0x3   :  { %10250 = sst [smem:[#allocation110_spill]] %s10233_s7 }
   0x4   :  { %12 = vsyncpa [#allocation4], 0 }
   0x5   :  { %14 = vsyncpa [#allocation4 + $0x1], 0 }
   0x6   :  { %15 = vsyncpa [#allocation7], 0 }
   0x7   :  { %17 = vsyncpa [#allocation7 + $0x1], 0 }
   0x8   :  { %18 = vsyncpa [#allocation10], 0 }
   0x9   :  { %19 = vsyncpa [#allocation5], 0 }
   0xa   :  { %21 = vsyncpa [#allocation5 + $0x1], 0  ;;  %s8080_s24 = smov 0   ;;  %s8082_s25 = smov 0  }
   0xb   :  { %s8084_s26 = smov 0   ;;  %s8086_s27 = smov 0  }
   0xc   :  { %s8088_s28 = smov 0   ;;  %s8090_s29 = smov 0  }
   0xd LB: > { %10251 = sst [smem:[#allocation17_spill]] %s8003_s24  ;;  %s8111_s30 = sadd.s32 4294967295, %s8023_s29   ;;  %s8023_s29 = sphi %s8090_s29, %s27_s29   ;;  %s8019_s28 = sphi %s8088_s28, %s10465_s28   ;;  %s8015_s27 = sphi %s8086_s27, %s10464_s27   ;;  %s8011_s26 = sphi %s8084_s26, %s10463_s26   ;;  %s8007_s25 = sphi %s8082_s25, %s10467_s25   ;;  %s8003_s24 = sphi %s8080_s24, %s10466_s24  }
   0xe   : > { %10252 = sst [smem:[#allocation18_spill]] %s8011_s26  ;;  %s5992_s8 = sadd.s32 4294967294, %s8023_s29  }
   0xf   : > { %10253 = sst [smem:[#allocation19_spill]] %s8019_s28  ;;  %p63_p0 = scmp.ne.s32.totalorder %s8011_s26, %s8007_s25 }
  0x10   : > { %p64_p1 = scmp.eq.s32.totalorder %s8023_s29, 0  ;;  %p69_p2 = scmp.ne.s32.totalorder %s8007_s25, %s8003_s24 }
  0x11   : > { %p10234_p3 = scmp.eq.s32.totalorder %s8111_s30, 0  ;;  %p243_p5 = scmp.eq.s32.totalorder %s8111_s30, 1 }
  0x12   : > { %p8120_p4 = por %p64_p1, %p63_p0  ;;  %p249_p7 = scmp.eq.s32.totalorder %s5992_s8, 1 }
  0x13   : > { %p8127_p6 = por %p10234_p3, %p69_p2  ;;  %p8131_p8 = por %p243_p5, %p63_p0 }
  0x14   : > { %p5993_p9 = scmp.ge.s32.totalorder %s8023_s29, 1  ;;  %p8136_p10 = por %p249_p7, %p69_p2 }
  0x15   : > { %p256_p11 = scmp.lt.s32.totalorder %s8023_s29, 3  ;;  %s8025_s14 = smov [#allocation9]  }
  0x16   : > { %s10257_s12 = scalar_select %p8136_p10, 1, 0 }
  0x17   : > { %p8141_p12 = pnand %p5993_p9, %p256_p11  ;;  %s268_s15 = sshll.u32 %s8025_s14, 4  ;;  %s269_s15 = int_to_ptr.vmem [resolvable:$true] %s268_s15 }
  0x18   : > { %10258 = sst [smem:[#allocation20_spill]] %s10257_s12  ;;  %s39_s17 = sadd.s32 1, %s8019_s28 }
  0x19   : > { %p7430_p13 = pneg %p8141_p12  ;;  %s56_s18 = sadd.s32 1, %s8011_s26 }
  0x1a   : > { %p8156_p2 = scmp.ge.s32.totalorder %s39_s17, 2  ;;  %s7810_s20 = scalar_lea.vmem %s269_s15, 256 }
  0x1b   : > { %p8150_p1 = pnand %p7430_p13, %p10234_p3  ;;  %p7811_p7 = scmp.ne.s32.totalorder %s269_s15, %s7810_s20 }
  0x1c   : > { %p7818_p13 = scmp.lt.s32.totalorder %s269_s15, %s269_s15  ;;  %p7819_p0 = scmp.lt.s32.totalorder %s7810_s20, %s7810_s20 }
  0x1d   : > { %p7801_p5 = pneg %p8150_p1 }
  0x1e   : > { %p7820_p3 = por %p7819_p0, %p7818_p13 }
  0x1f   : > { %p7813_p9 = pnand %p7811_p7, %p7801_p5 }
  0x21   : > { %p7814_p11 = pneg %p7813_p9 }
  0x23   : > { %p7821_p10 = pnand %p7820_p3, %p7814_p11 }
  0x25   : > { %7824 = shalt.err (!%p7821_p10)
}
  0x26   : > { %s10237_s21 = smov 64   ;;  %s10238_s22 = smov 4  }
  0x27   : > { %s10262_s3 = sld [smem:[#allocation109_spill]]  ;;  %s10469_s17 = smov (%p8156_p2, %s39_s17), 0 }
  0x28   : > { %10263 = sst [smem:[#allocation21_spill]] %s10469_s17  ;;  %p7453_p3 = scmp.lt.s32.totalorder %s8023_s29, 2 }
  0x29   : > { %s8179_s14 = sand.u32 1, %s8011_s26   ;;  %s51_s20 = ssub.s32 %s8019_s28, %s10469_s17 }
  0x2a   : > { %s8184_s12 = sshll.u32 %s8019_s28, 12  ;;  %p54_p10 = scmp.eq.s32.totalorder %s51_s20, 0 }
  0x2b   : > { %p8188_p0 = pnand %p7453_p3, %p8120_p4  ;;  %s328_s19 = sand.u32 1, %s8023_s29  }
  0x2c   : > { %s6000_s23 = sshll.u32 %s8179_s14, 8  ;;  %s10266_s1 = sld [smem:[#allocation108_spill]] }
  0x2d   : > { %7433 = dma.hbm_to_vmem [thread:$0]  (!%p8150_p1), %s10262_s3, 256, %s269_s15, [#allocation10], %s10237_s21, %s10237_s21, %s10238_s22  }
  0x2e   : > { %s8193_s15 = scalar_select %p54_p10, %s8011_s26, %s56_s18  }
  0x2f   : > { %s332_s3 = scalar_lea.vmem [#allocation6], %s6000_s23  ;;  %s8028_s28 = smov [#allocation11]  }
  0x30   : > { %10265 = sst [smem:[#allocation22_spill]] %s8193_s15  ;;  %s342_s17 = sshll.u32 %s332_s3, 4  ;;  %s343_s17 = int_to_ptr.vmem [resolvable:$true] %s342_s17 }
  0x31   : > { %s284_s20 = sshll.u32 %s8028_s28, 4  ;;  %s8201_s9 = scalar_lea.sflag [#allocation7], %s328_s19  ;;  %s285_s20 = int_to_ptr.vmem [resolvable:$true] %s284_s20 }
  0x32   : > { %s341_s22 = scalar_lea.hbm %s10266_s1, %s8184_s12  ;;  %p10242_p4 = pneg %p8188_p0 }
  0x33   : > { %s7838_s7 = scalar_lea.vmem %s343_s17, 4096  ;;  %s8029_s18 = smov [#allocation6]  }
  0x34   : > { %p7839_p2 = scmp.ne.s32.totalorder %s343_s17, %s7838_s7  ;;  %s7843_s15 = sshll.u32 %s8029_s18, 4  ;;  %s7844_s15 = int_to_ptr.vmem [resolvable:$false] %s7843_s15 }
  0x35   : > { %s7845_s21 = scalar_lea.vmem %s7844_s15, 8192  ;;  %p7846_p11 = scmp.lt.s32.totalorder %s343_s17, %s7844_s15 }
  0x36   : > { %p7841_p7 = pnand %p7839_p2, %p10242_p4  ;;  %p7847_p13 = scmp.lt.s32.totalorder %s7845_s21, %s7838_s7 }
  0x38   : > { %p7842_p9 = pneg %p7841_p7  ;;  %p7848_p3 = por %p7847_p13, %p7846_p11 }
  0x3a   : > { %p7849_p10 = pnand %p7848_p3, %p7842_p9 }
  0x3c   : > { %7852 = shalt.err (!%p7849_p10)
}
  0x3d   : > { %s10243_s3 = smov 128   ;;  %s10245_s28 = smov 8  }
  0x3e   : > { %7443 = dma.hbm_to_vmem [thread:$0]  (!%p8188_p0), %s341_s22, 4096, %s343_s17, %s8201_s9, %s10243_s3, %s10243_s3, %s10245_s28  }
  0x3f   : > { %s7864_s19 = scalar_lea.vmem %s285_s20, 9216  ;;  %p7872_p11 = scmp.lt.s32.totalorder %s285_s20, %s285_s20 }
  0x40   : > { %p7865_p2 = scmp.ne.s32.totalorder %s285_s20, %s7864_s19  ;;  %p7873_p9 = scmp.lt.s32.totalorder %s7864_s19, %s7864_s19 }
  0x42   : > { %p7867_p7 = pnand %p7865_p2, %p7801_p5  ;;  %p7874_p13 = por %p7873_p9, %p7872_p11 }
  0x44   : > { %p7868_p4 = pneg %p7867_p7 }
  0x46   : > { %p7875_p3 = pnand %p7874_p13, %p7868_p4 }
  0x48   : > { %7878 = shalt.err (!%p7875_p3)
}
  0x49   : > { %s10267_s7 = smov 4   ;;  %s10268_s15 = smov 64  }
  0x4a   : > { %7436 = dma.hbm_to_vmem [thread:$0]  (!%p8150_p1), %s10231_s5, 9216, %s285_s20, [#allocation10], %s10268_s15, %s10268_s15, %s10267_s7  }
  0x4b   : > { %s5997_s17 = sshll.u32 %s8179_s14, 4  ;;  %s317_s21 = scalar_lea.hbm %s10226_s0, %s8184_s12 }
  0x4c   : > { %s305_s19 = scalar_lea.vmem [#allocation3], %s5997_s17  ;;  %s356_s28 = scalar_lea.vmem [#allocation8], %s5997_s17 }
  0x4d   : > { %s318_s3 = sshll.u32 %s305_s19, 4  ;;  %s369_s16 = sshll.u32 %s356_s28, 4  ;;  %s319_s3 = int_to_ptr.vmem [resolvable:$true] %s318_s3  ;;  %s8230_s16 = int_to_ptr.vmem [resolvable:$true] %s369_s16 }
  0x4e   : > { %s302_s1 = scalar_lea.sflag [#allocation4], %s8179_s14  ;;  %s7892_s26 = scalar_lea.vmem %s319_s3, 256 }
  0x4f   : > { %p7893_p5 = scmp.ne.s32.totalorder %s319_s3, %s7892_s26  ;;  %p10269_p4 = pneg %p8188_p0 }
  0x50   : > { %s8032_s20 = smov [#allocation3]  }
  0x51   : > { %p7895_p10 = pnand %p7893_p5, %p10269_p4  ;;  %s7897_s7 = sshll.u32 %s8032_s20, 4  ;;  %s7898_s7 = int_to_ptr.vmem [resolvable:$false] %s7897_s7 }
  0x52   : > { %s7899_s15 = scalar_lea.vmem %s7898_s7, 512  ;;  %p7900_p1 = scmp.lt.s32.totalorder %s319_s3, %s7898_s7 }
  0x53   : > { %p7896_p2 = pneg %p7895_p10  ;;  %p7901_p7 = scmp.lt.s32.totalorder %s7899_s15, %s7892_s26 }
  0x55   : > { %p7902_p11 = por %p7901_p7, %p7900_p1 }
  0x57   : > { %p7903_p9 = pnand %p7902_p11, %p7896_p2 }
  0x59   : > { %7906 = shalt.err (!%p7903_p9)
}
  0x5a   : > { %s10270_s28 = smov 8   ;;  %s10271_s23 = smov 128  }
  0x5b   : > { %7440 = dma.hbm_to_vmem [thread:$0]  (!%p8188_p0), %s317_s21, 256, %s319_s3, %s302_s1, %s10271_s23, %s10271_s23, %s10270_s28  }
  0x5c   : > { %s6417_s14 = sadd.s32 3840, %s8184_s12  ;;  %s7920_s26 = scalar_lea.vmem %s8230_s16, 256 }
  0x5d   : > { %s368_s22 = scalar_lea.hbm %s10228_s2, %s6417_s14  ;;  %p7921_p13 = scmp.ne.s32.totalorder %s8230_s16, %s7920_s26 }
  0x5e   : > { %p10272_p3 = pmov %p10269_p4  ;;  %s8033_s18 = smov [#allocation8]  }
  0x5f   : > { %s7925_s19 = sshll.u32 %s8033_s18, 4  ;;  %s7926_s19 = int_to_ptr.vmem [resolvable:$false] %s7925_s19 }
  0x60   : > { %p7923_p5 = pnand %p7921_p13, %p10272_p3  ;;  %s7927_s20 = scalar_lea.vmem %s7926_s19, 512 }
  0x61   : > { %p7928_p10 = scmp.lt.s32.totalorder %s8230_s16, %s7926_s19  ;;  %p7929_p2 = scmp.lt.s32.totalorder %s7927_s20, %s7920_s26 }
  0x62   : > { %p7924_p4 = pneg %p7923_p5 }
  0x63   : > { %p7930_p1 = por %p7929_p2, %p7928_p10 }
  0x65   : > { %p7931_p7 = pnand %p7930_p1, %p7924_p4 }
  0x67   : > { %7934 = shalt.err (!%p7931_p7)
}
  0x68   : > { %7446 = dma.hbm_to_vmem [thread:$0]  (!%p8188_p0), %s368_s22, 256, %s8230_s16, %s8201_s9, %s10271_s23, %s10271_s23, %s10270_s28  }
  0x69   : > { %381 = sbr.rel (%p8141_p12) target bundleno = 872 (0x368), region = 48 }
  0x6e   : > { %s8261_s1 = sand.u32 1, %s8007_s25  }
  0x6f   : > { %s6007_s12 = sshll.u32 %s8261_s1, 4  ;;  %s384_s3 = scalar_lea.sflag [#allocation4], %s8261_s1 }
  0x70   : > { %s387_s21 = scalar_lea.vmem [#allocation3], %s6007_s12 }
  0x71   : > { %7986 = dma.done.wait (%p8127_p6), %s384_s3, 256  }
  0x72   : > { %7988 = vsyncadd (%p8127_p6), %s384_s3, 4294967040  ;;  %s392_s24 = sand.u32 1, %s8111_s30   ;;  %s6008_s13 = sshll.u32 %s8261_s1, 8 }
  0x73   : > { %s393_s9 = scalar_lea.sflag [#allocation7], %s392_s24  ;;  %s8271_s16 = scalar_lea.vmem [#allocation6], %s6008_s13 }
  0x74   : > { %7990 = dma.done.wait (%p8127_p6), %s393_s9, 4352  }
  0x75   : > { %7992 = vsyncadd (%p8127_p6), %s393_s9, 4294962944  ;;  %s8277_s7 = scalar_lea.vmem [#allocation8], %s6007_s12  ;;  %p10273_p12 = scmp.eq.s32.totalorder %s8111_s30, 0 }
  0x77   : > { %7994 = dma.done.wait (%p10273_p12), [#allocation10], 9472   ;;  %p10274_p0 = pmov %p10273_p12 }
  0x78   : > { %v7516_v0 = vld [vmem:[#allocation9 + $0x8] sm:$0xff]   ;;  %v7517_v1 = vld [vmem:[#allocation9] sm:$0xff]   ;;  %vm543_vm0 = vcmask 261120   ;;  %v477_v7 = vld [vmem:[%s8271_s16 + $0x10] sm:$0xff]  ;;  %s8034_s30 = smov 32   ;;  %vm1271_vm1 = vcmask 1040384  }
  0x79   : > { %7996 = vsyncadd (%p10274_p0), [#allocation10], 4294957824  ;;  %6926 = vmatprep.subr.bf16.mxu0 %v7516_v0  ;;  %v471_v2 = vld [vmem:[%s387_s21] sm:$0xff]  ;;  %v472_v3 = vld [vmem:[%s387_s21 + $0x8] sm:$0xff]  ;;  %vm1272_vm2 = vsmask.f32 256 }
  0x7a   : > { %6927 = vmatpush3.bf16.msra.mxu0 %v7516_v0  ;;  %v507_v4 = vpack.c.bf16 %v472_v3, %v471_v2  ;;  %v475_v5 = vld [vmem:[%s8271_s16] sm:$0xff]  ;;  %v476_v6 = vld [vmem:[%s8271_s16 + $0x8] sm:$0xff]  ;;  %v478_v8 = vld [vmem:[%s8271_s16 + $0x18] sm:$0xff]  ;;  %vm1508_vm3 = vcmask 1047552   ;;  %vm1509_vm4 = vsmask.f32 7424 }
  0x7b   : > { %6928 = vmatprep.subr.bf16.mxu0 %v7517_v1  ;;  %v508_v9 = vpack.c.bf16 %v476_v6, %v475_v5  ;;  %v509_v10 = vpack.c.bf16 %v478_v8, %v477_v7  ;;  %v479_v11 = vld [vmem:[%s8271_s16 + $0x20] sm:$0xff]  ;;  %v480_v12 = vld [vmem:[%s8271_s16 + $0x28] sm:$0xff]  ;;  %v481_v13 = vld [vmem:[%s8271_s16 + $0x30] sm:$0xff]  ;;  %s8036_s28 = smov 64   ;;  %s8037_s8 = smov 96   ;;  %vm5491_vm7 = vcmask 523264  }
  0x7c   : > { %6930 = vmatprep.mubr.msk.bf16.mxu0 %vm543_vm0, %v507_v4  ;;  %v482_v14 = vld [vmem:[%s8271_s16 + $0x38] sm:$0xff]  ;;  %v510_v15 = vpack.c.bf16 %v480_v12, %v479_v11  ;;  %v7518_v16 = vld [vmem:[#allocation11 + $0x78] sm:$0xff]   ;;  %v7519_v18 = vld [vmem:[#allocation11 + $0x70] sm:$0xff]   ;;  %vm5524_vm8 = vcmask 785408   ;;  %s6012_s26 = sshll.u32 %s8261_s1, 7  ;;  %s6486_s19 = sshll.u32 %s8015_s27, 11 }
  0x7d   : > { %v511_v17 = vpack.c.bf16 %v482_v14, %v481_v13  ;;  %6966 = vmatprep.subr.bf16.mxu1 %v7518_v16  ;;  %v483_v19 = vld [vmem:[%s8271_s16 + $0x40] sm:$0xff]  ;;  %v484_v20 = vld [vmem:[%s8271_s16 + $0x48] sm:$0xff]  ;;  %v485_v21 = vld [vmem:[%s8271_s16 + $0x50] sm:$0xff]  ;;  %s9997_s18 = scalar_lea.vmem [#allocation12], %s6012_s26  ;;  %s10457_s21 = sld [smem:[#allocation110_spill]] }
  0x7e   : > { %6929 = vmatpush3.bf16.msra.mxu0 %v7517_v1  ;;  %6967 = vmatpush3.bf16.msra.mxu1 %v7518_v16  ;;  %v486_v22 = vld [vmem:[%s8271_s16 + $0x58] sm:$0xff]  ;;  %v512_v23 = vpack.c.bf16 %v484_v20, %v483_v19  ;;  %v487_v25 = vld [vmem:[%s8271_s16 + $0x60] sm:$0xff]  ;;  %v488_v26 = vld [vmem:[%s8271_s16 + $0x68] sm:$0xff]  ;;  %s5836_s20 = sshll.u32 %s9997_s18, 4  ;;  %s5820_s13 = scalar_lea.sflag [#allocation5], %s8261_s1  ;;  %s10175_s20 = int_to_ptr.vmem [resolvable:$true] %s5836_s20 }
  0x7f   : > { %6968 = vmatprep.subr.bf16.mxu1 %v7519_v18  ;;  %v513_v24 = vpack.c.bf16 %v486_v22, %v485_v21  ;;  %v489_v27 = vld [vmem:[%s8271_s16 + $0x70] sm:$0xff]  ;;  %v490_v28 = vld [vmem:[%s8271_s16 + $0x78] sm:$0xff]  ;;  %v514_v29 = vpack.c.bf16 %v488_v26, %v487_v25  ;;  %v491_v31 = vld [vmem:[%s8271_s16 + $0x80] sm:$0xff]  ;;  %s7935_s9 = scalar_lea.vmem %s10175_s20, 2048  ;;  %s8038_s27 = smov [#allocation12]  }
  0x80   : > { %v515_v30 = vpack.c.bf16 %v490_v28, %v489_v27  ;;  %v492_v32 = vld [vmem:[%s8271_s16 + $0x88] sm:$0xff]  ;;  %v493_v33 = vld [vmem:[%s8271_s16 + $0x90] sm:$0xff]  ;;  %v494_v34 = vld [vmem:[%s8271_s16 + $0x98] sm:$0xff]  ;;  %p7936_p6 = scmp.ne.s32.totalorder %s10175_s20, %s7935_s9 }
  0x81   : > { %6931 = vmatmul.mubr.msk.bf16.vlgmr.msra.gmra.mxu0 %vm543_vm0, %v508_v9  ;;  %v516_v35 = vpack.c.bf16 %v492_v32, %v491_v31  ;;  %v517_v36 = vpack.c.bf16 %v494_v34, %v493_v33  ;;  %v495_v37 = vld [vmem:[%s8271_s16 + $0xa0] sm:$0xff]  ;;  %v496_v38 = vld [vmem:[%s8271_s16 + $0xa8] sm:$0xff]  ;;  %v497_v39 = vld [vmem:[%s8271_s16 + $0xb0] sm:$0xff] }
  0x82   : > { %6934 = vmatprep.mubr.msk.bf16.mxu0 %vm543_vm0, %v509_v10  ;;  %6969 = vmatpush3.bf16.msra.mxu1 %v7519_v18  ;;  %v498_v40 = vld [vmem:[%s8271_s16 + $0xb8] sm:$0xff]  ;;  %v518_v41 = vpack.c.bf16 %v496_v38, %v495_v37  ;;  %v499_v43 = vld [vmem:[%s8271_s16 + $0xc0] sm:$0xff]  ;;  %v500_v44 = vld [vmem:[%s8271_s16 + $0xc8] sm:$0xff]  ;;  %p7937_p11 = pnand %p7936_p6, %p8131_p8 }
  0x83   : > { %v519_v42 = vpack.c.bf16 %v498_v40, %v497_v39  ;;  %v501_v45 = vld [vmem:[%s8271_s16 + $0xd0] sm:$0xff]  ;;  %v502_v46 = vld [vmem:[%s8271_s16 + $0xd8] sm:$0xff]  ;;  %v520_v47 = vpack.c.bf16 %v500_v44, %v499_v43  ;;  %v503_v49 = vld [vmem:[%s8271_s16 + $0xe0] sm:$0xff]  ;;  %s10172_s24 = scalar_lea.hbm %s10457_s21, %s6486_s19 }
  0x84   : > { %v521_v48 = vpack.c.bf16 %v502_v46, %v501_v45  ;;  %v504_v50 = vld [vmem:[%s8271_s16 + $0xe8] sm:$0xff]  ;;  %v505_v51 = vld [vmem:[%s8271_s16 + $0xf0] sm:$0xff]  ;;  %v506_v52 = vld [vmem:[%s8271_s16 + $0xf8] sm:$0xff]  ;;  %p7938_p9 = pneg %p7937_p11 }
  0x85   : > { %v522_v53 = vpack.c.bf16 %v504_v50, %v503_v49  ;;  %v523_v54 = vpack.c.bf16 %v506_v52, %v505_v51  ;;  %v473_v55 = vld [vmem:[%s8277_s7] sm:$0xff]  ;;  %v474_v56 = vld [vmem:[%s8277_s7 + $0x8] sm:$0xff]  ;;  %vm8416_vm5 = vmand %vm1271_vm1, %vm1272_vm2 }
  0x86   : > { %v524_v57 = vpack.c.bf16 %v474_v56, %v473_v55  ;;  %v7520_v58 = vld [vmem:[#allocation11 + $0x68] sm:$0xff]   ;;  %v7523_v59 = vld [vmem:[#allocation11 + $0x60] sm:$0xff]   ;;  %v7521_v60 = vld [vmem:[#allocation11 + $0x38] sm:$0xff]  }
  0x87   : > { %6970 = vmatprep.subr.bf16.mxu1 %v7520_v58  ;;  %7014 = vmatprep.subr.bf16.mxu0 %v7521_v60  ;;  %v7525_v61 = vld [vmem:[#allocation11 + $0x58] sm:$0xff]   ;;  %v7528_v62 = vld [vmem:[#allocation11 + $0x50] sm:$0xff]   ;;  %v7530_v0 = vld [vmem:[#allocation11 + $0x48] sm:$0xff]  }
  0x88   : > { %6971 = vmatpush3.bf16.msra.mxu1 %v7520_v58  ;;  %7015 = vmatpush3.bf16.msra.mxu0 %v7521_v60  ;;  %v7526_v63 = vld [vmem:[#allocation11 + $0x30] sm:$0xff]   ;;  %v7531_v1 = vld [vmem:[#allocation11 + $0x28] sm:$0xff]   ;;  %v7533_v2 = vld [vmem:[#allocation11 + $0x40] sm:$0xff]  }
  0x89   : > { %6935 = vmatmul.mubr.msk.bf16.gmra.mxu0 %vm543_vm0, %v510_v15  ;;  %6972 = vmatprep.subr.bf16.mxu1 %v7523_v59  ;;  %v7536_v3 = vld [vmem:[#allocation11 + $0x20] sm:$0xff]   ;;  %v7540_v4 = vld [vmem:[#allocation11 + $0x18] sm:$0xff]   ;;  %v7543_v5 = vld [vmem:[#allocation11 + $0x10] sm:$0xff]  }
  0x8a   : > { %6938 = vmatprep.mubr.msk.bf16.mxu0 %vm543_vm0, %v511_v17  ;;  %7016 = vmatprep.subr.bf16.mxu0 %v7526_v63  ;;  %v7547_v6 = vld [vmem:[#allocation11 + $0x8] sm:$0xff]   ;;  %v7550_v7 = vld [vmem:[#allocation11] sm:$0xff]   ;;  %v8335_v8 = vld [vmem:[#allocation11 + $0xb8] sm:$0xff]  }
  0x8b   : > { %v8338_v9 = vld [vmem:[#allocation11 + $0xf8] sm:$0xff]   ;;  %v8342_v10 = vld [vmem:[%s8271_s16] sm:$0xff]  ;;  %v8347_v11 = vld [vmem:[%s8271_s16 + $0x10] sm:$0xff] }
  0x8c   : > { %6973 = vmatpush3.bf16.msra.mxu1 %v7523_v59  ;;  %7017 = vmatpush3.bf16.msra.mxu0 %v7526_v63  ;;  %v5108_v12 = vld [vmem:[%s8271_s16 + $0x8] sm:$0xff]  ;;  %v5110_v13 = vld [vmem:[%s8271_s16 + $0x18] sm:$0xff]  ;;  %v8355_v14 = vld [vmem:[%s8271_s16 + $0x20] sm:$0xff] }
  0x8d   : > { %6974 = vmatprep.subr.bf16.mxu1 %v7525_v61  ;;  %7018 = vmatprep.subr.bf16.mxu0 %v7531_v1  ;;  %v5112_v15 = vld [vmem:[%s8271_s16 + $0x28] sm:$0xff]  ;;  %v8362_v16 = vld [vmem:[%s8271_s16 + $0x30] sm:$0xff]  ;;  %v5114_v17 = vld [vmem:[%s8271_s16 + $0x38] sm:$0xff] }
  0x8e   : > { %5171 = vrot.lane.b32.xlu0 %v8342_v10, %s8034_s30  ;;  %5175 = vrot.lane.b32.xlu1 %v8347_v11, %s8034_s30  ;;  %v5115_v18 = vld [vmem:[%s8271_s16 + $0x40] sm:$0xff]  ;;  %v5116_v19 = vld [vmem:[%s8271_s16 + $0x48] sm:$0xff]  ;;  %vm8430_vm6 = vmand %vm1508_vm3, %vm1509_vm4 }
  0x8f   : > { %v5117_v20 = vld [vmem:[%s8271_s16 + $0x50] sm:$0xff]  ;;  %v5118_v21 = vld [vmem:[%s8271_s16 + $0x58] sm:$0xff]  ;;  %v5119_v22 = vld [vmem:[%s8271_s16 + $0x60] sm:$0xff] }
  0x90   : > { %6975 = vmatpush3.bf16.msra.mxu1 %v7525_v61  ;;  %7019 = vmatpush3.bf16.msra.mxu0 %v7531_v1  ;;  %v8386_v26 = vld [vmem:[%s10230_s4] ss:$0 sm:$0xff]  ;;  %v5122_v28 = vld [vmem:[%s8271_s16 + $0x78] sm:$0xff]  ;;  %v5124_v32 = vld [vmem:[%s8271_s16 + $0x88] sm:$0xff] }
  0x91   : > { %6939 = vmatmul.mubr.msk.bf16.gmra.mxu0 %vm543_vm0, %v512_v23  ;;  %6976 = vmatprep.subr.bf16.mxu1 %v7528_v62  ;;  %v5120_v23 = vld [vmem:[%s8271_s16 + $0x68] sm:$0xff]  ;;  %v5125_v33 = vld [vmem:[%s8271_s16 + $0x90] sm:$0xff]  ;;  %v5126_v45 = vld [vmem:[%s8271_s16 + $0x98] sm:$0xff] }
  0x92   : > { %6942 = vmatprep.mubr.msk.bf16.mxu0 %vm543_vm0, %v513_v24  ;;  %7020 = vmatprep.subr.bf16.mxu0 %v7536_v3  ;;  %v5121_v24 = vld [vmem:[%s8271_s16 + $0x70] sm:$0xff]  ;;  %v5127_v46 = vld [vmem:[%s8271_s16 + $0xa0] sm:$0xff]  ;;  %v5128_v50 = vld [vmem:[%s8271_s16 + $0xa8] sm:$0xff] }
  0x93   : > { %5173 = vrot.lane.b32.xlu0 %v5108_v12, %s8034_s30  ;;  %5177 = vrot.lane.b32.xlu1 %v5110_v13, %s8034_s30  ;;  %v5129_v51 = vld [vmem:[%s8271_s16 + $0xb0] sm:$0xff]  ;;  %v5131_v12 = vld [vmem:[%s8271_s16 + $0xc0] sm:$0xff] }
  0x94   : > { %6977 = vmatpush3.bf16.msra.mxu1 %v7528_v62  ;;  %7021 = vmatpush3.bf16.msra.mxu0 %v7536_v3 }
  0x95   : > { %6978 = vmatprep.subr.bf16.mxu1 %v7530_v0  ;;  %7022 = vmatprep.subr.bf16.mxu0 %v7540_v4 }
  0x97   : > { %5179 = vrot.lane.b32.xlu0 %v8355_v14, %s8034_s30  ;;  %5181 = vrot.lane.b32.xlu1 %v5112_v15, %s8034_s30 }
  0x98   : > { %6979 = vmatpush3.bf16.msra.mxu1 %v7530_v0  ;;  %7023 = vmatpush3.bf16.msra.mxu0 %v7540_v4 }
  0x99   : > { %6943 = vmatmul.mubr.msk.bf16.gmra.mxu0 %vm543_vm0, %v514_v29  ;;  %6980 = vmatprep.subr.bf16.mxu1 %v7533_v2  ;;  %v5123_v29 = vld [vmem:[%s8271_s16 + $0x80] sm:$0xff] }
  0x9a   : > { %6946 = vmatprep.mubr.msk.bf16.mxu0 %vm543_vm0, %v515_v30  ;;  %7024 = vmatprep.subr.bf16.mxu0 %v7543_v5 }
  0x9b   : > { %5183 = vrot.lane.b32.xlu0 %v8362_v16, %s8034_s30  ;;  %5185 = vrot.lane.b32.xlu1 %v5114_v17, %s8034_s30 }
  0x9c   : > { %6981 = vmatpush3.bf16.msra.mxu1 %v7533_v2  ;;  %7025 = vmatpush3.bf16.msra.mxu0 %v7543_v5  ;;  %v7656_v5 = vld [vmem:[#allocation11 + $0x1a8] sm:$0xff]  }
  0x9d   : > { %7026 = vmatprep.subr.bf16.mxu0 %v7547_v6  ;;  %7062 = vmatprep.subr.bf16.mxu1 %v8335_v8 }
  0x9f   : > { %5187 = vrot.lane.b32.xlu0 %v5115_v18, %s8034_s30  ;;  %5189 = vrot.lane.b32.xlu1 %v5116_v19, %s8034_s30 }
  0xa0   : > { %7027 = vmatpush3.bf16.msra.mxu0 %v7547_v6 }
  0xa1   : > { %6947 = vmatmul.mubr.msk.bf16.gmra.mxu0 %vm543_vm0, %v516_v35  ;;  %7028 = vmatprep.subr.bf16.mxu0 %v7550_v7 }
  0xa2   : > { %6950 = vmatprep.mubr.msk.bf16.mxu0 %vm543_vm0, %v517_v36 }
  0xa3   : > { %5191 = vrot.lane.b32.xlu0 %v5117_v20, %s8034_s30  ;;  %5193 = vrot.lane.b32.xlu1 %v5118_v21, %s8034_s30 }
  0xa4   : > { %7029 = vmatpush3.bf16.msra.mxu0 %v7550_v7  ;;  %v5130_v7 = vld [vmem:[%s8271_s16 + $0xb8] sm:$0xff] }
  0xa5   : > { %7110 = vmatprep.subr.bf16.mxu0 %v8338_v9 }
  0xa7   : > { %5195 = vrot.lane.b32.xlu0 %v5119_v22, %s8034_s30  ;;  %5197 = vrot.lane.b32.xlu1 %v5120_v23, %s8034_s30 }
  0xa9   : > { %6951 = vmatmul.mubr.msk.bf16.gmra.mxu0 %vm543_vm0, %v518_v41 }
  0xaa   : > { %6954 = vmatprep.mubr.msk.bf16.mxu0 %vm543_vm0, %v519_v42 }
  0xab   : > { %5199 = vrot.lane.b32.xlu0 %v5121_v24, %s8034_s30  ;;  %5201 = vrot.lane.b32.xlu1 %v5122_v28, %s8034_s30 }
  0xaf   : > { %5203 = vrot.lane.b32.xlu0 %v5123_v29, %s8034_s30  ;;  %5205 = vrot.lane.b32.xlu1 %v5124_v32, %s8034_s30  ;;  %v7544_v29 = vld [vmem:[#allocation11 + $0xb0] sm:$0xff]  }
  0xb1   : > { %6955 = vmatmul.mubr.msk.bf16.gmra.mxu0 %vm543_vm0, %v520_v47 }
  0xb2   : > { %6958 = vmatprep.mubr.msk.bf16.mxu0 %vm543_vm0, %v521_v48 }
  0xb3   : > { %5207 = vrot.lane.b32.xlu0 %v5125_v33, %s8034_s30  ;;  %5209 = vrot.lane.b32.xlu1 %v5126_v45, %s8034_s30 }
  0xb7   : > { %5211 = vrot.lane.b32.xlu0 %v5127_v46, %s8034_s30  ;;  %5213 = vrot.lane.b32.xlu1 %v5128_v50, %s8034_s30 }
  0xb9   : > { %6959 = vmatmul.mubr.msk.bf16.gmra.mxu0 %vm543_vm0, %v522_v53 }
  0xba   : > { %6962 = vmatprep.mubr.msk.bf16.mxu0 %vm543_vm0, %v523_v54  ;;  %v8035_v54 = vmov 0  }
  0xbb   : > { %5215 = vrot.lane.b32.xlu0 %v5129_v51, %s8034_s30  ;;  %5217 = vrot.lane.b32.xlu1 %v5130_v7, %s8034_s30 }
  0xbf   : > { %5219 = vrot.lane.b32.xlu0 %v5131_v12, %s8034_s30 }
  0xc1   : > { %6963 = vmatmul.mubr.msk.bf16.gmra.mxu0 %vm543_vm0, %v524_v57 }
 0x141   : > { %v6932_v25 = vpop.f32.mrf.mxu0 }
 0x142   : > { %v641_v30 = vadd.f32 %v6932_v25, %v8386_v26 }
 0x143   : > { %v632_v27 = vpop.f32.mrf.mxu0 }
 0x144   : > { %v633_v34 = vadd.f32 %v8386_v26, %v632_v27  ;;  %v777_v37 = vmax.f32 %v641_v30, 0.0 }
 0x145   : > { %v6933_v31 = vpop.f32.mrf.mxu0 }
 0x146   : > { %v644_v35 = vadd.f32 %v6933_v31, %v8386_v26  ;;  %v775_v41 = vmax.f32 %v633_v34, 0.0  ;;  %v5132_v34 = vld [vmem:[%s8271_s16 + $0xc8] sm:$0xff] }
 0x147   : > { %v635_v36 = vpop.f32.mrf.mxu0  ;;  %5221 = vrot.lane.b32.xlu1 %v5132_v34, %s8034_s30 }
 0x148   : > { %v778_v38 = vmax.f32 %v644_v35, 0.0  ;;  %v636_v39 = vadd.f32 %v8386_v26, %v635_v36 }
 0x149   : > { %v6936_v40 = vpop.f32.mrf.mxu0 }
 0x14a   : > { %v6495_v42 = vpack.c.bf16 %v778_v38, %v777_v37  ;;  %v776_v43 = vmax.f32 %v636_v39, 0.0  ;;  %v657_v48 = vadd.f32 %v6936_v40, %v8386_v26  ;;  %v5133_v39 = vld [vmem:[%s8271_s16 + $0xd0] sm:$0xff] }
 0x14b   : > { %v648_v44 = vpop.f32.mrf.mxu0  ;;  %5223 = vrot.lane.b32.xlu0 %v5133_v39, %s8034_s30 }
 0x14c   : > { %6658 = vst [vmem:[#allocation2 + $0x98] sm:$0xff] %v6495_v42   ;;  %v6490_v47 = vpack.c.bf16 %v776_v43, %v775_v41  ;;  %v649_v52 = vadd.f32 %v8386_v26, %v648_v44  ;;  %v781_v56 = vmax.f32 %v657_v48, 0.0  ;;  %v7551_v44 = vld [vmem:[#allocation11 + $0xa8] sm:$0xff]  }
 0x14d   : > { %v6937_v49 = vpop.f32.mrf.mxu0 }
 0x14e   : > { %6491 = vst [vmem:[#allocation2 + $0x90] sm:$0xff] %v6490_v47   ;;  %v660_v53 = vadd.f32 %v6937_v49, %v8386_v26  ;;  %v779_v60 = vmax.f32 %v649_v52, 0.0 }
 0x14f   : > { %996 = vst [vmem:[#allocation2 + $0x90] sm:$0xf] %v8035_v54  ;;  %997 = vst [vmem:[#allocation2 + $0x94] sm:$0xf] %v8035_v54  ;;  %v651_v55 = vpop.f32.mrf.mxu0 }
 0x150   : > { %v782_v57 = vmax.f32 %v660_v53, 0.0  ;;  %v652_v58 = vadd.f32 %v8386_v26, %v651_v55 }
 0x151   : > { %v6940_v59 = vpop.f32.mrf.mxu0 }
 0x152   : > { %v6505_v61 = vpack.c.bf16 %v782_v57, %v781_v56  ;;  %v780_v62 = vmax.f32 %v652_v58, 0.0  ;;  %v673_v2 = vadd.f32 %v6940_v59, %v8386_v26 }
 0x153   : > { %v7522_v63 = vld [vmem:[#allocation2 + $0x98] sm:$0xff]   ;;  %v664_v0 = vpop.f32.mrf.mxu0 }
 0x154   : > { %6660 = vst [vmem:[#allocation2 + $0xa8] sm:$0xff] %v6505_v61   ;;  %v6500_v1 = vpack.c.bf16 %v780_v62, %v779_v60  ;;  %v1135_v3 = vshrl.u32 %v7522_v63, 16  ;;  %v1138_v4 = vshll.u32 %v7522_v63, 16  ;;  %v665_v15 = vadd.f32 %v8386_v26, %v664_v0  ;;  %v7538_v28 = vld [vmem:[#allocation2 + $0x98] sm:$0xff]  }
 0x155   : > { %v6941_v6 = vpop.f32.mrf.mxu0  ;;  %v785_v23 = vmax.f32 %v673_v2, 0.0  ;;  %v5134_v2 = vld [vmem:[%s8271_s16 + $0xd8] sm:$0xff] }
 0x156   : > { %v8422_v13 = vld [vmem:[#allocation2 + $0x90] sm:$0xff]   ;;  %6659 = vst [vmem:[#allocation2 + $0xa0] sm:$0xff] %v6500_v1   ;;  %v676_v17 = vadd.f32 %v6941_v6, %v8386_v26  ;;  %v1137_v18 = vrot.slane %v1135_v3, 7  ;;  %v1456_v19 = vrot.slane %v1138_v4, 1  ;;  %v783_v35 = vmax.f32 %v665_v15, 0.0  ;;  %5225 = vrot.lane.b32.xlu1 %v5134_v2, %s8034_s30 }
 0x157   : > { %v667_v21 = vpop.f32.mrf.mxu0  ;;  %v1128_v22 = vshrl.u32 %v8422_v13, 16  ;;  %v7535_v27 = vld [vmem:[#allocation2 + $0x90] sm:$0xff]   ;;  %v1131_v32 = vshll.u32 %v8422_v13, 16 }
 0x158   : > { %v786_v24 = vmax.f32 %v676_v17, 0.0  ;;  %v668_v25 = vadd.f32 %v8386_v26, %v667_v21  ;;  %v1140_v30 = vor.u32 %v1138_v4, %v1137_v18  ;;  %v1457_v31 = vor.u32 %v1456_v19, %v1135_v3  ;;  %6982 = vmatprep.mubr.bf16.mxu1 %v7535_v27  ;;  %v5135_v3 = vld [vmem:[%s8271_s16 + $0xe0] sm:$0xff]  ;;  %v7558_v18 = vld [vmem:[#allocation11 + $0xa0] sm:$0xff]  }
 0x159   : > { %v6944_v33 = vpop.f32.mrf.mxu0  ;;  %v1130_v38 = vrot.slane %v1128_v22, 7  ;;  %6983 = vmatmul.mubr.bf16.vlgmr.msra.gmra.mxu1 %v7538_v28  ;;  %5227 = vrot.lane.b32.xlu0 %v5135_v3, %s8034_s30  ;;  %v7565_v28 = vld [vmem:[#allocation11 + $0x98] sm:$0xff]  }
 0x15a   : > { %v6515_v36 = vpack.c.bf16 %v786_v24, %v785_v23  ;;  %v784_v37 = vmax.f32 %v668_v25, 0.0  ;;  %v1275_v40 = vsel %vm8416_vm5, 0, %v1140_v30  ;;  %v1512_v41 = vsel %vm8430_vm6, %v1457_v31, 0  ;;  %7063 = vmatpush3.bf16.msra.mxu1 %v8335_v8 }
 0x15b   : > { %v689_v42 = vadd.f32 %v6944_v33, %v8386_v26  ;;  %v680_v43 = vpop.f32.mrf.mxu0  ;;  %v6090_v45 = vcombine.low %v1275_v40, %v1275_v40  ;;  %v6091_v46 = vcombine.high %v1275_v40, %v1275_v40  ;;  %v6126_v47 = vcombine.low %v1512_v41, %v1512_v41  ;;  %v8448_v49 = vld [vmem:[#allocation2 + $0xa8] sm:$0xff]   ;;  %7064 = vmatprep.subr.bf16.mxu1 %v7544_v29 }
 0x15c   : > { %v6127_v48 = vcombine.high %v1512_v41, %v1512_v41  ;;  %6662 = vst [vmem:[#allocation2 + $0xb8] sm:$0xff] %v6515_v36   ;;  %v6510_v51 = vpack.c.bf16 %v784_v37, %v783_v35  ;;  %v1133_v53 = vor.u32 %v1131_v32, %v1130_v38  ;;  %v1149_v55 = vshrl.u32 %v8448_v49, 16  ;;  %v7545_v12 = vld [vmem:[#allocation2 + $0xa8] sm:$0xff]  }
 0x15d   : > { %v8451_v50 = vld [vmem:[#allocation2 + $0xa0] sm:$0xff]   ;;  %v6945_v52 = vpop.f32.mrf.mxu0  ;;  %1420 = vst [vmem:[#allocation2 + $0x8] sm:$0xf] %v6090_v45  ;;  %1421 = vst [vmem:[#allocation2 + $0xc] sm:$0xf] %v6091_v46  ;;  %v681_v56 = vadd.f32 %v8386_v26, %v680_v43  ;;  %v789_v58 = vmax.f32 %v689_v42, 0.0 }
 0x15e   : > { %1658 = vst [vmem:[#allocation2 + $0x128] sm:$0xf] %v6126_v47  ;;  %1659 = vst [vmem:[#allocation2 + $0x12c] sm:$0xf] %v6127_v48  ;;  %v692_v8 = vadd.f32 %v6945_v52, %v8386_v26  ;;  %v1142_v57 = vshrl.u32 %v8451_v50, 16  ;;  %v7542_v60 = vld [vmem:[#allocation2 + $0xa0] sm:$0xff]   ;;  %7065 = vmatpush3.bf16.msra.mxu1 %v7544_v29 }
 0x15f   : > { %6661 = vst [vmem:[#allocation2 + $0xb0] sm:$0xff] %v6510_v51   ;;  %v683_v59 = vpop.f32.mrf.mxu0  ;;  %v1274_v61 = vsel %vm8416_vm5, 0, %v1133_v53  ;;  %v1152_v62 = vshll.u32 %v8448_v49, 16  ;;  %v1145_v63 = vshll.u32 %v8451_v50, 16  ;;  %v1151_v4 = vrot.slane %v1149_v55, 7  ;;  %6986 = vmatprep.mubr.bf16.mxu1 %v7542_v60  ;;  %7066 = vmatprep.subr.bf16.mxu1 %v7551_v44  ;;  %v8500_v60 = vld [vmem:[#allocation11 + $0xf0] sm:$0xff]  }
 0x160   : > { %v790_v0 = vmax.f32 %v692_v8, 0.0  ;;  %v684_v1 = vadd.f32 %v8386_v26, %v683_v59  ;;  %v1144_v6 = vrot.slane %v1142_v57, 7  ;;  %v6088_v15 = vcombine.low %v1274_v61, %v1274_v61 }
 0x161   : > { %v6948_v7 = vpop.f32.mrf.mxu0  ;;  %v6089_v17 = vcombine.high %v1274_v61, %v1274_v61  ;;  %v787_v19 = vmax.f32 %v681_v56, 0.0  ;;  %6987 = vmatmul.mubr.bf16.gmra.mxu1 %v7545_v12  ;;  %v1454_v29 = vrot.slane %v1131_v32, 1  ;;  %v8477_v30 = vrot.slane %v1152_v62, 1  ;;  %v7572_v56 = vld [vmem:[#allocation11 + $0x90] sm:$0xff]  }
 0x162   : > { %v6525_v21 = vpack.c.bf16 %v790_v0, %v789_v58  ;;  %v788_v23 = vmax.f32 %v684_v1, 0.0  ;;  %v705_v24 = vadd.f32 %v6948_v7, %v8386_v26  ;;  %1418 = vst [vmem:[#allocation2] sm:$0xf] %v6088_v15  ;;  %v8479_v31 = vrot.slane %v1145_v63, 1  ;;  %7067 = vmatpush3.bf16.msra.mxu1 %v7551_v44  ;;  %v8509_v15 = vld [vmem:[#allocation11 + $0x88] sm:$0xff]  }
 0x163   : > { %v8473_v25 = vld [vmem:[#allocation2 + $0xb8] sm:$0xff]   ;;  %v696_v27 = vpop.f32.mrf.mxu0  ;;  %1419 = vst [vmem:[#allocation2 + $0x4] sm:$0xf] %v6089_v17  ;;  %7068 = vmatprep.subr.bf16.mxu1 %v7558_v18  ;;  %v1147_v38 = vor.u32 %v1145_v63, %v1144_v6  ;;  %v1154_v39 = vor.u32 %v1152_v62, %v1151_v4  ;;  %v1455_v42 = vor.u32 %v1454_v29, %v1128_v22  ;;  %v8515_v29 = vld [vmem:[#allocation11 + $0xe8] sm:$0xff]  }
 0x164   : > { %6664 = vst [vmem:[#allocation2 + $0xc8] sm:$0xff] %v6525_v21   ;;  %v6520_v33 = vpack.c.bf16 %v788_v23, %v787_v19  ;;  %v697_v34 = vadd.f32 %v8386_v26, %v696_v27  ;;  %v1163_v35 = vshrl.u32 %v8473_v25, 16  ;;  %v1166_v36 = vshll.u32 %v8473_v25, 16  ;;  %v7552_v53 = vld [vmem:[#allocation2 + $0xb8] sm:$0xff]   ;;  %v7555_v22 = vld [vmem:[#allocation2 + $0x8] sm:$0xff]  }
 0x165   : > { %v6949_v37 = vpop.f32.mrf.mxu0  ;;  %v793_v32 = vmax.f32 %v705_v24, 0.0  ;;  %v1276_v58 = vsel %vm8416_vm5, 0, %v1147_v38  ;;  %v1277_v59 = vsel %vm8416_vm5, 0, %v1154_v39  ;;  %v1511_v1 = vsel %vm8430_vm6, %v1455_v42, 0 }
 0x166   : > { %v8484_v40 = vld [vmem:[#allocation2 + $0xb0] sm:$0xff]   ;;  %6663 = vst [vmem:[#allocation2 + $0xc0] sm:$0xff] %v6520_v33   ;;  %v708_v41 = vadd.f32 %v6949_v37, %v8386_v26  ;;  %v1165_v43 = vrot.slane %v1163_v35, 7  ;;  %v791_v44 = vmax.f32 %v697_v34, 0.0  ;;  %v8491_v46 = vrot.slane %v1166_v36, 1  ;;  %7069 = vmatpush3.bf16.msra.mxu1 %v7558_v18 }
 0x167   : > { %v699_v45 = vpop.f32.mrf.mxu0  ;;  %v1156_v47 = vshrl.u32 %v8484_v40, 16  ;;  %v7549_v52 = vld [vmem:[#allocation2 + $0xb0] sm:$0xff]   ;;  %v1159_v8 = vshll.u32 %v8484_v40, 16  ;;  %7070 = vmatprep.subr.bf16.mxu1 %v7565_v28  ;;  %v6092_v6 = vcombine.low %v1276_v58, %v1276_v58  ;;  %v6093_v7 = vcombine.high %v1276_v58, %v1276_v58 }
 0x168   : > { %v794_v48 = vmax.f32 %v708_v41, 0.0  ;;  %v700_v51 = vadd.f32 %v8386_v26, %v699_v45  ;;  %6990 = vmatprep.mubr.bf16.mxu1 %v7549_v52  ;;  %v6094_v12 = vcombine.low %v1277_v59, %v1277_v59  ;;  %v6095_v19 = vcombine.high %v1277_v59, %v1277_v59  ;;  %v8529_v45 = vld [vmem:[#allocation11 + $0x80] sm:$0xff]  }
 0x169   : > { %v6952_v13 = vpop.f32.mrf.mxu0  ;;  %v1158_v61 = vrot.slane %v1156_v47, 7  ;;  %6991 = vmatmul.mubr.bf16.gmra.mxu1 %v7552_v53  ;;  %1422 = vst [vmem:[#allocation2 + $0x10] sm:$0xf] %v6092_v6  ;;  %1423 = vst [vmem:[#allocation2 + $0x14] sm:$0xf] %v6093_v7  ;;  %v1168_v27 = vor.u32 %v1166_v36, %v1165_v43  ;;  %v6124_v33 = vcombine.low %v1511_v1, %v1511_v1  ;;  %v8517_v34 = vrot.slane %v1159_v8, 1 }
 0x16a   : > { %v6535_v62 = vpack.c.bf16 %v794_v48, %v793_v32  ;;  %v792_v63 = vmax.f32 %v700_v51, 0.0  ;;  %v7553_v0 = vld [vmem:[#allocation2] sm:$0xff]   ;;  %v721_v3 = vadd.f32 %v6952_v13, %v8386_v26  ;;  %7071 = vmatpush3.bf16.msra.mxu1 %v7565_v28  ;;  %1424 = vst [vmem:[#allocation2 + $0x18] sm:$0xf] %v6094_v12  ;;  %1425 = vst [vmem:[#allocation2 + $0x1c] sm:$0xf] %v6095_v19 }
 0x16b   : > { %v8506_v2 = vld [vmem:[#allocation2 + $0xc8] sm:$0xff]   ;;  %v712_v4 = vpop.f32.mrf.mxu0  ;;  %7030 = vmatprep.mubr.bf16.mxu0 %v7553_v0  ;;  %v1161_v24 = vor.u32 %v1159_v8, %v1158_v61  ;;  %7072 = vmatprep.subr.bf16.mxu1 %v7572_v56  ;;  %v6125_v32 = vcombine.high %v1511_v1, %v1511_v1  ;;  %1656 = vst [vmem:[#allocation2 + $0x120] sm:$0xf] %v6124_v33  ;;  %v5136_v53 = vld [vmem:[%s8271_s16 + $0xe8] sm:$0xff]  ;;  %v1279_v58 = vsel %vm8416_vm5, 0, %v1168_v27  ;;  %v5137_v61 = vld [vmem:[%s8271_s16 + $0xf0] sm:$0xff] }
 0x16c   : > { %6666 = vst [vmem:[#allocation2 + $0xd8] sm:$0xff] %v6535_v62   ;;  %v6530_v17 = vpack.c.bf16 %v792_v63, %v791_v44  ;;  %v8512_v18 = vadd.f32 %v8386_v26, %v712_v4  ;;  %v1177_v21 = vshrl.u32 %v8506_v2, 16  ;;  %7031 = vmatmul.mubr.bf16.vlgmr.msra.gmra.mxu0 %v7555_v22  ;;  %v1180_v37 = vshll.u32 %v8506_v2, 16  ;;  %v7559_v52 = vld [vmem:[#allocation2 + $0xc8] sm:$0xff]   ;;  %5229 = vrot.lane.b32.xlu1 %v5136_v53, %s8034_s30  ;;  %v7590_v1 = vld [vmem:[#allocation11 + $0xe0] sm:$0xff]  }
 0x16d   : > { %v6953_v23 = vpop.f32.mrf.mxu0  ;;  %v8520_v38 = vld [vmem:[#allocation2 + $0xc0] sm:$0xff]   ;;  %7111 = vmatpush3.bf16.msra.mxu0 %v8338_v9  ;;  %v797_v41 = vmax.f32 %v721_v3, 0.0  ;;  %v1278_v44 = vsel %vm8416_vm5, 0, %v1161_v24  ;;  %1657 = vst [vmem:[#allocation2 + $0x124] sm:$0xf] %v6125_v32  ;;  %5231 = vrot.lane.b32.xlu0 %v5137_v61, %s8034_s30  ;;  %v6098_v7 = vcombine.low %v1279_v58, %v1279_v58  ;;  %v6099_v12 = vcombine.high %v1279_v58, %v1279_v58 }
 0x16e   : > { %6665 = vst [vmem:[#allocation2 + $0xd0] sm:$0xff] %v6530_v17   ;;  %v724_v28 = vadd.f32 %v6953_v23, %v8386_v26  ;;  %v7557_v39 = vld [vmem:[#allocation2 + $0xc0] sm:$0xff]   ;;  %v1179_v36 = vrot.slane %v1177_v21, 7  ;;  %v795_v42 = vmax.f32 %v8512_v18, 0.0  ;;  %7112 = vmatprep.subr.bf16.mxu0 %v8500_v60  ;;  %v1170_v9 = vshrl.u32 %v8520_v38, 16  ;;  %7073 = vmatpush3.bf16.msra.mxu1 %v7572_v56  ;;  %v8551_v18 = vld [vmem:[#allocation11 + $0x138] sm:$0xff]  }
 0x16f   : > { %v715_v43 = vpop.f32.mrf.mxu0  ;;  %6994 = vmatprep.mubr.bf16.mxu1 %v7557_v39  ;;  %v6096_v13 = vcombine.low %v1278_v44, %v1278_v44  ;;  %v6097_v22 = vcombine.high %v1278_v44, %v1278_v44  ;;  %7074 = vmatprep.subr.bf16.mxu1 %v8509_v15  ;;  %v1173_v63 = vshll.u32 %v8520_v38, 16  ;;  %v8555_v27 = vrot.slane %v1180_v37, 1  ;;  %1428 = vst [vmem:[#allocation2 + $0x28] sm:$0xf] %v6098_v7 }
 0x170   : > { %v798_v48 = vmax.f32 %v724_v28, 0.0  ;;  %v716_v51 = vadd.f32 %v8386_v26, %v715_v43  ;;  %v1182_v59 = vor.u32 %v1180_v37, %v1179_v36  ;;  %v1172_v62 = vrot.slane %v1170_v9, 7  ;;  %v7560_v23 = vld [vmem:[#allocation2 + $0x10] sm:$0xff]   ;;  %1429 = vst [vmem:[#allocation2 + $0x2c] sm:$0xf] %v6099_v12  ;;  %v8559_v36 = vld [vmem:[#allocation11 + $0xd8] sm:$0xff]  }
 0x171   : > { %v6956_v8 = vpop.f32.mrf.mxu0  ;;  %7113 = vmatpush3.bf16.msra.mxu0 %v8500_v60  ;;  %6995 = vmatmul.mubr.bf16.gmra.mxu1 %v7559_v52  ;;  %1426 = vst [vmem:[#allocation2 + $0x20] sm:$0xf] %v6096_v13  ;;  %1427 = vst [vmem:[#allocation2 + $0x24] sm:$0xf] %v6097_v22  ;;  %v7562_v37 = vld [vmem:[#allocation2 + $0x18] sm:$0xff]   ;;  %v1465_v49 = vor.u32 %v8491_v46, %v1163_v35  ;;  %v8670_v46 = vor.u32 %v8555_v27, %v1177_v21 }
 0x172   : > { %v6545_v56 = vpack.c.bf16 %v798_v48, %v797_v41  ;;  %v796_v0 = vmax.f32 %v716_v51, 0.0  ;;  %v737_v4 = vadd.f32 %v6956_v8, %v8386_v26  ;;  %v1281_v17 = vsel %vm8416_vm5, 0, %v1182_v59  ;;  %7114 = vmatprep.subr.bf16.mxu0 %v8515_v29  ;;  %7075 = vmatpush3.bf16.msra.mxu1 %v8509_v15 }
 0x173   : > { %v8545_v3 = vld [vmem:[#allocation2 + $0xd8] sm:$0xff]   ;;  %v728_v6 = vpop.f32.mrf.mxu0  ;;  %v6102_v24 = vcombine.low %v1281_v17, %v1281_v17  ;;  %v1175_v39 = vor.u32 %v1173_v63, %v1172_v62  ;;  %v6103_v32 = vcombine.high %v1281_v17, %v1281_v17  ;;  %7076 = vmatprep.subr.bf16.mxu1 %v8529_v45  ;;  %v8561_v41 = vrot.slane %v1173_v63, 1  ;;  %7034 = vmatprep.mubr.bf16.mxu0 %v7560_v23  ;;  %v7597_v62 = vld [vmem:[#allocation11 + $0xd0] sm:$0xff]  }
 0x174   : > { %6668 = vst [vmem:[#allocation2 + $0xe8] sm:$0xff] %v6545_v56   ;;  %v6540_v60 = vpack.c.bf16 %v796_v0, %v795_v42  ;;  %v729_v19 = vadd.f32 %v8386_v26, %v728_v6  ;;  %v1191_v33 = vshrl.u32 %v8545_v3, 16  ;;  %v1194_v42 = vshll.u32 %v8545_v3, 16  ;;  %5267 = vrot.lane.b32.xlu0 %v8342_v10, %s8036_s28  ;;  %7035 = vmatmul.mubr.bf16.gmra.mxu0 %v7562_v37  ;;  %v7566_v58 = vld [vmem:[#allocation2 + $0xd8] sm:$0xff]   ;;  %v8684_v3 = vld [vmem:[%s8271_s16 + $0x50] sm:$0xff] }
 0x175   : > { %v6957_v28 = vpop.f32.mrf.mxu0  ;;  %v8564_v43 = vld [vmem:[#allocation2 + $0xd0] sm:$0xff]   ;;  %1432 = vst [vmem:[#allocation2 + $0x38] sm:$0xf] %v6102_v24  ;;  %7115 = vmatpush3.bf16.msra.mxu0 %v8515_v29  ;;  %v801_v48 = vmax.f32 %v737_v4, 0.0  ;;  %1433 = vst [vmem:[#allocation2 + $0x3c] sm:$0xf] %v6103_v32  ;;  %v8665_v35 = vor.u32 %v8561_v41, %v1170_v9 }
 0x176   : > { %6667 = vst [vmem:[#allocation2 + $0xe0] sm:$0xff] %v6540_v60   ;;  %v740_v15 = vadd.f32 %v6957_v28, %v8386_v26  ;;  %v1193_v44 = vrot.slane %v1191_v33, 7  ;;  %7116 = vmatprep.subr.bf16.mxu0 %v7590_v1  ;;  %v1184_v52 = vshrl.u32 %v8564_v43, 16  ;;  %v799_v53 = vmax.f32 %v729_v19, 0.0  ;;  %v7564_v22 = vld [vmem:[#allocation2 + $0xd0] sm:$0xff]   ;;  %7077 = vmatpush3.bf16.msra.mxu1 %v8529_v45 }
 0x177   : > { %v731_v51 = vpop.f32.mrf.mxu0  ;;  %v1280_v59 = vsel %vm8416_vm5, 0, %v1175_v39  ;;  %7158 = vmatprep.subr.bf16.mxu1 %v8551_v18  ;;  %v1187_v63 = vshll.u32 %v8564_v43, 16  ;;  %6998 = vmatprep.mubr.bf16.mxu1 %v7564_v22  ;;  %v8592_v37 = vrot.slane %v1194_v42, 1 }
 0x178   : > { %v802_v8 = vmax.f32 %v740_v15, 0.0  ;;  %v732_v13 = vadd.f32 %v8386_v26, %v731_v51  ;;  %v1196_v61 = vor.u32 %v1194_v42, %v1193_v44  ;;  %v1186_v10 = vrot.slane %v1184_v52, 7  ;;  %v7567_v4 = vld [vmem:[#allocation2 + $0x20] sm:$0xff]   ;;  %v7603_v15 = vld [vmem:[#allocation11 + $0xc8] sm:$0xff]   ;;  %5271 = vrot.lane.b32.xlu0 %v8347_v11, %s8036_s28 }
 0x179   : > { %v6960_v29 = vpop.f32.mrf.mxu0  ;;  %7117 = vmatpush3.bf16.msra.mxu0 %v7590_v1  ;;  %6999 = vmatmul.mubr.bf16.gmra.mxu1 %v7566_v58  ;;  %v6100_v12 = vcombine.low %v1280_v59, %v1280_v59  ;;  %v6101_v17 = vcombine.high %v1280_v59, %v1280_v59  ;;  %v8594_v44 = vrot.slane %v1187_v63, 1 }
 0x17a   : > { %v6555_v56 = vpack.c.bf16 %v802_v8, %v801_v48  ;;  %v800_v0 = vmax.f32 %v732_v13, 0.0  ;;  %v753_v6 = vadd.f32 %v6960_v29, %v8386_v26  ;;  %v1283_v60 = vsel %vm8416_vm5, 0, %v1196_v61  ;;  %7118 = vmatprep.subr.bf16.mxu0 %v8559_v36  ;;  %7038 = vmatprep.mubr.bf16.mxu0 %v7567_v4 }
 0x17b   : > { %v8581_v45 = vld [vmem:[#allocation2 + $0xe8] sm:$0xff]   ;;  %v744_v7 = vpop.f32.mrf.mxu0  ;;  %v6106_v24 = vcombine.low %v1283_v60, %v1283_v60  ;;  %1430 = vst [vmem:[#allocation2 + $0x30] sm:$0xf] %v6100_v12  ;;  %1431 = vst [vmem:[#allocation2 + $0x34] sm:$0xf] %v6101_v17  ;;  %v6107_v32 = vcombine.high %v1283_v60, %v1283_v60  ;;  %v1189_v42 = vor.u32 %v1187_v63, %v1186_v10 }
 0x17c   : > { %6670 = vst [vmem:[#allocation2 + $0xf8] sm:$0xff] %v6555_v56   ;;  %v6550_v19 = vpack.c.bf16 %v800_v0, %v799_v53  ;;  %v745_v23 = vadd.f32 %v8386_v26, %v744_v7  ;;  %v1205_v1 = vshrl.u32 %v8581_v45, 16  ;;  %v1208_v28 = vshll.u32 %v8581_v45, 16  ;;  %v7569_v53 = vld [vmem:[#allocation2 + $0x28] sm:$0xff]   ;;  %5275 = vrot.lane.b32.xlu0 %v8355_v14, %s8036_s28  ;;  %v7575_v14 = vld [vmem:[#allocation2 + $0x38] sm:$0xff]  }
 0x17d   : > { %v6961_v39 = vpop.f32.mrf.mxu0  ;;  %v8596_v48 = vld [vmem:[#allocation2 + $0xe0] sm:$0xff]   ;;  %1436 = vst [vmem:[#allocation2 + $0x48] sm:$0xf] %v6106_v24  ;;  %7119 = vmatpush3.bf16.msra.mxu0 %v8559_v36  ;;  %v805_v13 = vmax.f32 %v753_v6, 0.0  ;;  %1437 = vst [vmem:[#allocation2 + $0x4c] sm:$0xf] %v6107_v32 }
 0x17e   : > { %6669 = vst [vmem:[#allocation2 + $0xf0] sm:$0xff] %v6550_v19   ;;  %v756_v51 = vadd.f32 %v6961_v39, %v8386_v26  ;;  %v1207_v8 = vrot.slane %v1205_v1, 7  ;;  %v803_v22 = vmax.f32 %v745_v23, 0.0  ;;  %v7571_v11 = vld [vmem:[#allocation2 + $0xe0] sm:$0xff]   ;;  %7120 = vmatprep.subr.bf16.mxu0 %v7597_v62  ;;  %v8602_v58 = vrot.slane %v1208_v28, 1  ;;  %7039 = vmatmul.mubr.bf16.gmra.mxu0 %v7569_v53  ;;  %v7573_v0 = vld [vmem:[#allocation2 + $0xe8] sm:$0xff]  }
 0x17f   : > { %v747_v29 = vpop.f32.mrf.mxu0  ;;  %v1198_v59 = vshrl.u32 %v8596_v48, 16  ;;  %7002 = vmatprep.mubr.bf16.mxu1 %v7571_v11  ;;  %v1201_v10 = vshll.u32 %v8596_v48, 16  ;;  %v7605_v6 = vld [vmem:[#allocation11 + $0xc0] sm:$0xff]   ;;  %v1459_v53 = vor.u32 %v8479_v31, %v1142_v57  ;;  %v8630_v11 = vld [vmem:[#allocation11 + $0x178] sm:$0xff]   ;;  %v8636_v57 = vor.u32 %v8477_v30, %v1149_v55  ;;  %v8650_v55 = vld [vmem:[%s8271_s16 + $0x40] sm:$0xff] }
 0x180   : > { %v806_v61 = vmax.f32 %v756_v51, 0.0  ;;  %v748_v56 = vadd.f32 %v8386_v26, %v747_v29  ;;  %v1282_v26 = vsel %vm8416_vm5, 0, %v1189_v42  ;;  %5279 = vrot.lane.b32.xlu0 %v8362_v16, %s8036_s28  ;;  %v8641_v31 = vor.u32 %v8517_v34, %v1156_v47 }
 0x181   : > { %v1200_v36 = vrot.slane %v1198_v59, 7  ;;  %7121 = vmatpush3.bf16.msra.mxu0 %v7597_v62  ;;  %7003 = vmatmul.mubr.bf16.gmra.mxu1 %v7573_v0  ;;  %v6104_v60 = vcombine.low %v1282_v26, %v1282_v26  ;;  %v6105_v19 = vcombine.high %v1282_v26, %v1282_v26  ;;  %v1210_v62 = vor.u32 %v1208_v28, %v1207_v8 }
 0x182   : > { %v6565_v63 = vpack.c.bf16 %v806_v61, %v805_v13  ;;  %v804_v4 = vmax.f32 %v748_v56, 0.0  ;;  %7122 = vmatprep.subr.bf16.mxu0 %v7603_v15  ;;  %v7574_v17 = vld [vmem:[#allocation2 + $0x30] sm:$0xff]   ;;  %v6964_v13 = vpop.f32.mrf.mxu0  ;;  %v1513_v25 = vsel %vm8430_vm6, %v1459_v53, 0  ;;  %v1515_v48 = vsel %vm8430_vm6, %v8641_v31, 0 }
 0x183   : > { %v8611_v7 = vld [vmem:[#allocation2 + $0xf8] sm:$0xff]   ;;  %v1203_v23 = vor.u32 %v1201_v10, %v1200_v36  ;;  %7042 = vmatprep.mubr.bf16.mxu0 %v7574_v17  ;;  %1434 = vst [vmem:[#allocation2 + $0x40] sm:$0xf] %v6104_v60  ;;  %1435 = vst [vmem:[#allocation2 + $0x44] sm:$0xf] %v6105_v19  ;;  %v1285_v61 = vsel %vm8416_vm5, 0, %v1210_v62  ;;  %v6129_v38 = vcombine.high %v1513_v25, %v1513_v25 }
 0x184   : > { %6672 = vst [vmem:[#allocation2 + $0x108] sm:$0xff] %v6565_v63   ;;  %v6560_v12 = vpack.c.bf16 %v804_v4, %v803_v22  ;;  %v1219_v24 = vshrl.u32 %v8611_v7, 16  ;;  %v1222_v39 = vshll.u32 %v8611_v7, 16  ;;  %v8626_v22 = vrot.slane %v1201_v10, 1  ;;  %v7579_v50 = vld [vmem:[#allocation2 + $0xf8] sm:$0xff]   ;;  %5283 = vrot.lane.b32.xlu0 %v8650_v55, %s8036_s28  ;;  %v760_v0 = vpop.f32.mrf.mxu0 }
 0x185   : > { %v8619_v32 = vld [vmem:[#allocation2 + $0xf0] sm:$0xff]   ;;  %v1284_v51 = vsel %vm8416_vm5, 0, %v1203_v23  ;;  %7123 = vmatpush3.bf16.msra.mxu0 %v7603_v15  ;;  %v6110_v47 = vcombine.low %v1285_v61, %v1285_v61  ;;  %v6111_v34 = vcombine.high %v1285_v61, %v1285_v61  ;;  %v8675_v10 = vor.u32 %v8592_v37, %v1191_v33  ;;  %v7581_v37 = vld [vmem:[#allocation2 + $0x48] sm:$0xff]   ;;  %1661 = vst [vmem:[#allocation2 + $0x134] sm:$0xf] %v6129_v38 }
 0x186   : > { %6671 = vst [vmem:[#allocation2 + $0x100] sm:$0xff] %v6560_v12   ;;  %v1221_v16 = vrot.slane %v1219_v24, 7  ;;  %v7576_v28 = vld [vmem:[#allocation2 + $0xf0] sm:$0xff]   ;;  %v6108_v8 = vcombine.low %v1284_v51, %v1284_v51  ;;  %v6109_v29 = vcombine.high %v1284_v51, %v1284_v51  ;;  %7124 = vmatprep.subr.bf16.mxu0 %v7605_v6  ;;  %v1212_v42 = vshrl.u32 %v8619_v32, 16  ;;  %7043 = vmatmul.mubr.bf16.gmra.mxu0 %v7575_v14  ;;  %v7754_v17 = vld [vmem:[%s10230_s4] ss:$0 sm:$0xff]  ;;  %v6965_v60 = vpop.f32.mrf.mxu0 }
 0x187   : > { %v1215_v15 = vshll.u32 %v8619_v32, 16  ;;  %7006 = vmatprep.mubr.bf16.mxu1 %v7576_v28  ;;  %v8654_v30 = vrot.slane %v1222_v39, 1  ;;  %1440 = vst [vmem:[#allocation2 + $0x58] sm:$0xf] %v6110_v47  ;;  %1441 = vst [vmem:[#allocation2 + $0x5c] sm:$0xf] %v6111_v34  ;;  %v6128_v4 = vcombine.low %v1513_v25, %v1513_v25  ;;  %v8695_v12 = vor.u32 %v8594_v44, %v1184_v52 }
 0x188   : > { %1438 = vst [vmem:[#allocation2 + $0x50] sm:$0xf] %v6108_v8  ;;  %1439 = vst [vmem:[#allocation2 + $0x54] sm:$0xf] %v6109_v29  ;;  %v1224_v56 = vor.u32 %v1222_v39, %v1221_v16  ;;  %v1214_v40 = vrot.slane %v1212_v42, 7  ;;  %5287 = vrot.lane.b32.xlu0 %v8684_v3, %s8036_s28  ;;  %v8700_v14 = vadd.f32 %v7754_v17, %v6964_v13  ;;  %v1514_v16 = vsel %vm8430_vm6, %v8636_v57, 0 }
 0x189   : > { %7125 = vmatpush3.bf16.msra.mxu0 %v7605_v6  ;;  %7007 = vmatmul.mubr.bf16.gmra.mxu1 %v7579_v50  ;;  %v8680_v41 = vrot.slane %v1215_v15, 1  ;;  %v7589_v6 = vld [vmem:[#allocation2 + $0x120] sm:$0xff]   ;;  %1660 = vst [vmem:[#allocation2 + $0x130] sm:$0xf] %v6128_v4  ;;  %v8705_v19 = vor.u32 %v8602_v58, %v1205_v1  ;;  %v8714_v45 = vor.u32 %v8626_v22, %v1198_v59  ;;  %v1516_v22 = vsel %vm8430_vm6, %v1465_v49, 0  ;;  %v8732_v61 = vld [vmem:[%s8271_s16 + $0x60] sm:$0xff] }
 0x18a   : > { %7206 = vmatprep.subr.bf16.mxu0 %v8630_v11  ;;  %v1217_v63 = vor.u32 %v1215_v15, %v1214_v40  ;;  %v1287_v9 = vsel %vm8416_vm5, 0, %v1224_v56  ;;  %v7580_v39 = vld [vmem:[#allocation2 + $0x40] sm:$0xff]   ;;  %v8716_v1 = vadd.f32 %v7754_v17, %v760_v0  ;;  %v8718_v58 = vadd.f32 %v7754_v17, %v6965_v60  ;;  %v763_v15 = vpop.f32.mrf.mxu0 }
 0x18b   : > { %v8658_v36 = vld [vmem:[#allocation2 + $0x108] sm:$0xff]   ;;  %v6114_v21 = vcombine.low %v1287_v9, %v1287_v9  ;;  %v6115_v27 = vcombine.high %v1287_v9, %v1287_v9  ;;  %7046 = vmatprep.mubr.bf16.mxu0 %v7580_v39  ;;  %v6130_v29 = vcombine.low %v1514_v16, %v1514_v16  ;;  %v6131_v50 = vcombine.high %v1514_v16, %v1514_v16  ;;  %v8750_v9 = vpop.permute.xlu0 %5171 }
 0x18c   : > { %v1233_v2 = vshrl.u32 %v8658_v36, 16  ;;  %v1286_v26 = vsel %vm8416_vm5, 0, %v1217_v63  ;;  %v1236_v43 = vshll.u32 %v8658_v36, 16  ;;  %v7585_v53 = vld [vmem:[#allocation2 + $0x108] sm:$0xff]   ;;  %5291 = vrot.lane.b32.xlu0 %v8732_v61, %s8036_s28  ;;  %v6132_v57 = vcombine.low %v1515_v48, %v1515_v48 }
 0x18d   : > { %v8688_v33 = vld [vmem:[#allocation2 + $0x100] sm:$0xff]   ;;  %v6112_v44 = vcombine.low %v1286_v26, %v1286_v26  ;;  %v6113_v62 = vcombine.high %v1286_v26, %v1286_v26  ;;  %1444 = vst [vmem:[#allocation2 + $0x68] sm:$0xf] %v6114_v21  ;;  %1445 = vst [vmem:[#allocation2 + $0x6c] sm:$0xf] %v6115_v27  ;;  %v6133_v31 = vcombine.high %v1515_v48, %v1515_v48  ;;  %v1517_v63 = vsel %vm8430_vm6, %v8665_v35, 0 }
 0x18e   : > { %v1235_v23 = vrot.slane %v1233_v2, 7  ;;  %v7582_v52 = vld [vmem:[#allocation2 + $0x100] sm:$0xff]   ;;  %v1226_v51 = vshrl.u32 %v8688_v33, 16  ;;  %v1229_v8 = vshll.u32 %v8688_v33, 16  ;;  %7047 = vmatmul.mubr.bf16.gmra.mxu0 %v7581_v37  ;;  %v6134_v49 = vcombine.low %v1516_v22, %v1516_v22  ;;  %1662 = vst [vmem:[#allocation2 + $0x138] sm:$0xf] %v6130_v29 }
 0x18f   : > { %7010 = vmatprep.mubr.bf16.mxu1 %v7582_v52  ;;  %v7586_v13 = vld [vmem:[#allocation2 + $0x50] sm:$0xff]   ;;  %1442 = vst [vmem:[#allocation2 + $0x60] sm:$0xf] %v6112_v44  ;;  %1443 = vst [vmem:[#allocation2 + $0x64] sm:$0xf] %v6113_v62  ;;  %v6135_v0 = vcombine.high %v1516_v22, %v1516_v22  ;;  %v8738_v25 = vrot.slane %v1236_v43, 1  ;;  %v8743_v4 = vadd.f32 %v7754_v17, %v763_v15 }
 0x190   : > { %v1238_v59 = vor.u32 %v1236_v43, %v1235_v23  ;;  %v1228_v28 = vrot.slane %v1226_v51, 7  ;;  %7050 = vmatprep.mubr.bf16.mxu0 %v7586_v13  ;;  %1663 = vst [vmem:[#allocation2 + $0x13c] sm:$0xf] %v6131_v50  ;;  %1664 = vst [vmem:[#allocation2 + $0x140] sm:$0xf] %v6132_v57  ;;  %v8748_v38 = vor.u32 %v8680_v41, %v1212_v42  ;;  %v1482_v21 = vrot.slane %v1229_v8, 1 }
 0x191   : > { %7011 = vmatmul.mubr.bf16.gmra.mxu1 %v7585_v53  ;;  %1665 = vst [vmem:[#allocation2 + $0x144] sm:$0xf] %v6133_v31  ;;  %1666 = vst [vmem:[#allocation2 + $0x148] sm:$0xf] %v6134_v49  ;;  %v6136_v37 = vcombine.low %v1517_v63, %v1517_v63  ;;  %v8755_v26 = vld [vmem:[%s8271_s16 + $0x70] sm:$0xff]  ;;  %v7587_v32 = vld [vmem:[#allocation2 + $0x58] sm:$0xff]  }
 0x192   : > { %v1289_v56 = vsel %vm8416_vm5, 0, %v1238_v59  ;;  %7078 = vmatprep.mubr.bf16.mxu1 %v7589_v6  ;;  %v1231_v40 = vor.u32 %v1229_v8, %v1228_v28  ;;  %1667 = vst [vmem:[#allocation2 + $0x14c] sm:$0xf] %v6135_v0  ;;  %v6137_v6 = vcombine.high %v1517_v63, %v1517_v63  ;;  %5295 = vrot.lane.b32.xlu0 %v8755_v26, %s8036_s28  ;;  %v7592_v35 = vld [vmem:[#allocation2 + $0x128] sm:$0xff]   ;;  %v7598_v42 = vld [vmem:[#allocation11 + $0x130] sm:$0xff]   ;;  %v1518_v60 = vsel %vm8430_vm6, %v8670_v46, 0 }
 0x193   : > { %v6118_v47 = vcombine.low %v1289_v56, %v1289_v56  ;;  %v6119_v34 = vcombine.high %v1289_v56, %v1289_v56  ;;  %v1519_v23 = vsel %vm8430_vm6, %v8695_v12, 0  ;;  %1668 = vst [vmem:[#allocation2 + $0x150] sm:$0xf] %v6136_v37  ;;  %v6138_v39 = vcombine.low %v1518_v60, %v1518_v60  ;;  %v7594_v16 = vld [vmem:[#allocation2 + $0x130] sm:$0xff]   ;;  %v7611_v57 = vld [vmem:[#allocation11 + $0x120] sm:$0xff]   ;;  %v7616_v37 = vld [vmem:[#allocation11 + $0x118] sm:$0xff]  }
 0x194   : > { %v1288_v27 = vsel %vm8416_vm5, 0, %v1231_v40  ;;  %1669 = vst [vmem:[#allocation2 + $0x154] sm:$0xf] %v6137_v6  ;;  %v6139_v52 = vcombine.high %v1518_v60, %v1518_v60  ;;  %v6140_v44 = vcombine.low %v1519_v23, %v1519_v23  ;;  %v6141_v62 = vcombine.high %v1519_v23, %v1519_v23  ;;  %v7595_v15 = vld [vmem:[#allocation2 + $0x68] sm:$0xff]   ;;  %v8815_v6 = vld [vmem:[%s8271_s16 + $0xa0] sm:$0xff]  ;;  %v8822_v23 = vld [vmem:[%s8271_s16 + $0xb0] sm:$0xff] }
 0x195   : > { %1448 = vst [vmem:[#allocation2 + $0x78] sm:$0xf] %v6118_v47  ;;  %1449 = vst [vmem:[#allocation2 + $0x7c] sm:$0xf] %v6119_v34  ;;  %v6116_v41 = vcombine.low %v1288_v27, %v1288_v27  ;;  %v6117_v17 = vcombine.high %v1288_v27, %v1288_v27  ;;  %v1520_v53 = vsel %vm8430_vm6, %v8675_v10, 0  ;;  %v809_v13 = vmax.f32 %v8700_v14, 0.0 }
 0x196   : > { %v7593_v43 = vld [vmem:[#allocation2 + $0x60] sm:$0xff]   ;;  %v1521_v46 = vsel %vm8430_vm6, %v8714_v45, 0  ;;  %v807_v12 = vmax.f32 %v8716_v1, 0.0  ;;  %7051 = vmatmul.mubr.bf16.gmra.mxu0 %v7587_v32  ;;  %1670 = vst [vmem:[#allocation2 + $0x158] sm:$0xf] %v6138_v39  ;;  %v6142_v48 = vcombine.low %v1520_v53, %v1520_v53  ;;  %v6143_v59 = vcombine.high %v1520_v53, %v1520_v53  ;;  %v8777_v45 = vpop.permute.xlu0 %5173 }
 0x197   : > { %1446 = vst [vmem:[#allocation2 + $0x70] sm:$0xf] %v6116_v41  ;;  %1447 = vst [vmem:[#allocation2 + $0x74] sm:$0xf] %v6117_v17  ;;  %v6144_v22 = vcombine.low %v1521_v46, %v1521_v46  ;;  %v6145_v28 = vcombine.high %v1521_v46, %v1521_v46  ;;  %7054 = vmatprep.mubr.bf16.mxu0 %v7593_v43  ;;  %v810_v10 = vmax.f32 %v8718_v58, 0.0  ;;  %v808_v1 = vmax.f32 %v8743_v4, 0.0 }
 0x198   : > { %1671 = vst [vmem:[#allocation2 + $0x15c] sm:$0xf] %v6139_v52  ;;  %1672 = vst [vmem:[#allocation2 + $0x160] sm:$0xf] %v6140_v44  ;;  %v1481_v14 = vor.u32 %v8654_v30, %v1219_v24  ;;  %v1483_v8 = vor.u32 %v1482_v21, %v1226_v51  ;;  %v7606_v58 = vld [vmem:[#allocation11 + $0x128] sm:$0xff]   ;;  %v1522_v24 = vsel %vm8430_vm6, %v8705_v19, 0 }
 0x199   : > { %1673 = vst [vmem:[#allocation2 + $0x164] sm:$0xf] %v6141_v62  ;;  %7079 = vmatmul.mubr.bf16.vlgmr.msra.gmra.mxu1 %v7592_v35  ;;  %1674 = vst [vmem:[#allocation2 + $0x168] sm:$0xf] %v6142_v48  ;;  %v6575_v7 = vpack.c.bf16 %v810_v10, %v809_v13  ;;  %v8790_v30 = vld [vmem:[%s8271_s16 + $0x80] sm:$0xff]  ;;  %v6570_v29 = vpack.c.bf16 %v808_v1, %v807_v12  ;;  %v6146_v50 = vcombine.low %v1522_v24, %v1522_v24  ;;  %v7599_v34 = vld [vmem:[#allocation2 + $0x138] sm:$0xff]  }
 0x19a   : > { %7159 = vmatpush3.bf16.msra.mxu1 %v8551_v18  ;;  %7082 = vmatprep.mubr.bf16.mxu1 %v7594_v16  ;;  %1675 = vst [vmem:[#allocation2 + $0x16c] sm:$0xf] %v6143_v59  ;;  %1676 = vst [vmem:[#allocation2 + $0x170] sm:$0xf] %v6144_v22  ;;  %v1485_v18 = vor.u32 %v8738_v25, %v1233_v2  ;;  %v6147_v33 = vcombine.high %v1522_v24, %v1522_v24  ;;  %v1523_v51 = vsel %vm8430_vm6, %v8748_v38, 0  ;;  %v8799_v2 = vpop.permute.xlu0 %5179  ;;  %v8808_v4 = vld [vmem:[%s8271_s16 + $0x90] sm:$0xff] }
 0x19b   : > { %1677 = vst [vmem:[#allocation2 + $0x174] sm:$0xf] %v6145_v28  ;;  %7160 = vmatprep.subr.bf16.mxu1 %v7598_v42  ;;  %5299 = vrot.lane.b32.xlu0 %v8790_v30, %s8036_s28  ;;  %6674 = vst [vmem:[#allocation2 + $0x118] sm:$0xff] %v6575_v7   ;;  %v6148_v19 = vcombine.low %v1523_v51, %v1523_v51  ;;  %v6149_v31 = vcombine.high %v1523_v51, %v1523_v51  ;;  %v1524_v36 = vsel %vm8430_vm6, %v1481_v14, 0  ;;  %v7604_v35 = vld [vmem:[#allocation2 + $0x8] sm:$0xff]   ;;  %v7608_v43 = vld [vmem:[#allocation2 + $0x150] sm:$0xff]  }
 0x19c   : > { %999 = vst [vmem:[#allocation2 + $0x118] sm:$0xf] %v8035_v54  ;;  %1000 = vst [vmem:[#allocation2 + $0x11c] sm:$0xf] %v8035_v54  ;;  %v6150_v49 = vcombine.low %v1524_v36, %v1524_v36  ;;  %v6151_v40 = vcombine.high %v1524_v36, %v1524_v36  ;;  %v1525_v47 = vsel %vm8430_vm6, %v1483_v8, 0  ;;  %v1526_v63 = vsel %vm8430_vm6, %v1485_v18, 0 }
 0x19d   : > { %6673 = vst [vmem:[#allocation2 + $0x110] sm:$0xff] %v6570_v29   ;;  %1678 = vst [vmem:[#allocation2 + $0x178] sm:$0xf] %v6146_v50  ;;  %v6152_v0 = vcombine.low %v1525_v47, %v1525_v47  ;;  %v6153_v25 = vcombine.high %v1525_v47, %v1525_v47  ;;  %v7601_v54 = vld [vmem:[#allocation2 + $0x140] sm:$0xff]   ;;  %v6154_v38 = vcombine.low %v1526_v63, %v1526_v63  ;;  %v7602_v32 = vld [vmem:[#allocation2 + $0x78] sm:$0xff]  }
 0x19e   : > { %7161 = vmatpush3.bf16.msra.mxu1 %v7598_v42  ;;  %v7600_v56 = vld [vmem:[#allocation2 + $0x70] sm:$0xff]   ;;  %1679 = vst [vmem:[#allocation2 + $0x17c] sm:$0xf] %v6147_v33  ;;  %1680 = vst [vmem:[#allocation2 + $0x180] sm:$0xf] %v6148_v19  ;;  %7055 = vmatmul.mubr.bf16.gmra.mxu0 %v7595_v15  ;;  %v6155_v21 = vcombine.high %v1526_v63, %v1526_v63  ;;  %v8812_v27 = vpop.permute.xlu0 %5183  ;;  %v7607_v60 = vld [vmem:[#allocation2 + $0x148] sm:$0xff]  }
 0x19f   : > { %7162 = vmatprep.subr.bf16.mxu1 %v7606_v58  ;;  %1681 = vst [vmem:[#allocation2 + $0x184] sm:$0xf] %v6149_v31  ;;  %5303 = vrot.lane.b32.xlu0 %v8808_v4, %s8036_s28  ;;  %1682 = vst [vmem:[#allocation2 + $0x188] sm:$0xf] %v6150_v49  ;;  %v7623_v42 = vld [vmem:[#allocation11 + $0x110] sm:$0xff]   ;;  %v7628_v13 = vld [vmem:[#allocation11 + $0x108] sm:$0xff]  }
 0x1a0   : > { %1683 = vst [vmem:[#allocation2 + $0x18c] sm:$0xf] %v6151_v40  ;;  %7058 = vmatprep.mubr.bf16.mxu0 %v7600_v56  ;;  %1684 = vst [vmem:[#allocation2 + $0x190] sm:$0xf] %v6152_v0  ;;  %v8829_v46 = vld [vmem:[%s8271_s16 + $0xc0] sm:$0xff]  ;;  %v7634_v59 = vld [vmem:[#allocation11 + $0x100] sm:$0xff]  }
 0x1a1   : > { %7083 = vmatmul.mubr.bf16.gmra.mxu1 %v7599_v34  ;;  %1685 = vst [vmem:[#allocation2 + $0x194] sm:$0xf] %v6153_v25  ;;  %1686 = vst [vmem:[#allocation2 + $0x198] sm:$0xf] %v6154_v38  ;;  %v7609_v48 = vld [vmem:[#allocation2 + $0x10] sm:$0xff]   ;;  %v7610_v28 = vld [vmem:[#allocation2 + $0x18] sm:$0xff]  }
 0x1a2   : > { %7086 = vmatprep.mubr.bf16.mxu1 %v7601_v54  ;;  %7163 = vmatpush3.bf16.msra.mxu1 %v7606_v58  ;;  %1687 = vst [vmem:[#allocation2 + $0x19c] sm:$0xf] %v6155_v21  ;;  %v8819_v41 = vpop.permute.xlu0 %5187  ;;  %v7635_v10 = vld [vmem:[#allocation11 + $0x170] sm:$0xff]   ;;  %v7612_v1 = vld [vmem:[#allocation2 + $0x158] sm:$0xff]   ;;  %v8838_v7 = vld [vmem:[%s8271_s16 + $0xd0] sm:$0xff] }
 0x1a3   : > { %7164 = vmatprep.subr.bf16.mxu1 %v7611_v57  ;;  %5307 = vrot.lane.b32.xlu0 %v8815_v6, %s8036_s28  ;;  %v7613_v18 = vld [vmem:[#allocation2 + $0x160] sm:$0xff]   ;;  %v8847_v51 = vld [vmem:[#allocation11 + $0x1b8] sm:$0xff]   ;;  %v8850_v15 = vld [vmem:[%s8271_s16 + $0xf8] sm:$0xff] }
 0x1a4   : > { %v7622_v17 = vld [vmem:[#allocation2 + $0x110] sm:$0xff]   ;;  %5233 = vrot.lane.b32.xlu1 %v8850_v15, %s8034_s30  ;;  %v7614_v31 = vld [vmem:[#allocation2 + $0x20] sm:$0xff]   ;;  %v7615_v36 = vld [vmem:[#allocation2 + $0x28] sm:$0xff]  }
 0x1a5   : > { %v1240_v39 = vshrl.u32 %v7622_v17, 16  ;;  %v1243_v52 = vshll.u32 %v7622_v17, 16  ;;  %v8855_v19 = vld [vmem:[%s8271_s16 + $0xe0] sm:$0xff]  ;;  %v7617_v56 = vld [vmem:[#allocation2 + $0x168] sm:$0xff]   ;;  %v8863_v47 = vld [vmem:[%s8271_s16 + $0x8] sm:$0xff] }
 0x1a6   : > { %7165 = vmatpush3.bf16.msra.mxu1 %v7611_v57  ;;  %7059 = vmatmul.mubr.bf16.gmra.mxu0 %v7602_v32  ;;  %v8826_v44 = vpop.permute.xlu0 %5191  ;;  %v7639_v57 = vld [vmem:[#allocation11 + $0x168] sm:$0xff]   ;;  %v7618_v49 = vld [vmem:[#allocation2 + $0x170] sm:$0xff]   ;;  %v8868_v34 = vld [vmem:[%s8271_s16 + $0xf0] sm:$0xff] }
 0x1a7   : > { %7166 = vmatprep.subr.bf16.mxu1 %v7616_v37  ;;  %5311 = vrot.lane.b32.xlu0 %v8822_v23, %s8036_s28  ;;  %v1242_v62 = vrot.slane %v1240_v39, 7  ;;  %v1486_v53 = vrot.slane %v1243_v52, 1  ;;  %v7646_v0 = vld [vmem:[#allocation11 + $0x158] sm:$0xff]   ;;  %v7619_v25 = vld [vmem:[#allocation2 + $0x30] sm:$0xff]   ;;  %v8873_v38 = vld [vmem:[%s8271_s16 + $0x18] sm:$0xff] }
 0x1a8   : > { %7126 = vmatprep.mubr.bf16.mxu0 %v7604_v35  ;;  %5269 = vrot.lane.b32.xlu1 %v8863_v47, %s8036_s28  ;;  %v7620_v63 = vld [vmem:[#allocation2 + $0x38] sm:$0xff]   ;;  %v8880_v32 = vld [vmem:[%s8271_s16] sm:$0xff]  ;;  %v8890_v17 = vld [vmem:[%s8271_s16 + $0x10] sm:$0xff] }
 0x1a9   : > { %7087 = vmatmul.mubr.bf16.gmra.mxu1 %v7607_v60  ;;  %v1487_v12 = vor.u32 %v1486_v53, %v1240_v39  ;;  %v1245_v16 = vor.u32 %v1243_v52, %v1242_v62  ;;  %v7624_v54 = vld [vmem:[#allocation2 + $0x178] sm:$0xff]   ;;  %v7648_v35 = vld [vmem:[#allocation11 + $0x150] sm:$0xff]   ;;  %v7626_v60 = vld [vmem:[#allocation2 + $0x40] sm:$0xff]  }
 0x1aa   : > { %7090 = vmatprep.mubr.bf16.mxu1 %v7608_v43  ;;  %7167 = vmatpush3.bf16.msra.mxu1 %v7616_v37  ;;  %v8833_v22 = vpop.permute.xlu0 %5195  ;;  %v7625_v37 = vld [vmem:[#allocation2 + $0x180] sm:$0xff]   ;;  %v7653_v43 = vld [vmem:[#allocation11 + $0x148] sm:$0xff]   ;;  %v8896_v52 = vld [vmem:[#allocation2 + $0x118] sm:$0xff]  }
 0x1ab   : > { %7168 = vmatprep.subr.bf16.mxu1 %v7623_v42  ;;  %5315 = vrot.lane.b32.xlu0 %v8829_v46, %s8036_s28  ;;  %v1290_v14 = vsel %vm8416_vm5, 0, %v1245_v16  ;;  %v1527_v24 = vsel %vm8430_vm6, %v1487_v12, 0  ;;  %v7627_v62 = vld [vmem:[#allocation2 + $0x48] sm:$0xff]   ;;  %v7631_v12 = vld [vmem:[#allocation2 + $0x190] sm:$0xff]  }
 0x1ac   : > { %v6120_v8 = vcombine.low %v1290_v14, %v1290_v14  ;;  %v6121_v58 = vcombine.high %v1290_v14, %v1290_v14  ;;  %v6156_v29 = vcombine.low %v1527_v24, %v1527_v24  ;;  %v6157_v50 = vcombine.high %v1527_v24, %v1527_v24  ;;  %5273 = vrot.lane.b32.xlu1 %v8873_v38, %s8036_s28  ;;  %v7630_v53 = vld [vmem:[#allocation2 + $0x188] sm:$0xff]   ;;  %v8904_v16 = vld [vmem:[%s8271_s16 + $0x20] sm:$0xff]  ;;  %v7773_v14 = vld [vmem:[%s8271_s16 + $0x30] sm:$0xff] }
 0x1ad   : > { %v1250_v24 = vshll.u32 %v8896_v52, 16 }
 0x1ae   : > { %7169 = vmatpush3.bf16.msra.mxu1 %v7623_v42  ;;  %7127 = vmatmul.mubr.bf16.vlgmr.msra.gmra.mxu0 %v7609_v48  ;;  %1450 = vst [vmem:[#allocation2 + $0x80] sm:$0xf] %v6120_v8  ;;  %1451 = vst [vmem:[#allocation2 + $0x84] sm:$0xf] %v6121_v58  ;;  %v8844_v33 = vpop.permute.xlu0 %5199  ;;  %v8885_v42 = vld [vmem:[%s8271_s16 + $0x28] sm:$0xff]  ;;  %v7655_v48 = vld [vmem:[#allocation11 + $0x140] sm:$0xff]   ;;  %v8920_v8 = vpop.permute.xlu1 %5175 }
 0x1af   : > { %7170 = vmatprep.subr.bf16.mxu1 %v7628_v13  ;;  %5319 = vrot.lane.b32.xlu0 %v8838_v7, %s8036_s28  ;;  %1688 = vst [vmem:[#allocation2 + $0x1a0] sm:$0xf] %v6156_v29  ;;  %1689 = vst [vmem:[#allocation2 + $0x1a4] sm:$0xf] %v6157_v50  ;;  %v8926_v29 = vld [vmem:[%s8271_s16 + $0x58] sm:$0xff]  ;;  %v7633_v50 = vld [vmem:[#allocation2 + $0x58] sm:$0xff]  }
 0x1b0   : > { %7130 = vmatprep.mubr.bf16.mxu0 %v7610_v28  ;;  %7207 = vmatpush3.bf16.msra.mxu0 %v8630_v11  ;;  %v7641_v11 = vld [vmem:[#allocation11 + $0x160] sm:$0xff]   ;;  %v8910_v28 = vld [vmem:[%s8271_s16 + $0x48] sm:$0xff] }
 0x1b1   : > { %7091 = vmatmul.mubr.bf16.gmra.mxu1 %v7612_v1  ;;  %7208 = vmatprep.subr.bf16.mxu0 %v7635_v10  ;;  %v8918_v1 = vld [vmem:[#allocation11 + $0x1f8] sm:$0xff]  }
 0x1b2   : > { %7094 = vmatprep.mubr.bf16.mxu1 %v7613_v18  ;;  %7171 = vmatpush3.bf16.msra.mxu1 %v7628_v13  ;;  %v8860_v40 = vpop.permute.xlu0 %5203  ;;  %v8899_v13 = vld [vmem:[%s8271_s16 + $0x38] sm:$0xff]  ;;  %v7632_v18 = vld [vmem:[#allocation2 + $0x50] sm:$0xff]  }
 0x1b3   : > { %7172 = vmatprep.subr.bf16.mxu1 %v7634_v59  ;;  %5323 = vrot.lane.b32.xlu0 %v8855_v19, %s8036_s28 }
 0x1b4   : > { %7209 = vmatpush3.bf16.msra.mxu0 %v7635_v10  ;;  %5277 = vrot.lane.b32.xlu1 %v8885_v42, %s8036_s28 }
 0x1b5   : > { %7210 = vmatprep.subr.bf16.mxu0 %v7639_v57 }
 0x1b6   : > { %7173 = vmatpush3.bf16.msra.mxu1 %v7634_v59  ;;  %7131 = vmatmul.mubr.bf16.gmra.mxu0 %v7614_v31  ;;  %v8877_v21 = vpop.permute.xlu0 %5207  ;;  %v1247_v59 = vshrl.u32 %v8896_v52, 16  ;;  %v7637_v31 = vld [vmem:[#allocation2 + $0x98] sm:$0xff]  }
 0x1b7   : > { %7254 = vmatprep.subr.bf16.mxu1 %v8847_v51  ;;  %7134 = vmatprep.mubr.bf16.mxu0 %v7615_v36 }
 0x1b8   : > { %7211 = vmatpush3.bf16.msra.mxu0 %v7639_v57  ;;  %5327 = vrot.lane.b32.xlu0 %v8868_v34, %s8036_s28  ;;  %v1249_v58 = vrot.slane %v1247_v59, 7  ;;  %v7636_v57 = vld [vmem:[#allocation2 + $0x198] sm:$0xff]  }
 0x1b9   : > { %7095 = vmatmul.mubr.bf16.gmra.mxu1 %v7617_v56  ;;  %7212 = vmatprep.subr.bf16.mxu0 %v7641_v11  ;;  %v8938_v56 = vld [vmem:[%s8271_s16 + $0x68] sm:$0xff] }
 0x1ba   : > { %7098 = vmatprep.mubr.bf16.mxu1 %v7618_v49  ;;  %v8894_v39 = vpop.permute.xlu0 %5211  ;;  %5281 = vrot.lane.b32.xlu1 %v8899_v13, %s8036_s28  ;;  %v8942_v49 = vpop.permute.xlu1 %5177 }
 0x1bc   : > { %7213 = vmatpush3.bf16.msra.mxu0 %v7641_v11  ;;  %5363 = vrot.lane.b32.xlu0 %v8880_v32, %s8037_s8  ;;  %v1252_v11 = vor.u32 %v1250_v24, %v1249_v58 }
 0x1bd   : > { %7214 = vmatprep.subr.bf16.mxu0 %v7646_v0 }
 0x1be   : > { %7135 = vmatmul.mubr.bf16.gmra.mxu0 %v7619_v25  ;;  %5285 = vrot.lane.b32.xlu1 %v8910_v28, %s8036_s28  ;;  %v8914_v10 = vpop.permute.xlu0 %5215  ;;  %v1291_v25 = vsel %vm8416_vm5, 0, %v1252_v11  ;;  %v7652_v11 = vld [vmem:[#allocation2 + $0x80] sm:$0xff]  }
 0x1bf   : > { %7138 = vmatprep.mubr.bf16.mxu0 %v7620_v63  ;;  %v7640_v63 = vld [vmem:[#allocation2 + $0x68] sm:$0xff]  }
 0x1c0   : > { %7215 = vmatpush3.bf16.msra.mxu0 %v7646_v0  ;;  %5367 = vrot.lane.b32.xlu0 %v8890_v17, %s8037_s8  ;;  %v7643_v0 = vld [vmem:[#allocation2 + $0xa0] sm:$0xff]  }
 0x1c1   : > { %7099 = vmatmul.mubr.bf16.gmra.mxu1 %v7624_v54  ;;  %7216 = vmatprep.subr.bf16.mxu0 %v7648_v35  ;;  %v8949_v54 = vld [vmem:[%s8271_s16 + $0x78] sm:$0xff] }
 0x1c2   : > { %7102 = vmatprep.mubr.bf16.mxu1 %v7625_v37  ;;  %5289 = vrot.lane.b32.xlu1 %v8926_v29, %s8036_s28  ;;  %v8933_v36 = vpop.permute.xlu0 %5219 }
 0x1c4   : > { %7217 = vmatpush3.bf16.msra.mxu0 %v7648_v35  ;;  %5371 = vrot.lane.b32.xlu0 %v8904_v16, %s8037_s8  ;;  %v6122_v35 = vcombine.low %v1291_v25, %v1291_v25 }
 0x1c5   : > { %7218 = vmatprep.subr.bf16.mxu0 %v7653_v43 }
 0x1c6   : > { %7139 = vmatmul.mubr.bf16.gmra.mxu0 %v7626_v60  ;;  %5293 = vrot.lane.b32.xlu1 %v8938_v56, %s8036_s28  ;;  %v8953_v37 = vpop.permute.xlu0 %5223  ;;  %v6123_v60 = vcombine.high %v1291_v25, %v1291_v25  ;;  %1452 = vst [vmem:[#allocation2 + $0x88] sm:$0xf] %v6122_v35  ;;  %v7657_v25 = vld [vmem:[#allocation2 + $0xc0] sm:$0xff]   ;;  %v8993_v35 = vld [vmem:[%s8271_s16 + $0xb8] sm:$0xff] }
 0x1c7   : > { %7142 = vmatprep.mubr.bf16.mxu0 %v7627_v62  ;;  %v8957_v62 = vpop.permute.xlu1 %5181 }
 0x1c8   : > { %7219 = vmatpush3.bf16.msra.mxu0 %v7653_v43  ;;  %5375 = vrot.lane.b32.xlu0 %v7773_v14, %s8037_s8  ;;  %v7649_v43 = vld [vmem:[#allocation11 + $0x1b0] sm:$0xff]   ;;  %1453 = vst [vmem:[#allocation2 + $0x8c] sm:$0xf] %v6123_v60 }
 0x1c9   : > { %7103 = vmatmul.mubr.bf16.gmra.mxu1 %v7630_v53  ;;  %7220 = vmatprep.subr.bf16.mxu0 %v7655_v48  ;;  %v8961_v53 = vld [vmem:[%s8271_s16 + $0x88] sm:$0xff]  ;;  %v7650_v14 = vld [vmem:[#allocation2 + $0xb0] sm:$0xff]  }
 0x1ca   : > { %7106 = vmatprep.mubr.bf16.mxu1 %v7631_v12  ;;  %5297 = vrot.lane.b32.xlu1 %v8949_v54, %s8036_s28  ;;  %v7645_v12 = vld [vmem:[#allocation2 + $0x70] sm:$0xff]  }
 0x1cb   : > { %v8969_v58 = vpop.permute.xlu1 %5185 }
 0x1cc   : > { %7221 = vmatpush3.bf16.msra.mxu0 %v7655_v48  ;;  %5379 = vrot.lane.b32.xlu0 %v8650_v55, %s8037_s8  ;;  %v7638_v55 = vld [vmem:[#allocation2 + $0x60] sm:$0xff]   ;;  %v7647_v48 = vld [vmem:[#allocation2 + $0x78] sm:$0xff]  }
 0x1cd   : > { %7302 = vmatprep.subr.bf16.mxu0 %v8918_v1 }
 0x1ce   : > { %7143 = vmatmul.mubr.bf16.gmra.mxu0 %v7632_v18  ;;  %5301 = vrot.lane.b32.xlu1 %v8961_v53, %s8036_s28  ;;  %v8972_v18 = vld [vmem:[%s8271_s16 + $0x98] sm:$0xff] }
 0x1cf   : > { %7146 = vmatprep.mubr.bf16.mxu0 %v7633_v50  ;;  %v7651_v50 = vld [vmem:[#allocation2 + $0xb8] sm:$0xff]  }
 0x1d0   : > { %5383 = vrot.lane.b32.xlu0 %v8684_v3, %s8037_s8  ;;  %v7644_v3 = vld [vmem:[#allocation2 + $0xa8] sm:$0xff]  }
 0x1d1   : > { %7107 = vmatmul.mubr.bf16.gmra.mxu1 %v7636_v57  ;;  %v7666_v57 = vld [vmem:[#allocation11 + $0x198] sm:$0xff]  }
 0x1d2   : > { %7174 = vmatprep.mubr.bf16.mxu1 %v7637_v31  ;;  %5305 = vrot.lane.b32.xlu1 %v8972_v18, %s8036_s28  ;;  %v8981_v31 = vld [vmem:[%s8271_s16 + $0xa8] sm:$0xff] }
 0x1d4   : > { %5387 = vrot.lane.b32.xlu0 %v8732_v61, %s8037_s8  ;;  %v8967_v61 = vpop.permute.xlu0 %5227 }
 0x1d6   : > { %7147 = vmatmul.mubr.bf16.gmra.mxu0 %v7638_v55  ;;  %5309 = vrot.lane.b32.xlu1 %v8981_v31, %s8036_s28  ;;  %v8985_v55 = vpop.permute.xlu1 %5189 }
 0x1d7   : > { %7150 = vmatprep.mubr.bf16.mxu0 %v7640_v63  ;;  %v7671_v63 = vld [vmem:[#allocation11 + $0x190] sm:$0xff]  }
 0x1d8   : > { %5391 = vrot.lane.b32.xlu0 %v8755_v26, %s8037_s8 }
 0x1d9   : > { %7175 = vmatmul.mubr.bf16.vlgmr.msra.gmra.mxu1 %v7643_v0  ;;  %v7654_v0 = vld [vmem:[#allocation2 + $0x128] sm:$0xff]  }
 0x1da   : > { %7255 = vmatpush3.bf16.msra.mxu1 %v8847_v51  ;;  %7178 = vmatprep.mubr.bf16.mxu1 %v7644_v3  ;;  %v7661_v51 = vld [vmem:[#allocation11 + $0x1a0] sm:$0xff]   ;;  %v9005_v3 = vld [vmem:[%s8271_s16 + $0xc8] sm:$0xff] }
 0x1db   : > { %7256 = vmatprep.subr.bf16.mxu1 %v7649_v43  ;;  %5313 = vrot.lane.b32.xlu1 %v8993_v35, %s8036_s28 }
 0x1dc   : > { %5395 = vrot.lane.b32.xlu0 %v8790_v30, %s8037_s8  ;;  %v5459_v30 = vsel %vm543_vm0, %v8880_v32, %v8750_v9  ;;  %v7676_v32 = vld [vmem:[#allocation11 + $0x188] sm:$0xff]  }
 0x1de   : > { %7257 = vmatpush3.bf16.msra.mxu1 %v7649_v43  ;;  %7151 = vmatmul.mubr.bf16.gmra.mxu0 %v7645_v12  ;;  %v7658_v43 = vld [vmem:[#allocation2 + $0xc8] sm:$0xff]   ;;  %v7659_v12 = vld [vmem:[#allocation2 + $0x130] sm:$0xff]  }
 0x1df   : > { %7258 = vmatprep.subr.bf16.mxu1 %v7656_v5  ;;  %7154 = vmatprep.mubr.bf16.mxu0 %v7647_v48  ;;  %v8978_v26 = vpop.permute.xlu0 %5231  ;;  %v7660_v48 = vld [vmem:[#allocation2 + $0x138] sm:$0xff]  }
 0x1e0   : > { %5399 = vrot.lane.b32.xlu0 %v8808_v4, %s8037_s8  ;;  %v9002_v4 = vpop.permute.xlu1 %5193  ;;  %5317 = vrot.lane.b32.xlu1 %v9005_v3, %s8036_s28 }
 0x1e1   : > { %7179 = vmatmul.mubr.bf16.gmra.mxu1 %v7650_v14  ;;  %v7662_v14 = vld [vmem:[#allocation2 + $0xd0] sm:$0xff]  }
 0x1e2   : > { %7182 = vmatprep.mubr.bf16.mxu1 %v7651_v50  ;;  %7259 = vmatpush3.bf16.msra.mxu1 %v7656_v5  ;;  %v5461_v5 = vsel %vm543_vm0, %v8890_v17, %v8920_v8  ;;  %v7663_v50 = vld [vmem:[#allocation2 + $0xd8] sm:$0xff]   ;;  %v5463_v17 = vsel %vm543_vm0, %v8904_v16, %v8799_v2  ;;  %v7683_v8 = vld [vmem:[#allocation11 + $0x1f0] sm:$0xff]   ;;  %v7664_v16 = vld [vmem:[#allocation2 + $0x140] sm:$0xff]  }
 0x1e3   : > { %7260 = vmatprep.subr.bf16.mxu1 %v7661_v51  ;;  %v9033_v2 = vld [vmem:[#allocation11 + $0x238] sm:$0xff]  }
 0x1e4   : > { %5403 = vrot.lane.b32.xlu0 %v8815_v6, %s8037_s8 }
 0x1e6   : > { %7261 = vmatpush3.bf16.msra.mxu1 %v7661_v51  ;;  %v5268_v60 = vpop.permute.xlu0 %5267  ;;  %7155 = vmatmul.mubr.bf16.gmra.mxu0 %v7652_v11  ;;  %v7682_v11 = vld [vmem:[#allocation11 + $0x180] sm:$0xff]  }
 0x1e7   : > { %7262 = vmatprep.subr.bf16.mxu1 %v7666_v57  ;;  %v9000_v9 = vsel %vm5491_vm7, %v5459_v30, %v5268_v60  ;;  %7222 = vmatprep.mubr.bf16.mxu0 %v7654_v0  ;;  %v9018_v30 = vld [vmem:[%s8271_s16 + $0xd8] sm:$0xff]  ;;  %v9025_v0 = vpop.permute.xlu1 %5197 }
 0x1e8   : > { %10279 = vst [vmem:[#allocation23_spill] sm:$0xff] %v9000_v9  ;;  %5407 = vrot.lane.b32.xlu0 %v8822_v23, %s8037_s8  ;;  %5321 = vrot.lane.b32.xlu1 %v9018_v30, %s8036_s28  ;;  %v7687_v60 = vld [vmem:[#allocation11 + $0x1e8] sm:$0xff]  }
 0x1e9   : > { %7183 = vmatmul.mubr.bf16.gmra.mxu1 %v7657_v25 }
 0x1ea   : > { %7186 = vmatprep.mubr.bf16.mxu1 %v7658_v43  ;;  %7263 = vmatpush3.bf16.msra.mxu1 %v7666_v57  ;;  %v5272_v51 = vpop.permute.xlu0 %5271  ;;  %v9036_v43 = vld [vmem:[%s8271_s16 + $0xe8] sm:$0xff] }
 0x1eb   : > { %7264 = vmatprep.subr.bf16.mxu1 %v7671_v63  ;;  %v9015_v57 = vsel %vm5491_vm7, %v5461_v5, %v5272_v51  ;;  %v7665_v5 = vld [vmem:[#allocation2 + $0x148] sm:$0xff]  }
 0x1ec   : > { %10280 = vst [vmem:[#allocation24_spill] sm:$0xff] %v9015_v57  ;;  %5411 = vrot.lane.b32.xlu0 %v8829_v46, %s8037_s8  ;;  %5325 = vrot.lane.b32.xlu1 %v9036_v43, %s8036_s28  ;;  %v7708_v57 = vld [vmem:[#allocation2 + $0xb0] sm:$0xff]  }
 0x1ee   : > { %7265 = vmatpush3.bf16.msra.mxu1 %v7671_v63  ;;  %7223 = vmatmul.mubr.bf16.vlgmr.msra.gmra.mxu0 %v7659_v12  ;;  %v5276_v25 = vpop.permute.xlu0 %5275  ;;  %v7667_v12 = vld [vmem:[#allocation2 + $0xe0] sm:$0xff]  }
 0x1ef   : > { %7266 = vmatprep.subr.bf16.mxu1 %v7676_v32  ;;  %7226 = vmatprep.mubr.bf16.mxu0 %v7660_v48  ;;  %v9030_v63 = vsel %vm5491_vm7, %v5463_v17, %v5276_v25  ;;  %v7668_v48 = vld [vmem:[#allocation2 + $0xe8] sm:$0xff]   ;;  %v7785_v17 = vld [vmem:[%s8271_s16 + $0x50] sm:$0xff]  ;;  %v7694_v25 = vld [vmem:[#allocation11 + $0x1d8] sm:$0xff]  }
 0x1f0   : > { %10281 = vst [vmem:[#allocation25_spill] sm:$0xff] %v9030_v63  ;;  %7303 = vmatpush3.bf16.msra.mxu0 %v8918_v1  ;;  %5415 = vrot.lane.b32.xlu0 %v8838_v7, %s8037_s8  ;;  %v9044_v1 = vpop.permute.xlu1 %5201 }
 0x1f1   : > { %7187 = vmatmul.mubr.bf16.gmra.mxu1 %v7662_v14  ;;  %7304 = vmatprep.subr.bf16.mxu0 %v7683_v8  ;;  %v7784_v14 = vld [vmem:[%s8271_s16 + $0x40] sm:$0xff] }
 0x1f2   : > { %7190 = vmatprep.mubr.bf16.mxu1 %v7663_v50  ;;  %7267 = vmatpush3.bf16.msra.mxu1 %v7676_v32  ;;  %v9042_v32 = vpop.permute.xlu0 %5279  ;;  %v5467_v51 = vsel %vm543_vm0, %v7784_v14, %v8819_v41  ;;  %v7689_v50 = vld [vmem:[#allocation11 + $0x1e0] sm:$0xff]   ;;  %v7669_v41 = vld [vmem:[#allocation2 + $0x150] sm:$0xff]  }
 0x1f3   : > { %7268 = vmatprep.subr.bf16.mxu1 %v7682_v11  ;;  %5329 = vrot.lane.b32.xlu1 %v8850_v15, %s8036_s28  ;;  %v7672_v15 = vld [vmem:[#allocation2 + $0xf0] sm:$0xff]  }
 0x1f4   : > { %7305 = vmatpush3.bf16.msra.mxu0 %v7683_v8  ;;  %v5469_v8 = vsel %vm543_vm0, %v7785_v17, %v8826_v44  ;;  %5419 = vrot.lane.b32.xlu0 %v8855_v19, %s8037_s8  ;;  %v7696_v44 = vld [vmem:[#allocation11 + $0x1d0] sm:$0xff]  }
 0x1f5   : > { %7306 = vmatprep.subr.bf16.mxu0 %v7687_v60  ;;  %v7786_v14 = vld [vmem:[%s8271_s16 + $0x60] sm:$0xff] }
 0x1f6   : > { %7269 = vmatpush3.bf16.msra.mxu1 %v7682_v11  ;;  %7227 = vmatmul.mubr.bf16.gmra.mxu0 %v7664_v16  ;;  %v5284_v7 = vpop.permute.xlu0 %5283  ;;  %v9060_v16 = vpop.permute.xlu1 %5205 }
 0x1f7   : > { %7398 = vmatprep.subr.bf16.mxu1 %v9033_v2  ;;  %7230 = vmatprep.mubr.bf16.mxu0 %v7665_v5  ;;  %v9053_v11 = vsel %vm5491_vm7, %v5467_v51, %v5284_v7  ;;  %v7670_v5 = vld [vmem:[#allocation2 + $0x158] sm:$0xff]   ;;  %v5471_v51 = vsel %vm543_vm0, %v7786_v14, %v8833_v22  ;;  %v7675_v22 = vld [vmem:[#allocation2 + $0x168] sm:$0xff]  }
 0x1f8   : > { %10282 = vst [vmem:[#allocation26_spill] sm:$0xff] %v9053_v11  ;;  %7307 = vmatpush3.bf16.msra.mxu0 %v7687_v60  ;;  %5365 = vrot.lane.b32.xlu1 %v8863_v47, %s8037_s8 }
 0x1f9   : > { %7191 = vmatmul.mubr.bf16.gmra.mxu1 %v7667_v12  ;;  %7308 = vmatprep.subr.bf16.mxu0 %v7689_v50 }
 0x1fa   : > { %7194 = vmatprep.mubr.bf16.mxu1 %v7668_v48  ;;  %v5288_v12 = vpop.permute.xlu0 %5287  ;;  %v7673_v48 = vld [vmem:[#allocation2 + $0xf8] sm:$0xff]   ;;  %5423 = vrot.lane.b32.xlu0 %v8868_v34, %s8037_s8  ;;  %v9074_v7 = vpop.permute.xlu1 %5209  ;;  %v7674_v34 = vld [vmem:[#allocation2 + $0x160] sm:$0xff]  }
 0x1fb   : > { %v9065_v60 = vsel %vm5491_vm7, %v5469_v8, %v5288_v12  ;;  %v7701_v8 = vld [vmem:[#allocation11 + $0x1c8] sm:$0xff]  }
 0x1fc   : > { %10283 = vst [vmem:[#allocation27_spill] sm:$0xff] %v9065_v60  ;;  %7309 = vmatpush3.bf16.msra.mxu0 %v7689_v50  ;;  %5369 = vrot.lane.b32.xlu1 %v8873_v38, %s8037_s8  ;;  %v7679_v12 = vld [vmem:[#allocation2 + $0x108] sm:$0xff]   ;;  %v5460_v60 = vsel %vm543_vm0, %v8863_v47, %v8777_v45  ;;  %v5462_v47 = vsel %vm543_vm0, %v8873_v38, %v8942_v49  ;;  %v7711_v38 = vld [vmem:[#allocation2 + $0x50] sm:$0xff]   ;;  %v9216_v49 = vld [vmem:[#allocation11 + $0x200] sm:$0xff]  }
 0x1fd   : > { %7310 = vmatprep.subr.bf16.mxu0 %v7694_v25 }
 0x1fe   : > { %7231 = vmatmul.mubr.bf16.gmra.mxu0 %v7669_v41  ;;  %v5292_v17 = vpop.permute.xlu0 %5291  ;;  %v1488_v41 = vrot.slane %v1250_v24, 1  ;;  %v7787_v24 = vld [vmem:[%s8271_s16 + $0x80] sm:$0xff] }
 0x1ff   : > { %7234 = vmatprep.mubr.bf16.mxu0 %v7670_v5  ;;  %v9077_v50 = vsel %vm5491_vm7, %v5471_v51, %v5292_v17  ;;  %v7678_v5 = vld [vmem:[#allocation2 + $0x100] sm:$0xff]  }
 0x200   : > { %7311 = vmatpush3.bf16.msra.mxu0 %v7694_v25  ;;  %10284 = vst [vmem:[#allocation28_spill] sm:$0xff] %v9077_v50  ;;  %5373 = vrot.lane.b32.xlu1 %v8885_v42, %s8037_s8  ;;  %v7703_v25 = vld [vmem:[#allocation11 + $0x1c0] sm:$0xff]   ;;  %v1489_v14 = vor.u32 %v1488_v41, %v1247_v59  ;;  %v7681_v41 = vld [vmem:[#allocation2 + $0x178] sm:$0xff]  }
 0x201   : > { %7195 = vmatmul.mubr.bf16.gmra.mxu1 %v7672_v15  ;;  %7312 = vmatprep.subr.bf16.mxu0 %v7696_v44  ;;  %v7706_v50 = vld [vmem:[#allocation2 + $0x40] sm:$0xff]  }
 0x202   : > { %7198 = vmatprep.mubr.bf16.mxu1 %v7673_v48  ;;  %v9085_v48 = vpop.permute.xlu1 %5213  ;;  %v1528_v17 = vsel %vm8430_vm6, %v1489_v14, 0  ;;  %v7686_v14 = vld [vmem:[#allocation2 + $0x180] sm:$0xff]  }
 0x204   : > { %7313 = vmatpush3.bf16.msra.mxu0 %v7696_v44  ;;  %v9083_v15 = vpop.permute.xlu0 %5295  ;;  %5377 = vrot.lane.b32.xlu1 %v8899_v13, %s8037_s8  ;;  %v5475_v44 = vsel %vm543_vm0, %v7787_v24, %v8860_v40  ;;  %v6158_v13 = vcombine.low %v1528_v17, %v1528_v17  ;;  %v7685_v40 = vld [vmem:[#allocation2 + $0x10] sm:$0xff]   ;;  %v7688_v24 = vld [vmem:[#allocation2 + $0x188] sm:$0xff]  }
 0x205   : > { %7314 = vmatprep.subr.bf16.mxu0 %v7701_v8 }
 0x206   : > { %7235 = vmatmul.mubr.bf16.gmra.mxu0 %v7674_v34  ;;  %v7680_v34 = vld [vmem:[#allocation2 + $0x170] sm:$0xff]   ;;  %v9098_v52 = vpop.permute.xlu1 %5217  ;;  %1690 = vst [vmem:[#allocation2 + $0x1a8] sm:$0xf] %v6158_v13 }
 0x207   : > { %7238 = vmatprep.mubr.bf16.mxu0 %v7675_v22  ;;  %v7684_v22 = vld [vmem:[#allocation2 + $0x110] sm:$0xff]  }
 0x208   : > { %7315 = vmatpush3.bf16.msra.mxu0 %v7701_v8  ;;  %5381 = vrot.lane.b32.xlu1 %v8910_v28, %s8037_s8  ;;  %v6159_v8 = vcombine.high %v1528_v17, %v1528_v17  ;;  %v9118_v17 = vld [vmem:[#allocation11 + $0x230] sm:$0xff]  }
 0x209   : > { %7199 = vmatmul.mubr.bf16.gmra.mxu1 %v7678_v5  ;;  %7316 = vmatprep.subr.bf16.mxu0 %v7703_v25  ;;  %v5479_v5 = vsel %vm543_vm0, %v8815_v6, %v8894_v39  ;;  %v7692_v6 = vld [vmem:[#allocation2 + $0x20] sm:$0xff]  }
 0x20a   : > { %7202 = vmatprep.mubr.bf16.mxu1 %v7679_v12  ;;  %1691 = vst [vmem:[#allocation2 + $0x1ac] sm:$0xf] %v6159_v8  ;;  %v9111_v12 = vpop.permute.xlu1 %5221 }
 0x20c   : > { %7317 = vmatpush3.bf16.msra.mxu0 %v7703_v25  ;;  %5385 = vrot.lane.b32.xlu1 %v8926_v29, %s8037_s8 }
 0x20d   : > { %v5300_v51 = vpop.permute.xlu0 %5299  ;;  %7350 = vmatprep.subr.bf16.mxu0 %v9033_v2 }
 0x20e   : > { %v9101_v59 = vsel %vm5491_vm7, %v5475_v44, %v5300_v51  ;;  %7239 = vmatmul.mubr.bf16.gmra.mxu0 %v7680_v34  ;;  %v7691_v44 = vld [vmem:[#allocation2 + $0x18] sm:$0xff]   ;;  %v5481_v34 = vsel %vm543_vm0, %v8822_v23, %v8914_v10  ;;  %v9124_v8 = vpop.permute.xlu1 %5225  ;;  %v5483_v23 = vsel %vm543_vm0, %v8829_v46, %v8933_v36  ;;  %v7699_v46 = vld [vmem:[#allocation2 + $0x30] sm:$0xff]  }
 0x20f   : > { %10285 = vst [vmem:[#allocation29_spill] sm:$0xff] %v9101_v59  ;;  %7242 = vmatprep.mubr.bf16.mxu0 %v7681_v41  ;;  %v9175_v59 = vld [vmem:[#allocation11 + $0x210] sm:$0xff]  }
 0x210   : > { %5389 = vrot.lane.b32.xlu1 %v8938_v56, %s8037_s8 }
 0x211   : > { %7203 = vmatmul.mubr.bf16.gmra.mxu1 %v7684_v22  ;;  %v9104_v20 = vpop.permute.xlu0 %5303 }
 0x212   : > { %7270 = vmatprep.mubr.bf16.mxu1 %v7685_v40  ;;  %v9130_v40 = vld [vmem:[#allocation11 + $0x228] sm:$0xff]   ;;  %v9150_v36 = vpop.permute.xlu1 %5229 }
 0x214   : > { %5393 = vrot.lane.b32.xlu1 %v8949_v54, %s8037_s8  ;;  %v9146_v54 = vld [vmem:[#allocation11 + $0x220] sm:$0xff]  }
 0x215   : > { %v5308_v25 = vpop.permute.xlu0 %5307 }
 0x216   : > { %v9116_v51 = vsel %vm5491_vm7, %v5479_v5, %v5308_v25  ;;  %7243 = vmatmul.mubr.bf16.gmra.mxu0 %v7686_v14  ;;  %v7693_v25 = vld [vmem:[#allocation2 + $0x190] sm:$0xff]  }
 0x217   : > { %10286 = vst [vmem:[#allocation30_spill] sm:$0xff] %v9116_v51  ;;  %7246 = vmatprep.mubr.bf16.mxu0 %v7688_v24  ;;  %v7695_v24 = vld [vmem:[#allocation2 + $0x198] sm:$0xff]  }
 0x218   : > { %5397 = vrot.lane.b32.xlu1 %v8961_v53, %s8037_s8  ;;  %v7705_v51 = vld [vmem:[#allocation2 + $0x38] sm:$0xff]  }
 0x219   : > { %v6984_v39 = vpop.f32.mrf.mxu1  ;;  %7271 = vmatmul.mubr.bf16.vlgmr.msra.gmra.mxu1 %v7691_v44  ;;  %v5312_v13 = vpop.permute.xlu0 %5311 }
 0x21a   : > { %7406 = vmatpush3.bf16.msra.mxu1 %v9033_v2  ;;  %7274 = vmatprep.mubr.bf16.mxu1 %v7692_v6  ;;  %v9127_v41 = vsel %vm5491_vm7, %v5481_v34, %v5312_v13  ;;  %v7698_v34 = vld [vmem:[#allocation2 + $0x28] sm:$0xff]  }
 0x21b   : > { %10287 = vst [vmem:[#allocation31_spill] sm:$0xff] %v9127_v41  ;;  %v1967_v22 = vpop.f32.mrf.mxu1  ;;  %7399 = vmatprep.subr.bf16.mxu1 %v9118_v17 }
 0x21c   : > { %5401 = vrot.lane.b32.xlu1 %v8972_v18, %s8037_s8 }
 0x21d   : > { %v9137_v10 = vpop.f32.mrf.mxu1  ;;  %v5316_v5 = vpop.permute.xlu0 %5315 }
 0x21e   : > { %7407 = vmatpush3.bf16.msra.mxu1 %v9118_v17  ;;  %v9141_v14 = vsel %vm5491_vm7, %v5483_v23, %v5316_v5  ;;  %7247 = vmatmul.mubr.bf16.gmra.mxu0 %v7693_v25  ;;  %v9160_v5 = vld [vmem:[#allocation11 + $0x218] sm:$0xff]  }
 0x21f   : > { %10288 = vst [vmem:[#allocation32_spill] sm:$0xff] %v9141_v14  ;;  %v9143_v44 = vpop.f32.mrf.mxu1  ;;  %7400 = vmatprep.subr.bf16.mxu1 %v9130_v40  ;;  %7250 = vmatprep.mubr.bf16.mxu0 %v7695_v24  ;;  %v5487_v24 = vsel %vm543_vm0, %v8855_v19, %v8967_v61  ;;  %v7702_v14 = vld [vmem:[#allocation2 + $0xa0] sm:$0xff]  }
 0x220   : > { %5405 = vrot.lane.b32.xlu1 %v8981_v31, %s8037_s8 }
 0x221   : > { %v9152_v6 = vpop.f32.mrf.mxu1  ;;  %7275 = vmatmul.mubr.bf16.gmra.mxu1 %v7698_v34  ;;  %v9154_v13 = vpop.permute.xlu0 %5319  ;;  %v7700_v34 = vld [vmem:[#allocation2 + $0x1a0] sm:$0xff]  }
 0x222   : > { %7278 = vmatprep.mubr.bf16.mxu1 %v7699_v46  ;;  %7408 = vmatpush3.bf16.msra.mxu1 %v9130_v40  ;;  %v9170_v46 = vpop.permute.xlu1 %5233 }
 0x223   : > { %v9157_v23 = vpop.f32.mrf.mxu1  ;;  %7401 = vmatprep.subr.bf16.mxu1 %v9146_v54  ;;  %10289 = vst [vmem:[#allocation33_spill] sm:$0xff] %v9170_v46  ;;  %v5464_v46 = vsel %vm543_vm0, %v8885_v42, %v8957_v62 }
 0x224   : > { %5409 = vrot.lane.b32.xlu1 %v8993_v35, %s8037_s8 }
 0x225   : > { %v9164_v25 = vpop.f32.mrf.mxu1  ;;  %v5324_v18 = vpop.permute.xlu0 %5323 }
 0x226   : > { %7409 = vmatpush3.bf16.msra.mxu1 %v9146_v54  ;;  %7251 = vmatmul.mubr.bf16.gmra.mxu0 %v7700_v34  ;;  %v9180_v19 = vsel %vm5491_vm7, %v5487_v24, %v5324_v18  ;;  %v9191_v34 = vld [vmem:[#allocation11 + $0x208] sm:$0xff]  }
 0x227   : > { %v9172_v41 = vpop.f32.mrf.mxu1  ;;  %7402 = vmatprep.subr.bf16.mxu1 %v9160_v5  ;;  %10290 = vst [vmem:[#allocation34_spill] sm:$0xff] %v9180_v19  ;;  %7318 = vmatprep.mubr.bf16.mxu0 %v7702_v14 }
 0x228   : > { %5413 = vrot.lane.b32.xlu1 %v9005_v3, %s8037_s8 }
 0x229   : > { %v9182_v61 = vpop.f32.mrf.mxu1  ;;  %7279 = vmatmul.mubr.bf16.gmra.mxu1 %v7705_v51  ;;  %v5270_v51 = vpop.permute.xlu1 %5269 }
 0x22a   : > { %7282 = vmatprep.mubr.bf16.mxu1 %v7706_v50  ;;  %7410 = vmatpush3.bf16.msra.mxu1 %v9160_v5  ;;  %v9200_v45 = vsel %vm5491_vm7, %v5460_v60, %v5270_v51  ;;  %v7707_v50 = vld [vmem:[#allocation2 + $0xa8] sm:$0xff]  }
 0x22b   : > { %v9188_v11 = vpop.f32.mrf.mxu1  ;;  %7403 = vmatprep.subr.bf16.mxu1 %v9175_v59  ;;  %10291 = vst [vmem:[#allocation35_spill] sm:$0xff] %v9200_v45 }
 0x22c   : > { %v7032_v63 = vpop.f32.mrf.mxu0  ;;  %5417 = vrot.lane.b32.xlu1 %v9018_v30, %s8037_s8 }
 0x22d   : > { %v9195_v14 = vadd.f32 %v7032_v63, %v6984_v39  ;;  %v9197_v24 = vpop.f32.mrf.mxu1  ;;  %v7710_v39 = vld [vmem:[#allocation2 + $0x48] sm:$0xff]  }
 0x22e   : > { %v2272_v18 = vpop.f32.mrf.mxu0  ;;  %7411 = vmatpush3.bf16.msra.mxu1 %v9175_v59  ;;  %7319 = vmatmul.mubr.bf16.vlgmr.msra.gmra.mxu0 %v7707_v50 }
 0x22f   : > { %v9205_v19 = vadd.f32 %v2272_v18, %v1967_v22  ;;  %v9208_v9 = vpop.f32.mrf.mxu1  ;;  %7404 = vmatprep.subr.bf16.mxu1 %v9191_v34  ;;  %v5274_v22 = vpop.permute.xlu1 %5273  ;;  %7322 = vmatprep.mubr.bf16.mxu0 %v7708_v57 }
 0x230   : > { %v7033_v63 = vpop.f32.mrf.mxu0  ;;  %v9221_v45 = vsel %vm5491_vm7, %v5462_v47, %v5274_v22  ;;  %7351 = vmatpush3.bf16.msra.mxu0 %v9033_v2  ;;  %5421 = vrot.lane.b32.xlu1 %v9036_v43, %s8037_s8 }
 0x231   : > { %v9214_v60 = vadd.f32 %v7033_v63, %v9137_v10  ;;  %v9218_v51 = vpop.f32.mrf.mxu1  ;;  %7283 = vmatmul.mubr.bf16.gmra.mxu1 %v7710_v39  ;;  %10292 = vst [vmem:[#allocation36_spill] sm:$0xff] %v9221_v45  ;;  %7352 = vmatprep.subr.bf16.mxu0 %v9118_v17  ;;  %v7713_v63 = vld [vmem:[#allocation2 + $0xc0] sm:$0xff]  }
 0x232   : > { %v2275_v18 = vpop.f32.mrf.mxu0  ;;  %7286 = vmatprep.mubr.bf16.mxu1 %v7711_v38  ;;  %7412 = vmatpush3.bf16.msra.mxu1 %v9191_v34  ;;  %v7715_v38 = vld [vmem:[#allocation2 + $0x58] sm:$0xff]  }
 0x233   : > { %v9227_v50 = vadd.f32 %v2275_v18, %v9143_v44  ;;  %v9230_v10 = vpop.f32.mrf.mxu1  ;;  %7405 = vmatprep.subr.bf16.mxu1 %v9216_v49  ;;  %v5278_v57 = vpop.permute.xlu1 %5277  ;;  %v7712_v44 = vld [vmem:[#allocation2 + $0xb8] sm:$0xff]   ;;  %v5468_v18 = vsel %vm543_vm0, %v8910_v28, %v8985_v55 }
 0x234   : > { %v9240_v42 = vsel %vm5491_vm7, %v5464_v46, %v5278_v57  ;;  %v7036_v62 = vpop.f32.mrf.mxu0  ;;  %7353 = vmatpush3.bf16.msra.mxu0 %v9118_v17  ;;  %v7716_v46 = vld [vmem:[#allocation2 + $0x60] sm:$0xff]  }
 0x235   : > { %v9237_v47 = vpop.f32.mrf.mxu1  ;;  %10293 = vst [vmem:[#allocation37_spill] sm:$0xff] %v9240_v42  ;;  %v9244_v2 = vadd.f32 %v7036_v62, %v9152_v6  ;;  %7354 = vmatprep.subr.bf16.mxu0 %v9130_v40 }
 0x236   : > { %7413 = vmatpush3.bf16.msra.mxu1 %v9216_v49  ;;  %7323 = vmatmul.mubr.bf16.gmra.mxu0 %v7712_v44  ;;  %v2288_v30 = vpop.f32.mrf.mxu0  ;;  %v9270_v44 = vld [vmem:[%s8271_s16 + $0xf8] sm:$0xff] }
 0x237   : > { %v9246_v39 = vpop.f32.mrf.mxu1  ;;  %v9252_v22 = vpop.permute.xlu1 %5281  ;;  %7326 = vmatprep.mubr.bf16.mxu0 %v7713_v63  ;;  %v9255_v17 = vadd.f32 %v2288_v30, %v9157_v23  ;;  %5425 = vrot.lane.b32.xlu1 %v9270_v44, %s8037_s8  ;;  %v7717_v30 = vld [vmem:[#allocation2 + $0xc8] sm:$0xff]  }
 0x238   : > { %v7037_v57 = vpop.f32.mrf.mxu0  ;;  %7355 = vmatpush3.bf16.msra.mxu0 %v9130_v40 }
 0x239   : > { %v9257_v6 = vpop.f32.mrf.mxu1  ;;  %7287 = vmatmul.mubr.bf16.gmra.mxu1 %v7715_v38  ;;  %v9264_v62 = vadd.f32 %v7037_v57, %v9164_v25  ;;  %7356 = vmatprep.subr.bf16.mxu0 %v9146_v54  ;;  %v5470_v25 = vsel %vm543_vm0, %v8926_v29, %v9002_v4  ;;  %v7718_v57 = vld [vmem:[#allocation2 + $0xd0] sm:$0xff]  }
 0x23a   : > { %7290 = vmatprep.mubr.bf16.mxu1 %v7716_v46  ;;  %v2291_v23 = vpop.f32.mrf.mxu0 }
 0x23b   : > { %v9266_v43 = vpop.f32.mrf.mxu1  ;;  %v5286_v63 = vpop.permute.xlu1 %5285  ;;  %v9275_v28 = vadd.f32 %v2291_v23, %v9172_v41  ;;  %v7720_v41 = vld [vmem:[#allocation2 + $0x68] sm:$0xff]   ;;  %v7721_v23 = vld [vmem:[#allocation2 + $0x70] sm:$0xff]  }
 0x23c   : > { %v9280_v40 = vsel %vm5491_vm7, %v5468_v18, %v5286_v63  ;;  %7357 = vmatpush3.bf16.msra.mxu0 %v9146_v54 }
 0x23d   : > { %v9277_v55 = vpop.f32.mrf.mxu1  ;;  %10294 = vst [vmem:[#allocation38_spill] sm:$0xff] %v9280_v40  ;;  %7358 = vmatprep.subr.bf16.mxu0 %v9160_v5 }
 0x23e   : > { %v7040_v38 = vpop.f32.mrf.mxu0  ;;  %7327 = vmatmul.mubr.bf16.gmra.mxu0 %v7717_v30 }
 0x23f   : > { %v9287_v46 = vadd.f32 %v7040_v38, %v9182_v61  ;;  %v9289_v42 = vpop.f32.mrf.mxu1  ;;  %v5290_v63 = vpop.permute.xlu1 %5289  ;;  %7330 = vmatprep.mubr.bf16.mxu0 %v7718_v57  ;;  %v5472_v61 = vsel %vm543_vm0, %v8938_v56, %v9025_v0 }
 0x240   : > { %v2304_v18 = vpop.f32.mrf.mxu0  ;;  %v9298_v54 = vsel %vm5491_vm7, %v5470_v25, %v5290_v63  ;;  %7359 = vmatpush3.bf16.msra.mxu0 %v9160_v5 }
 0x241   : > { %v9293_v29 = vadd.f32 %v2304_v18, %v9188_v11  ;;  %v9295_v4 = vpop.f32.mrf.mxu1  ;;  %7291 = vmatmul.mubr.bf16.gmra.mxu1 %v7720_v41  ;;  %10295 = vst [vmem:[#allocation39_spill] sm:$0xff] %v9298_v54  ;;  %7360 = vmatprep.subr.bf16.mxu0 %v9175_v59 }
 0x242   : > { %v7041_v38 = vpop.f32.mrf.mxu0  ;;  %7294 = vmatprep.mubr.bf16.mxu1 %v7721_v23  ;;  %v7722_v23 = vld [vmem:[#allocation2 + $0xd8] sm:$0xff]  }
 0x243   : > { %v9305_v30 = vadd.f32 %v7041_v38, %v9197_v24  ;;  %v9307_v57 = vpop.f32.mrf.mxu1  ;;  %v5294_v41 = vpop.permute.xlu1 %5293  ;;  %v7723_v24 = vld [vmem:[#allocation2 + $0xe0] sm:$0xff]   ;;  %v7725_v38 = vld [vmem:[#allocation2 + $0x78] sm:$0xff]  }
 0x244   : > { %v2307_v11 = vpop.f32.mrf.mxu0  ;;  %v9316_v56 = vsel %vm5491_vm7, %v5472_v61, %v5294_v41  ;;  %7361 = vmatpush3.bf16.msra.mxu0 %v9175_v59 }
 0x245   : > { %v9311_v25 = vadd.f32 %v2307_v11, %v9208_v9  ;;  %v9313_v18 = vpop.f32.mrf.mxu1  ;;  %10296 = vst [vmem:[#allocation40_spill] sm:$0xff] %v9316_v56  ;;  %7362 = vmatprep.subr.bf16.mxu0 %v9191_v34  ;;  %v7726_v11 = vld [vmem:[#allocation2 + $0x80] sm:$0xff]  }
 0x246   : > { %v7044_v0 = vpop.f32.mrf.mxu0  ;;  %7331 = vmatmul.mubr.bf16.gmra.mxu0 %v7722_v23  ;;  %v7731_v56 = vld [vmem:[#allocation2 + $0x140] sm:$0xff]  }
 0x247   : > { %v9320_v5 = vadd.f32 %v7044_v0, %v9218_v51  ;;  %v9322_v63 = vpop.f32.mrf.mxu1  ;;  %v9325_v54 = vpop.permute.xlu1 %5297  ;;  %7334 = vmatprep.mubr.bf16.mxu0 %v7723_v24  ;;  %v5476_v51 = vsel %vm543_vm0, %v8961_v53, %v9060_v16  ;;  %v7728_v16 = vld [vmem:[#allocation2 + $0xf0] sm:$0xff]  }
 0x248   : > { %v2320_v9 = vpop.f32.mrf.mxu0  ;;  %10297 = vst [vmem:[#allocation41_spill] sm:$0xff] %v9325_v54  ;;  %7363 = vmatpush3.bf16.msra.mxu0 %v9191_v34  ;;  %v7727_v34 = vld [vmem:[#allocation2 + $0xe8] sm:$0xff]  }
 0x249   : > { %v9328_v61 = vadd.f32 %v2320_v9, %v9230_v10  ;;  %v9330_v41 = vpop.f32.mrf.mxu1  ;;  %7295 = vmatmul.mubr.bf16.gmra.mxu1 %v7725_v38  ;;  %7364 = vmatprep.subr.bf16.mxu0 %v9216_v49  ;;  %v7730_v9 = vld [vmem:[#allocation2 + $0x88] sm:$0xff]  }
 0x24a   : > { %v7045_v59 = vpop.f32.mrf.mxu0  ;;  %7298 = vmatprep.mubr.bf16.mxu1 %v7726_v11 }
 0x24b   : > { %v9337_v0 = vadd.f32 %v7045_v59, %v9237_v47  ;;  %v9339_v23 = vpop.f32.mrf.mxu1  ;;  %v5302_v11 = vpop.permute.xlu1 %5301 }
 0x24c   : > { %v2323_v10 = vpop.f32.mrf.mxu0  ;;  %7365 = vmatpush3.bf16.msra.mxu0 %v9216_v49  ;;  %v9349_v53 = vsel %vm5491_vm7, %v5476_v51, %v5302_v11  ;;  %v5480_v49 = vsel %vm543_vm0, %v8981_v31, %v9085_v48  ;;  %v5482_v31 = vsel %vm543_vm0, %v8993_v35, %v9098_v52 }
 0x24d   : > { %v9343_v24 = vadd.f32 %v2323_v10, %v9246_v39  ;;  %v9345_v38 = vpop.f32.mrf.mxu1  ;;  %10298 = vst [vmem:[#allocation42_spill] sm:$0xff] %v9349_v53  ;;  %v7732_v53 = vld [vmem:[#allocation2 + $0xf8] sm:$0xff]  }
 0x24e   : > { %v7048_v59 = vpop.f32.mrf.mxu0  ;;  %7335 = vmatmul.mubr.bf16.gmra.mxu0 %v7727_v34 }
 0x24f   : > { %v9351_v47 = vpop.f32.mrf.mxu1  ;;  %v9354_v40 = vadd.f32 %v7048_v59, %v9257_v6  ;;  %7338 = vmatprep.mubr.bf16.mxu0 %v7728_v16  ;;  %v9358_v10 = vpop.permute.xlu1 %5305 }
 0x250   : > { %10299 = vst [vmem:[#allocation43_spill] sm:$0xff] %v9358_v10  ;;  %v2336_v45 = vpop.f32.mrf.mxu0  ;;  %v7735_v10 = vld [vmem:[#allocation2 + $0x150] sm:$0xff]  }
 0x251   : > { %v9356_v39 = vpop.f32.mrf.mxu1  ;;  %7299 = vmatmul.mubr.bf16.gmra.mxu1 %v7730_v9  ;;  %v9364_v51 = vadd.f32 %v2336_v45, %v9266_v43  ;;  %v7733_v45 = vld [vmem:[#allocation2 + $0x100] sm:$0xff]  }
 0x252   : > { %7370 = vmatprep.mubr.bf16.mxu1 %v7731_v56  ;;  %v7049_v34 = vpop.f32.mrf.mxu0 }
 0x253   : > { %v9366_v11 = vpop.f32.mrf.mxu1  ;;  %v9369_v6 = vadd.f32 %v7049_v34, %v9277_v55  ;;  %v5310_v9 = vpop.permute.xlu1 %5309  ;;  %v7734_v55 = vld [vmem:[#allocation2 + $0x148] sm:$0xff]  }
 0x254   : > { %v2339_v59 = vpop.f32.mrf.mxu0  ;;  %v9374_v56 = vsel %vm5491_vm7, %v5480_v49, %v5310_v9 }
 0x255   : > { %v9371_v16 = vpop.f32.mrf.mxu1  ;;  %10300 = vst [vmem:[#allocation44_spill] sm:$0xff] %v9374_v56  ;;  %v9380_v48 = vadd.f32 %v2339_v59, %v9289_v42  ;;  %v5484_v42 = vsel %vm543_vm0, %v9005_v3, %v9111_v12 }
 0x256   : > { %v7052_v34 = vpop.f32.mrf.mxu0  ;;  %7339 = vmatmul.mubr.bf16.gmra.mxu0 %v7732_v53 }
 0x257   : > { %v9382_v43 = vpop.f32.mrf.mxu1  ;;  %v9385_v54 = vadd.f32 %v7052_v34, %v9295_v4  ;;  %7342 = vmatprep.mubr.bf16.mxu0 %v7733_v45  ;;  %v5314_v9 = vpop.permute.xlu1 %5313 }
 0x258   : > { %v2352_v56 = vpop.f32.mrf.mxu0  ;;  %v9391_v52 = vsel %vm5491_vm7, %v5482_v31, %v5314_v9  ;;  %v7736_v31 = vld [vmem:[#allocation2 + $0x108] sm:$0xff]  }
 0x259   : > { %v7080_v49 = vpop.f32.mrf.mxu1  ;;  %7371 = vmatmul.mubr.bf16.vlgmr.msra.gmra.mxu1 %v7734_v55  ;;  %10301 = vst [vmem:[#allocation45_spill] sm:$0xff] %v9391_v52  ;;  %v9397_v53 = vadd.f32 %v2352_v56, %v9307_v57  ;;  %v7737_v57 = vld [vmem:[#allocation2 + $0x110] sm:$0xff]  }
 0x25a   : > { %v9388_v35 = vadd.f32 %v7080_v49, %v9195_v14  ;;  %7374 = vmatprep.mubr.bf16.mxu1 %v7735_v10  ;;  %v7053_v59 = vpop.f32.mrf.mxu0 }
 0x25b   : > { %v2626_v4 = vpop.f32.mrf.mxu1  ;;  %v9403_v55 = vadd.f32 %v7053_v59, %v9313_v18  ;;  %v5318_v10 = vpop.permute.xlu1 %5317 }
 0x25c   : > { %v9400_v45 = vadd.f32 %v2626_v4, %v9205_v19  ;;  %v2355_v34 = vpop.f32.mrf.mxu0  ;;  %v9409_v3 = vsel %vm5491_vm7, %v5484_v42, %v5318_v10  ;;  %v7738_v19 = vld [vmem:[#allocation2 + $0x158] sm:$0xff]   ;;  %v7739_v4 = vld [vmem:[#allocation2 + $0x160] sm:$0xff]  }
 0x25d   : > { %v7081_v14 = vpop.f32.mrf.mxu1  ;;  %10302 = vst [vmem:[#allocation46_spill] sm:$0xff] %v9409_v3  ;;  %v9412_v12 = vadd.f32 %v2355_v34, %v9322_v63 }
 0x25e   : > { %v9406_v49 = vadd.f32 %v7081_v14, %v9214_v60  ;;  %v7056_v9 = vpop.f32.mrf.mxu0  ;;  %7343 = vmatmul.mubr.bf16.gmra.mxu0 %v7736_v31 }
 0x25f   : > { %v2629_v56 = vpop.f32.mrf.mxu1  ;;  %v9418_v59 = vadd.f32 %v7056_v9, %v9330_v41  ;;  %7346 = vmatprep.mubr.bf16.mxu0 %v7737_v57 }
 0x260   : > { %v9415_v18 = vadd.f32 %v2629_v56, %v9227_v50  ;;  %v2368_v42 = vpop.f32.mrf.mxu0  ;;  %v7740_v50 = vld [vmem:[#allocation2 + $0x118] sm:$0xff]  }
 0x261   : > { %v7084_v60 = vpop.f32.mrf.mxu1  ;;  %7375 = vmatmul.mubr.bf16.gmra.mxu1 %v7738_v19  ;;  %v9422_v63 = vadd.f32 %v2368_v42, %v9339_v23  ;;  %v7742_v23 = vld [vmem:[#allocation2 + $0x168] sm:$0xff]  }
 0x262   : > { %v2759_v14 = vadd.f32 %v7084_v60, %v9244_v2  ;;  %7378 = vmatprep.mubr.bf16.mxu1 %v7739_v4  ;;  %v7057_v34 = vpop.f32.mrf.mxu0  ;;  %v7741_v2 = vld [vmem:[#allocation2 + $0x130] sm:$0xff]  }
 0x263   : > { %v2642_v10 = vpop.f32.mrf.mxu1  ;;  %v9428_v56 = vadd.f32 %v7057_v34, %v9345_v38 }
 0x264   : > { %v9425_v31 = vadd.f32 %v2642_v10, %v9255_v17  ;;  %v2371_v57 = vpop.f32.mrf.mxu0  ;;  %v7743_v17 = vld [vmem:[#allocation2 + $0x170] sm:$0xff]  }
 0x265   : > { %v7085_v41 = vpop.f32.mrf.mxu1  ;;  %v9432_v9 = vadd.f32 %v2371_v57, %v9351_v47 }
 0x266   : > { %v2760_v19 = vadd.f32 %v7085_v41, %v9264_v62  ;;  %v7060_v60 = vpop.f32.mrf.mxu0  ;;  %7347 = vmatmul.mubr.bf16.gmra.mxu0 %v7740_v50 }
 0x267   : > { %v2645_v4 = vpop.f32.mrf.mxu1  ;;  %v9436_v10 = vadd.f32 %v7060_v60, %v9356_v39  ;;  %7366 = vmatprep.mubr.bf16.mxu0 %v7741_v2  ;;  %v7744_v60 = vld [vmem:[#allocation2 + $0x138] sm:$0xff]  }
 0x268   : > { %v2758_v42 = vadd.f32 %v2645_v4, %v9275_v28  ;;  %v2384_v34 = vpop.f32.mrf.mxu0 }
 0x269   : > { %v7088_v38 = vpop.f32.mrf.mxu1  ;;  %7379 = vmatmul.mubr.bf16.gmra.mxu1 %v7742_v23  ;;  %v9440_v47 = vadd.f32 %v2384_v34, %v9366_v11  ;;  %v7746_v34 = vld [vmem:[#allocation2 + $0x180] sm:$0xff]  }
 0x26a   : > { %v2763_v62 = vadd.f32 %v7088_v38, %v9287_v46  ;;  %7382 = vmatprep.mubr.bf16.mxu1 %v7743_v17  ;;  %v7061_v57 = vpop.f32.mrf.mxu0  ;;  %v7745_v17 = vld [vmem:[#allocation2 + $0x178] sm:$0xff]  }
 0x26b   : > { %v2658_v41 = vpop.f32.mrf.mxu1  ;;  %v9444_v28 = vadd.f32 %v7061_v57, %v9371_v16 }
 0x26c   : > { %v2761_v50 = vadd.f32 %v2658_v41, %v9293_v29  ;;  %v2387_v39 = vpop.f32.mrf.mxu0 }
 0x26d   : > { %v7089_v4 = vpop.f32.mrf.mxu1  ;;  %v9448_v23 = vadd.f32 %v2387_v39, %v9382_v43 }
 0x26e   : > { %v2764_v2 = vadd.f32 %v7089_v4, %v9305_v30  ;;  %v7128_v38 = vpop.f32.mrf.mxu0  ;;  %7367 = vmatmul.mubr.bf16.vlgmr.msra.gmra.mxu0 %v7744_v60 }
 0x26f   : > { %v2661_v46 = vpop.f32.mrf.mxu1  ;;  %v9452_v29 = vadd.f32 %v7128_v38, %v9388_v35 }
 0x270   : > { %v2762_v11 = vadd.f32 %v2661_v46, %v9311_v25  ;;  %v3013_v41 = vpop.f32.mrf.mxu0 }
 0x271   : > { %v7092_v16 = vpop.f32.mrf.mxu1  ;;  %7383 = vmatmul.mubr.bf16.gmra.mxu1 %v7745_v17  ;;  %v9456_v30 = vadd.f32 %v3013_v41, %v9400_v45 }
 0x272   : > { %v2767_v57 = vadd.f32 %v7092_v16, %v9320_v5  ;;  %7386 = vmatprep.mubr.bf16.mxu1 %v7746_v34  ;;  %v7129_v4 = vpop.f32.mrf.mxu0  ;;  %v7747_v5 = vld [vmem:[#allocation2 + $0x188] sm:$0xff]   ;;  %v7748_v16 = vld [vmem:[#allocation2 + $0x190] sm:$0xff]  }
 0x273   : > { %v2674_v43 = vpop.f32.mrf.mxu1  ;;  %v9460_v60 = vadd.f32 %v7129_v4, %v9406_v49 }
 0x274   : > { %v2765_v39 = vadd.f32 %v2674_v43, %v9328_v61  ;;  %v3016_v46 = vpop.f32.mrf.mxu0 }
 0x275   : > { %v7093_v25 = vpop.f32.mrf.mxu1  ;;  %v9464_v17 = vadd.f32 %v3016_v46, %v9415_v18 }
 0x276   : > { %v2768_v35 = vadd.f32 %v7093_v25, %v9337_v0  ;;  %v7132_v34 = vpop.f32.mrf.mxu0 }
 0x277   : > { %v2677_v38 = vpop.f32.mrf.mxu1  ;;  %v9467_v41 = vadd.f32 %v7132_v34, %v2759_v14  ;;  %v7749_v34 = vld [vmem:[#allocation2 + $0x198] sm:$0xff]  }
 0x278   : > { %v2766_v45 = vadd.f32 %v2677_v38, %v9343_v24  ;;  %v3029_v61 = vpop.f32.mrf.mxu0 }
 0x279   : > { %v7096_v3 = vpop.f32.mrf.mxu1  ;;  %7387 = vmatmul.mubr.bf16.gmra.mxu1 %v7747_v5  ;;  %v9471_v43 = vadd.f32 %v3029_v61, %v9425_v31 }
 0x27a   : > { %v2771_v49 = vadd.f32 %v7096_v3, %v9354_v40  ;;  %7390 = vmatprep.mubr.bf16.mxu1 %v7748_v16  ;;  %v7133_v18 = vpop.f32.mrf.mxu0  ;;  %v7750_v3 = vld [vmem:[#allocation2 + $0x1a0] sm:$0xff]  }
 0x27b   : > { %v2690_v0 = vpop.f32.mrf.mxu1  ;;  %v9474_v25 = vadd.f32 %v7133_v18, %v2760_v19 }
 0x27c   : > { %v2769_v4 = vadd.f32 %v2690_v0, %v9364_v51  ;;  %v3032_v24 = vpop.f32.mrf.mxu0 }
 0x27d   : > { %v7097_v46 = vpop.f32.mrf.mxu1  ;;  %v9477_v38 = vadd.f32 %v3032_v24, %v2758_v42  ;;  %v7751_v24 = vld [vmem:[#allocation2 + $0x1a8] sm:$0xff]  }
 0x27e   : > { %v2772_v14 = vadd.f32 %v7097_v46, %v9369_v6  ;;  %v7136_v52 = vpop.f32.mrf.mxu0 }
 0x27f   : > { %v2693_v5 = vpop.f32.mrf.mxu1  ;;  %v9480_v31 = vadd.f32 %v7136_v52, %v2763_v62 }
 0x280   : > { %v2770_v40 = vadd.f32 %v2693_v5, %v9380_v48  ;;  %v3045_v61 = vpop.f32.mrf.mxu0 }
 0x281   : > { %v7100_v16 = vpop.f32.mrf.mxu1  ;;  %7391 = vmatmul.mubr.bf16.gmra.mxu1 %v7749_v34  ;;  %v9483_v19 = vadd.f32 %v3045_v61, %v2761_v50 }
 0x282   : > { %v2775_v51 = vadd.f32 %v7100_v16, %v9385_v54  ;;  %7394 = vmatprep.mubr.bf16.mxu1 %v7750_v3  ;;  %v7137_v6 = vpop.f32.mrf.mxu0 }
 0x283   : > { %v2706_v0 = vpop.f32.mrf.mxu1  ;;  %v9486_v18 = vadd.f32 %v7137_v6, %v2764_v2 }
 0x284   : > { %v2773_v42 = vadd.f32 %v2706_v0, %v9397_v53  ;;  %v3048_v48 = vpop.f32.mrf.mxu0 }
 0x285   : > { %v7101_v46 = vpop.f32.mrf.mxu1  ;;  %v9489_v62 = vadd.f32 %v3048_v48, %v2762_v11 }
 0x286   : > { %v2776_v52 = vadd.f32 %v7101_v46, %v9403_v55  ;;  %v7140_v34 = vpop.f32.mrf.mxu0 }
 0x287   : > { %v2709_v5 = vpop.f32.mrf.mxu1  ;;  %v9492_v3 = vadd.f32 %v7140_v34, %v2767_v57 }
 0x288   : > { %v2774_v54 = vadd.f32 %v2709_v5, %v9412_v12  ;;  %v3061_v16 = vpop.f32.mrf.mxu0 }
 0x289   : > { %v7104_v50 = vpop.f32.mrf.mxu1  ;;  %7395 = vmatmul.mubr.bf16.gmra.mxu1 %v7751_v24  ;;  %v9495_v2 = vadd.f32 %v3061_v16, %v2765_v39 }
 0x28a   : > { %v2779_v53 = vadd.f32 %v7104_v50, %v9418_v59  ;;  %v7141_v0 = vpop.f32.mrf.mxu0 }
 0x28b   : > { %v2722_v61 = vpop.f32.mrf.mxu1  ;;  %v9498_v55 = vadd.f32 %v7141_v0, %v2768_v35 }
 0x28c   : > { %v2777_v6 = vadd.f32 %v2722_v61, %v9422_v63  ;;  %v3064_v46 = vpop.f32.mrf.mxu0 }
 0x28d   : > { %v7105_v11 = vpop.f32.mrf.mxu1  ;;  %v9501_v12 = vadd.f32 %v3064_v46, %v2766_v45 }
 0x28e   : > { %v2780_v48 = vadd.f32 %v7105_v11, %v9428_v56  ;;  %v7144_v5 = vpop.f32.mrf.mxu0 }
 0x28f   : > { %v2725_v57 = vpop.f32.mrf.mxu1  ;;  %v9504_v34 = vadd.f32 %v7144_v5, %v2771_v49 }
 0x290   : > { %v2778_v24 = vadd.f32 %v2725_v57, %v9432_v9  ;;  %v3077_v39 = vpop.f32.mrf.mxu0 }
 0x291   : > { %v7108_v59 = vpop.f32.mrf.mxu1  ;;  %v9507_v16 = vadd.f32 %v3077_v39, %v2769_v4 }
 0x292   : > { %v2783_v50 = vadd.f32 %v7108_v59, %v9436_v10  ;;  %v7145_v35 = vpop.f32.mrf.mxu0 }
 0x293   : > { %v2738_v63 = vpop.f32.mrf.mxu1  ;;  %v9510_v0 = vadd.f32 %v7145_v35, %v2772_v14 }
 0x294   : > { %v2781_v61 = vadd.f32 %v2738_v63, %v9440_v47  ;;  %v3080_v45 = vpop.f32.mrf.mxu0 }
 0x295   : > { %v7109_v56 = vpop.f32.mrf.mxu1  ;;  %v9513_v46 = vadd.f32 %v3080_v45, %v2770_v40 }
 0x296   : > { %v2784_v11 = vadd.f32 %v7109_v56, %v9444_v28  ;;  %v7148_v49 = vpop.f32.mrf.mxu0 }
 0x297   : > { %v2741_v9 = vpop.f32.mrf.mxu1  ;;  %v9516_v5 = vadd.f32 %v7148_v49, %v2775_v51 }
 0x298   : > { %v2782_v57 = vadd.f32 %v2741_v9, %v9448_v23  ;;  %v3093_v4 = vpop.f32.mrf.mxu0 }
 0x299   : > { %v7176_v10 = vpop.f32.mrf.mxu1  ;;  %v9519_v39 = vadd.f32 %v3093_v4, %v2773_v42 }
 0x29a   : > { %v3529_v59 = vadd.f32 %v7176_v10, %v9452_v29  ;;  %v7149_v14 = vpop.f32.mrf.mxu0 }
 0x29b   : > { %v3400_v47 = vpop.f32.mrf.mxu1  ;;  %v9522_v35 = vadd.f32 %v7149_v14, %v2776_v52 }
 0x29c   : > { %v3527_v63 = vadd.f32 %v3400_v47, %v9456_v30  ;;  %v3096_v40 = vpop.f32.mrf.mxu0 }
 0x29d   : > { %v7177_v28 = vpop.f32.mrf.mxu1  ;;  %v9525_v45 = vadd.f32 %v3096_v40, %v2774_v54 }
 0x29e   : > { %v3530_v56 = vadd.f32 %v7177_v28, %v9460_v60  ;;  %v7152_v51 = vpop.f32.mrf.mxu0 }
 0x29f   : > { %v3403_v23 = vpop.f32.mrf.mxu1  ;;  %v9528_v49 = vadd.f32 %v7152_v51, %v2779_v53 }
 0x2a0   : > { %v3528_v9 = vadd.f32 %v3403_v23, %v9464_v17  ;;  %v3109_v42 = vpop.f32.mrf.mxu0 }
 0x2a1   : > { %v7180_v29 = vpop.f32.mrf.mxu1  ;;  %v9531_v4 = vadd.f32 %v3109_v42, %v2777_v6 }
 0x2a2   : > { %v3533_v10 = vadd.f32 %v7180_v29, %v9467_v41  ;;  %v7153_v52 = vpop.f32.mrf.mxu0 }
 0x2a3   : > { %v3416_v30 = vpop.f32.mrf.mxu1  ;;  %v9534_v14 = vadd.f32 %v7153_v52, %v2780_v48 }
 0x2a4   : > { %v3531_v47 = vadd.f32 %v3416_v30, %v9471_v43  ;;  %v3112_v54 = vpop.f32.mrf.mxu0 }
 0x2a5   : > { %v7181_v60 = vpop.f32.mrf.mxu1  ;;  %v9537_v40 = vadd.f32 %v3112_v54, %v2778_v24 }
 0x2a6   : > { %v3534_v28 = vadd.f32 %v7181_v60, %v9474_v25  ;;  %v7156_v53 = vpop.f32.mrf.mxu0 }
 0x2a7   : > { %v3419_v17 = vpop.f32.mrf.mxu1  ;;  %v9540_v51 = vadd.f32 %v7156_v53, %v2783_v50 }
 0x2a8   : > { %v3532_v23 = vadd.f32 %v3419_v17, %v9477_v38  ;;  %v3125_v6 = vpop.f32.mrf.mxu0 }
 0x2a9   : > { %v7184_v41 = vpop.f32.mrf.mxu1  ;;  %v9543_v42 = vadd.f32 %v3125_v6, %v2781_v61 }
 0x2aa   : > { %v3537_v29 = vadd.f32 %v7184_v41, %v9480_v31  ;;  %v7157_v48 = vpop.f32.mrf.mxu0 }
 0x2ab   : > { %v3432_v43 = vpop.f32.mrf.mxu1  ;;  %v9546_v52 = vadd.f32 %v7157_v48, %v2784_v11 }
 0x2ac   : > { %v3535_v30 = vadd.f32 %v3432_v43, %v9483_v19  ;;  %v3128_v24 = vpop.f32.mrf.mxu0 }
 0x2ad   : > { %v7185_v25 = vpop.f32.mrf.mxu1  ;;  %v9549_v54 = vadd.f32 %v3128_v24, %v2782_v57 }
 0x2ae   : > { %v3538_v60 = vadd.f32 %v7185_v25, %v9486_v18  ;;  %v7224_v50 = vpop.f32.mrf.mxu0 }
 0x2af   : > { %v3435_v38 = vpop.f32.mrf.mxu1  ;;  %v9552_v53 = vadd.f32 %v7224_v50, %v3529_v59 }
 0x2b0   : > { %v3536_v17 = vadd.f32 %v3435_v38, %v9489_v62  ;;  %v3787_v61 = vpop.f32.mrf.mxu0 }
 0x2b1   : > { %v7188_v31 = vpop.f32.mrf.mxu1  ;;  %v9555_v6 = vadd.f32 %v3787_v61, %v3527_v63 }
 0x2b2   : > { %v3541_v41 = vadd.f32 %v7188_v31, %v9492_v3  ;;  %v7225_v11 = vpop.f32.mrf.mxu0 }
 0x2b3   : > { %v3448_v19 = vpop.f32.mrf.mxu1  ;;  %v9558_v48 = vadd.f32 %v7225_v11, %v3530_v56 }
 0x2b4   : > { %v3539_v43 = vadd.f32 %v3448_v19, %v9495_v2  ;;  %v3790_v57 = vpop.f32.mrf.mxu0 }
 0x2b5   : > { %v7189_v18 = vpop.f32.mrf.mxu1  ;;  %v9561_v24 = vadd.f32 %v3790_v57, %v3528_v9 }
 0x2b6   : > { %v3542_v25 = vadd.f32 %v7189_v18, %v9498_v55  ;;  %v7228_v59 = vpop.f32.mrf.mxu0 }
 0x2b7   : > { %v3451_v62 = vpop.f32.mrf.mxu1  ;;  %v9564_v50 = vadd.f32 %v7228_v59, %v3533_v10 }
 0x2b8   : > { %v3540_v38 = vadd.f32 %v3451_v62, %v9501_v12  ;;  %v3803_v63 = vpop.f32.mrf.mxu0 }
 0x2b9   : > { %v7192_v3 = vpop.f32.mrf.mxu1  ;;  %v9567_v61 = vadd.f32 %v3803_v63, %v3531_v47 }
 0x2ba   : > { %v3545_v31 = vadd.f32 %v7192_v3, %v9504_v34  ;;  %v7229_v56 = vpop.f32.mrf.mxu0 }
 0x2bb   : > { %v3464_v2 = vpop.f32.mrf.mxu1  ;;  %v9570_v11 = vadd.f32 %v7229_v56, %v3534_v28 }
 0x2bc   : > { %v3543_v19 = vadd.f32 %v3464_v2, %v9507_v16  ;;  %v3806_v9 = vpop.f32.mrf.mxu0 }
 0x2bd   : > { %v7193_v55 = vpop.f32.mrf.mxu1  ;;  %v9573_v57 = vadd.f32 %v3806_v9, %v3532_v23 }
 0x2be   : > { %v3546_v18 = vadd.f32 %v7193_v55, %v9510_v0  ;;  %v7232_v10 = vpop.f32.mrf.mxu0 }
 0x2bf   : > { %v3467_v12 = vpop.f32.mrf.mxu1  ;;  %v9576_v59 = vadd.f32 %v7232_v10, %v3537_v29 }
 0x2c0   : > { %v3544_v62 = vadd.f32 %v3467_v12, %v9513_v46  ;;  %v3819_v47 = vpop.f32.mrf.mxu0 }
 0x2c1   : > { %v7196_v34 = vpop.f32.mrf.mxu1  ;;  %v9579_v63 = vadd.f32 %v3819_v47, %v3535_v30 }
 0x2c2   : > { %v3549_v3 = vadd.f32 %v7196_v34, %v9516_v5  ;;  %v7233_v28 = vpop.f32.mrf.mxu0 }
 0x2c3   : > { %v3480_v16 = vpop.f32.mrf.mxu1  ;;  %v9582_v56 = vadd.f32 %v7233_v28, %v3538_v60 }
 0x2c4   : > { %v3547_v2 = vadd.f32 %v3480_v16, %v9519_v39  ;;  %v3822_v23 = vpop.f32.mrf.mxu0 }
 0x2c5   : > { %10303 = vst [vmem:[#allocation47_spill] sm:$0xff] %v9582_v56  ;;  %v7197_v0 = vpop.f32.mrf.mxu1  ;;  %v9585_v9 = vadd.f32 %v3822_v23, %v3536_v17 }
 0x2c6   : > { %v3550_v55 = vadd.f32 %v7197_v0, %v9522_v35  ;;  %v7236_v29 = vpop.f32.mrf.mxu0 }
 0x2c7   : > { %10304 = vst [vmem:[#allocation48_spill] sm:$0xff] %v9585_v9  ;;  %v3483_v46 = vpop.f32.mrf.mxu1  ;;  %v9588_v10 = vadd.f32 %v7236_v29, %v3541_v41 }
 0x2c8   : > { %v3548_v12 = vadd.f32 %v3483_v46, %v9525_v45  ;;  %v3835_v30 = vpop.f32.mrf.mxu0 }
 0x2c9   : > { %10305 = vst [vmem:[#allocation49_spill] sm:$0xff] %v9588_v10  ;;  %v7200_v5 = vpop.f32.mrf.mxu1  ;;  %v9591_v47 = vadd.f32 %v3835_v30, %v3539_v43 }
 0x2ca   : > { %v3553_v34 = vadd.f32 %v7200_v5, %v9528_v49  ;;  %v7237_v60 = vpop.f32.mrf.mxu0 }
 0x2cb   : > { %10306 = vst [vmem:[#allocation50_spill] sm:$0xff] %v9591_v47  ;;  %v3496_v39 = vpop.f32.mrf.mxu1  ;;  %v9594_v28 = vadd.f32 %v7237_v60, %v3542_v25  ;;  %v9605_v25 = vpop.permute.xlu0 %5327 }
 0x2cc   : > { %v3551_v16 = vadd.f32 %v3496_v39, %v9531_v4  ;;  %v3838_v17 = vpop.f32.mrf.mxu0 }
 0x2cd   : > { %10307 = vst [vmem:[#allocation51_spill] sm:$0xff] %v9594_v28  ;;  %v7201_v35 = vpop.f32.mrf.mxu1  ;;  %v9597_v23 = vadd.f32 %v3838_v17, %v3540_v38 }
 0x2ce   : > { %v3554_v0 = vadd.f32 %v7201_v35, %v9534_v14  ;;  %v7240_v41 = vpop.f32.mrf.mxu0  ;;  %v9610_v35 = vpop.permute.xlu1 %5321 }
 0x2cf   : > { %10308 = vst [vmem:[#allocation52_spill] sm:$0xff] %v9597_v23  ;;  %v3499_v45 = vpop.f32.mrf.mxu1  ;;  %v9600_v29 = vadd.f32 %v7240_v41, %v3545_v31  ;;  %10312 = vst [vmem:[#allocation56_spill] sm:$0xff] %v9610_v35 }
 0x2d0   : > { %v3552_v46 = vadd.f32 %v3499_v45, %v9537_v40  ;;  %v3851_v43 = vpop.f32.mrf.mxu0 }
 0x2d1   : > { %10309 = vst [vmem:[#allocation53_spill] sm:$0xff] %v9600_v29  ;;  %v7204_v49 = vpop.f32.mrf.mxu1  ;;  %v9603_v30 = vadd.f32 %v3851_v43, %v3543_v19  ;;  %v9618_v43 = vpop.permute.xlu0 %5363 }
 0x2d2   : > { %v3557_v5 = vadd.f32 %v7204_v49, %v9540_v51  ;;  %v7241_v39 = vpop.f32.mrf.mxu0  ;;  %v9623_v35 = vpop.permute.xlu1 %5325 }
 0x2d3   : > { %10310 = vst [vmem:[#allocation54_spill] sm:$0xff] %v9603_v30  ;;  %v3512_v4 = vpop.f32.mrf.mxu1  ;;  %v9608_v38 = vadd.f32 %v7241_v39, %v3546_v18  ;;  %10316 = vst [vmem:[#allocation60_spill] sm:$0xff] %v9623_v35 }
 0x2d4   : > { %v3555_v14 = vadd.f32 %v3512_v4, %v9543_v42  ;;  %v3854_v40 = vpop.f32.mrf.mxu0 }
 0x2d5   : > { %10311 = vst [vmem:[#allocation55_spill] sm:$0xff] %v9608_v38  ;;  %v7205_v60 = vpop.f32.mrf.mxu1  ;;  %v9613_v17 = vadd.f32 %v3854_v40, %v3544_v62 }
 0x2d6   : > { %v3558_v31 = vadd.f32 %v7205_v60, %v9546_v52  ;;  %v7244_v51 = vpop.f32.mrf.mxu0 }
 0x2d7   : > { %10313 = vst [vmem:[#allocation57_spill] sm:$0xff] %v9613_v17  ;;  %v3515_v45 = vpop.f32.mrf.mxu1  ;;  %v9616_v41 = vadd.f32 %v7244_v51, %v3549_v3 }
 0x2d8   : > { %v3556_v19 = vadd.f32 %v3515_v45, %v9549_v54  ;;  %v3867_v42 = vpop.f32.mrf.mxu0 }
 0x2d9   : > { %10314 = vst [vmem:[#allocation58_spill] sm:$0xff] %v9616_v41  ;;  %v7272_v49 = vpop.f32.mrf.mxu1  ;;  %v9621_v4 = vadd.f32 %v3867_v42, %v3547_v2  ;;  %v9633_v41 = vpop.permute.xlu0 %5367 }
 0x2da   : > { %v4303_v18 = vadd.f32 %v7272_v49, %v9552_v53  ;;  %v7245_v52 = vpop.f32.mrf.mxu0 }
 0x2db   : > { %10315 = vst [vmem:[#allocation59_spill] sm:$0xff] %v9621_v4  ;;  %v4174_v39 = vpop.f32.mrf.mxu1  ;;  %v9626_v60 = vadd.f32 %v7245_v52, %v3550_v55 }
 0x2dc   : > { %v4301_v62 = vadd.f32 %v4174_v39, %v9555_v6  ;;  %v3870_v54 = vpop.f32.mrf.mxu0  ;;  %v9642_v6 = vpop.permute.xlu1 %5329 }
 0x2dd   : > { %10317 = vst [vmem:[#allocation61_spill] sm:$0xff] %v9626_v60  ;;  %v7273_v40 = vpop.f32.mrf.mxu1  ;;  %v9631_v45 = vadd.f32 %v3870_v54, %v3548_v12  ;;  %10322 = vst [vmem:[#allocation66_spill] sm:$0xff] %v9642_v6  ;;  %v9648_v12 = vpop.permute.xlu0 %5371 }
 0x2de   : > { %v9629_v3 = vadd.f32 %v7273_v40, %v9558_v48  ;;  %v7248_v53 = vpop.f32.mrf.mxu0 }
 0x2df   : > { %10319 = vst [vmem:[#allocation63_spill] sm:$0xff] %v9631_v45  ;;  %v4177_v51 = vpop.f32.mrf.mxu1  ;;  %v9638_v49 = vadd.f32 %v7248_v53, %v3553_v34 }
 0x2e0   : > { %10318 = vst [vmem:[#allocation62_spill] sm:$0xff] %v9629_v3  ;;  %v9636_v2 = vadd.f32 %v4177_v51, %v9561_v24  ;;  %v3883_v55 = vpop.f32.mrf.mxu0  ;;  %v9658_v53 = vpop.permute.xlu1 %5365 }
 0x2e1   : > { %10321 = vst [vmem:[#allocation65_spill] sm:$0xff] %v9638_v49  ;;  %v9640_v42 = vpop.f32.mrf.mxu1  ;;  %v9644_v39 = vadd.f32 %v3883_v55, %v3551_v16  ;;  %v9664_v55 = vpop.permute.xlu0 %5375 }
 0x2e2   : > { %10320 = vst [vmem:[#allocation64_spill] sm:$0xff] %v9636_v2  ;;  %v7249_v52 = vpop.f32.mrf.mxu0 }
 0x2e3   : > { %10323 = vst [vmem:[#allocation67_spill] sm:$0xff] %v9644_v39  ;;  %v9646_v48 = vpop.f32.mrf.mxu1  ;;  %v9650_v40 = vadd.f32 %v7249_v52, %v3554_v0 }
 0x2e4   : > { %v3886_v24 = vpop.f32.mrf.mxu0 }
 0x2e5   : > { %10324 = vst [vmem:[#allocation68_spill] sm:$0xff] %v9650_v40  ;;  %v9652_v54 = vpop.f32.mrf.mxu1  ;;  %v9654_v51 = vadd.f32 %v3886_v24, %v3552_v46  ;;  %v9674_v24 = vpop.permute.xlu1 %5369 }
 0x2e6   : > { %v7252_v35 = vpop.f32.mrf.mxu0 }
 0x2e7   : > { %10325 = vst [vmem:[#allocation69_spill] sm:$0xff] %v9654_v51  ;;  %v9656_v34 = vpop.f32.mrf.mxu1  ;;  %v9660_v6 = vadd.f32 %v7252_v35, %v3557_v5  ;;  %v9680_v35 = vpop.permute.xlu0 %5379 }
 0x2e8   : > { %v3899_v39 = vpop.f32.mrf.mxu0 }
 0x2e9   : > { %10326 = vst [vmem:[#allocation70_spill] sm:$0xff] %v9660_v6  ;;  %v9662_v16 = vpop.f32.mrf.mxu1  ;;  %v9666_v49 = vadd.f32 %v3899_v39, %v3555_v14 }
 0x2ea   : > { %v7253_v52 = vpop.f32.mrf.mxu0 }
 0x2eb   : > { %10327 = vst [vmem:[#allocation71_spill] sm:$0xff] %v9666_v49  ;;  %v9668_v0 = vpop.f32.mrf.mxu1  ;;  %v9670_v40 = vadd.f32 %v7253_v52, %v3558_v31  ;;  %v9690_v52 = vpop.permute.xlu1 %5373 }
 0x2ec   : > { %v3902_v51 = vpop.f32.mrf.mxu0 }
 0x2ed   : > { %10328 = vst [vmem:[#allocation72_spill] sm:$0xff] %v9670_v40  ;;  %v9672_v46 = vpop.f32.mrf.mxu1  ;;  %v9676_v45 = vadd.f32 %v3902_v51, %v3556_v19  ;;  %v9696_v51 = vpop.permute.xlu0 %5383 }
 0x2ee   : > { %10329 = vst [vmem:[#allocation73_spill] sm:$0xff] %v9672_v46  ;;  %v7320_v6 = vpop.f32.mrf.mxu0  ;;  %v7794_v46 = vld [vmem:[%s8271_s16 + $0x78] sm:$0xff] }
 0x2ef   : > { %10330 = vst [vmem:[#allocation74_spill] sm:$0xff] %v9676_v45  ;;  %v9678_v5 = vpop.f32.mrf.mxu1  ;;  %v9682_v60 = vadd.f32 %v7320_v6, %v4303_v18 }
 0x2f0   : > { %10331 = vst [vmem:[#allocation75_spill] sm:$0xff] %v9678_v5  ;;  %v4561_v39 = vpop.f32.mrf.mxu0  ;;  %v7790_v5 = vld [vmem:[%s8271_s16 + $0x70] sm:$0xff] }
 0x2f1   : > { %10332 = vst [vmem:[#allocation76_spill] sm:$0xff] %v9682_v60  ;;  %v9684_v14 = vpop.f32.mrf.mxu1  ;;  %v9686_v49 = vadd.f32 %v4561_v39, %v4301_v62  ;;  %v9706_v62 = vpop.permute.xlu1 %5377 }
 0x2f2   : > { %10333 = vst [vmem:[#allocation77_spill] sm:$0xff] %v9684_v14  ;;  %v9692_v40 = vpop.f32.mrf.mxu0  ;;  %v9712_v60 = vpop.permute.xlu0 %5387 }
 0x2f3   : > { %10334 = vst [vmem:[#allocation78_spill] sm:$0xff] %v9686_v49  ;;  %v9688_v31 = vpop.f32.mrf.mxu1  ;;  %10336 = vst [vmem:[#allocation80_spill] sm:$0xff] %v9692_v40 }
 0x2f4   : > { %10335 = vst [vmem:[#allocation79_spill] sm:$0xff] %v9688_v31  ;;  %v9698_v45 = vpop.f32.mrf.mxu0 }
 0x2f5   : > { %v9694_v19 = vpop.f32.mrf.mxu1  ;;  %10338 = vst [vmem:[#allocation82_spill] sm:$0xff] %v9698_v45 }
 0x2f6   : > { %10337 = vst [vmem:[#allocation81_spill] sm:$0xff] %v9694_v19  ;;  %v9702_v18 = vpop.f32.mrf.mxu0  ;;  %v9728_v45 = vpop.permute.xlu0 %5391 }
 0x2f7   : > { %v9700_v4 = vpop.f32.mrf.mxu1 }
 0x2f8   : > { %10339 = vst [vmem:[#allocation83_spill] sm:$0xff] %v9700_v4  ;;  %v9708_v39 = vpop.f32.mrf.mxu0  ;;  %v9722_v4 = vpop.permute.xlu1 %5381 }
 0x2f9   : > { %v9704_v6 = vpop.f32.mrf.mxu1 }
 0x2fa   : > { %10340 = vst [vmem:[#allocation84_spill] sm:$0xff] %v9704_v6  ;;  %v9714_v17 = vpop.f32.mrf.mxu0  ;;  %v9744_v47 = vpop.permute.xlu0 %5395 }
 0x2fb   : > { %v9710_v49 = vpop.f32.mrf.mxu1 }
 0x2fc   : > { %10341 = vst [vmem:[#allocation85_spill] sm:$0xff] %v9710_v49  ;;  %v9718_v30 = vpop.f32.mrf.mxu0 }
 0x2fd   : > { %v9716_v38 = vpop.f32.mrf.mxu1 }
 0x2fe   : > { %10342 = vst [vmem:[#allocation86_spill] sm:$0xff] %v9716_v38  ;;  %v9724_v23 = vpop.f32.mrf.mxu0  ;;  %v9738_v38 = vpop.permute.xlu1 %5385 }
 0x2ff   : > { %v9720_v29 = vpop.f32.mrf.mxu1 }
 0x300   : > { %10343 = vst [vmem:[#allocation87_spill] sm:$0xff] %v9720_v29  ;;  %v9730_v2 = vpop.f32.mrf.mxu0 }
 0x301   : > { %v9726_v6 = vpop.f32.mrf.mxu1  ;;  %10345 = vst [vmem:[#allocation89_spill] sm:$0xff] %v9730_v2  ;;  %v7796_v2 = vld [vmem:[%s8271_s16 + $0x98] sm:$0xff] }
 0x302   : > { %10344 = vst [vmem:[#allocation88_spill] sm:$0xff] %v9726_v6  ;;  %v9734_v19 = vpop.f32.mrf.mxu0 }
 0x303   : > { %v9732_v49 = vpop.f32.mrf.mxu1  ;;  %10347 = vst [vmem:[#allocation91_spill] sm:$0xff] %v9734_v19 }
 0x304   : > { %10346 = vst [vmem:[#allocation90_spill] sm:$0xff] %v9732_v49  ;;  %v9740_v29 = vpop.f32.mrf.mxu0 }
 0x305   : > { %v9736_v28 = vpop.f32.mrf.mxu1  ;;  %10349 = vst [vmem:[#allocation93_spill] sm:$0xff] %v9740_v29 }
 0x306   : > { %10348 = vst [vmem:[#allocation92_spill] sm:$0xff] %v9736_v28  ;;  %v9746_v6 = vpop.f32.mrf.mxu0  ;;  %v9754_v28 = vpop.permute.xlu1 %5389 }
 0x307   : > { %v9742_v31 = vpop.f32.mrf.mxu1  ;;  %10351 = vst [vmem:[#allocation95_spill] sm:$0xff] %v9746_v6 }
 0x308   : > { %10350 = vst [vmem:[#allocation94_spill] sm:$0xff] %v9742_v31  ;;  %v9750_v3 = vpop.f32.mrf.mxu0  ;;  %v9760_v31 = vpop.permute.xlu0 %5399 }
 0x309   : > { %v9748_v40 = vpop.f32.mrf.mxu1  ;;  %10353 = vst [vmem:[#allocation97_spill] sm:$0xff] %v9750_v3 }
 0x30a   : > { %10352 = vst [vmem:[#allocation96_spill] sm:$0xff] %v9748_v40  ;;  %v9756_v19 = vpop.f32.mrf.mxu0 }
 0x30b   : > { %v9752_v49 = vpop.f32.mrf.mxu1  ;;  %10355 = vst [vmem:[#allocation99_spill] sm:$0xff] %v9756_v19  ;;  %v9773_v19 = vpop.permute.xlu1 %5393 }
 0x30c   : > { %10354 = vst [vmem:[#allocation98_spill] sm:$0xff] %v9752_v49  ;;  %v9762_v14 = vpop.f32.mrf.mxu0  ;;  %v7789_v49 = vld [vmem:[%s8271_s16 + $0x30] sm:$0xff] }
 0x30d   : > { %v9758_v29 = vpop.f32.mrf.mxu1  ;;  %10357 = vst [vmem:[#allocation101_spill] sm:$0xff] %v9762_v14  ;;  %v5465_v10 = vsel %vm543_vm0, %v7789_v49, %v8812_v27  ;;  %v5473_v14 = vsel %vm543_vm0, %v7790_v5, %v8844_v33  ;;  %v7793_v49 = vld [vmem:[%s8271_s16 + $0x38] sm:$0xff]  ;;  %v5474_v33 = vsel %vm543_vm0, %v7794_v46, %v9044_v1  ;;  %v7795_v5 = vld [vmem:[%s8271_s16 + $0xf0] sm:$0xff] }
 0x30e   : > { %10356 = vst [vmem:[#allocation100_spill] sm:$0xff] %v9758_v29  ;;  %v9766_v40 = vpop.f32.mrf.mxu0  ;;  %v5489_v56 = vsel %vm543_vm0, %v7795_v5, %v8978_v26  ;;  %v5498_v26 = vsel %vm5491_vm7, %v5465_v10, %v9042_v32  ;;  %v5506_v5 = vsel %vm5491_vm7, %v5473_v14, %v9083_v15 }
 0x30f   : > { %v9764_v6 = vpop.f32.mrf.mxu1  ;;  %10359 = vst [vmem:[#allocation103_spill] sm:$0xff] %v9766_v40  ;;  %v9835_v15 = vsel %vm5491_vm7, %v5489_v56, %v9605_v25  ;;  %v5398_v25 = vpop.permute.xlu1 %5397 }
 0x310   : > { %10358 = vst [vmem:[#allocation102_spill] sm:$0xff] %v9764_v6  ;;  %v9775_v29 = vpop.f32.mrf.mxu0  ;;  %v7791_v6 = vld [vmem:[%s8271_s16 + $0x90] sm:$0xff] }
 0x311   : > { %v9768_v3 = vpop.f32.mrf.mxu1  ;;  %10361 = vst [vmem:[#allocation105_spill] sm:$0xff] %v9775_v29  ;;  %v5477_v40 = vsel %vm543_vm0, %v7791_v6, %v8877_v21  ;;  %v5466_v29 = vsel %vm543_vm0, %v7793_v49, %v8969_v58  ;;  %v5404_v21 = vpop.permute.xlu0 %5403  ;;  %v7798_v49 = vld [vmem:[%s8271_s16 + $0xe8] sm:$0xff] }
 0x312   : > { %10360 = vst [vmem:[#allocation104_spill] sm:$0xff] %v9768_v3  ;;  %v7792_v3 = vld [vmem:[%s8271_s16 + $0xd0] sm:$0xff]  ;;  %v9797_v6 = vpop.f32.mrf.mxu0  ;;  %v9810_v1 = vsel %vm543_vm0, %v7798_v49, %v9150_v36  ;;  %v10369_v49 = vld [vmem:[#allocation41_spill] sm:$0xff] }
 0x313   : > { %v5485_v9 = vsel %vm543_vm0, %v7792_v3, %v8953_v37  ;;  %v9786_v27 = vpop.f32.mrf.mxu1  ;;  %v5478_v37 = vsel %vm543_vm0, %v7796_v2, %v9074_v7  ;;  %v7797_v3 = vld [vmem:[%s8271_s16 + $0xd8] sm:$0xff]  ;;  %10362 = vst [vmem:[#allocation106_spill] sm:$0xff] %v9810_v1  ;;  %v5510_v7 = vsel %vm5491_vm7, %v5477_v40, %v9104_v20  ;;  %v4307_v2 = vadd.f32 %v9640_v42, %v9564_v50  ;;  %v10365_v20 = vld [vmem:[#allocation23_spill] sm:$0xff]  ;;  %v10368_v42 = vld [vmem:[#allocation25_spill] sm:$0xff]  ;;  %s7939_s16 = sshll.u32 %s8038_s27, 4  ;;  %s7940_s16 = int_to_ptr.vmem [resolvable:$false] %s7939_s16 }
 0x314   : > { %v9805_v58 = vsel %vm543_vm0, %v7797_v3, %v9124_v8  ;;  %v9822_v8 = vsel %vm5491_vm7, %v5485_v9, %v9154_v13  ;;  %v9826_v36 = vpop.f32.mrf.mxu0  ;;  %v10364_v3 = vld [vmem:[#allocation33_spill] sm:$0xff]  ;;  %v9840_v10 = vsel %vm5524_vm8, %v10365_v20, %v9618_v43  ;;  %v10366_v13 = vld [vmem:[#allocation24_spill] sm:$0xff]  ;;  %v5529_v56 = vsel %vm5524_vm8, %v10368_v42, %v9648_v12  ;;  %v10371_v12 = vld [vmem:[#allocation27_spill] sm:$0xff]  ;;  %s7941_s7 = scalar_lea.vmem %s7940_s16, 4096  ;;  %p7942_p13 = scmp.lt.s32.totalorder %s10175_s20, %s7940_s16 }
 0x315   : > { %v9814_v46 = vpop.f32.mrf.mxu1  ;;  %v9831_v32 = vsel %vm543_vm0, %v9270_v44, %v10364_v3  ;;  %v9845_v50 = vsel %vm5524_vm8, %v10366_v13, %v9633_v41  ;;  %v5499_v44 = vsel %vm5491_vm7, %v5466_v29, %v9252_v22  ;;  %v4305_v40 = vadd.f32 %v9646_v48, %v9567_v61  ;;  %v10370_v22 = vld [vmem:[#allocation26_spill] sm:$0xff]  ;;  %v10372_v48 = vld [vmem:[#allocation28_spill] sm:$0xff]  ;;  %v10373_v13 = vld [vmem:[#allocation43_spill] sm:$0xff]  ;;  %p7943_p3 = scmp.lt.s32.totalorder %s7941_s7, %s7935_s9 }
 0x316   : > { %10363 = vst [vmem:[#allocation107_spill] sm:$0xff] %v9814_v46  ;;  %v4694_v43 = vadd.f32 %v9702_v18, %v4307_v2  ;;  %v9857_v14 = vpop.f32.mrf.mxu0  ;;  %v5507_v41 = vsel %vm5491_vm7, %v5474_v33, %v10369_v49  ;;  %v5531_v3 = vsel %vm5524_vm8, %v5498_v26, %v9664_v55  ;;  %v9866_v29 = vsel %vm5524_vm8, %v10370_v22, %v9680_v35  ;;  %v5408_v2 = vpop.permute.xlu0 %5407  ;;  %v10374_v49 = vld [vmem:[#allocation29_spill] sm:$0xff]  ;;  %v10378_v22 = vld [vmem:[#allocation31_spill] sm:$0xff] }
 0x317   : > { %v9847_v9 = vpop.f32.mrf.mxu1  ;;  %v5535_v20 = vsel %vm5524_vm8, %v10371_v12, %v9696_v51  ;;  %v9874_v18 = vsel %vm5524_vm8, %v10372_v48, %v9712_v60  ;;  %v4308_v33 = vadd.f32 %v9652_v54, %v9570_v11  ;;  %v4692_v55 = vadd.f32 %v9708_v39, %v4305_v40  ;;  %p7944_p5 = por %p7943_p3, %p7942_p13 }
 0x318   : > { %10367 = vst [vmem:[#allocation33_spill] sm:$0xff] %v9847_v9  ;;  %v9879_v26 = vpop.f32.mrf.mxu0  ;;  %v5511_v42 = vsel %vm5491_vm7, %v5478_v37, %v10373_v13  ;;  %v9885_v51 = vsel %vm5524_vm8, %v5506_v5, %v9728_v45  ;;  %v9890_v60 = vsel %vm5524_vm8, %v10374_v49, %v9744_v47  ;;  %v9894_v11 = vsel %vm5524_vm8, %v5510_v7, %v9760_v31  ;;  %v9904_v45 = vld [vmem:[%s10232_s6] ss:$0 sm:$0xff]  ;;  %v10376_v7 = vld [vmem:[#allocation36_spill] sm:$0xff] }
 0x319   : > { %v7372_v61 = vpop.f32.mrf.mxu1  ;;  %v4306_v39 = vadd.f32 %v9656_v34, %v9573_v57  ;;  %v4695_v40 = vadd.f32 %v9714_v17, %v4308_v33  ;;  %v9914_v57 = vsel %vm5524_vm8, %v10376_v7, %v9674_v24  ;;  %v10377_v17 = vld [vmem:[#allocation30_spill] sm:$0xff]  ;;  %v9922_v12 = vsel %vm5524_vm8, %v10378_v22, %v5408_v2  ;;  %p7945_p4 = pnand %p7944_p5, %p7938_p9 }
 0x31a   : > { %v5081_v35 = vadd.f32 %v7372_v61, %v4694_v43  ;;  %v9899_v37 = vpop.f32.mrf.mxu0  ;;  %v10375_v43 = vld [vmem:[#allocation35_spill] sm:$0xff]  ;;  %v9918_v34 = vsel %vm5524_vm8, %v10377_v17, %v5404_v21  ;;  %v5402_v61 = vpop.permute.xlu1 %5401  ;;  %v4311_v48 = vadd.f32 %v9662_v16, %v9576_v59  ;;  %v5532_v2 = vsel %vm5524_vm8, %v5499_v44, %v9706_v62  ;;  %v10382_v44 = vld [vmem:[#allocation40_spill] sm:$0xff]  ;;  %v10384_v22 = vld [vmem:[#allocation42_spill] sm:$0xff] }
 0x31b   : > { %v4964_v54 = vpop.f32.mrf.mxu1  ;;  %v9909_v31 = vsel %vm5524_vm8, %v10375_v43, %v9658_v53  ;;  %v4693_v53 = vadd.f32 %v9718_v30, %v4306_v39  ;;  %v4309_v13 = vadd.f32 %v9668_v0, %v9579_v63  ;;  %v10380_v30 = vld [vmem:[#allocation38_spill] sm:$0xff]  ;;  %v9949_v63 = vsel %vm5524_vm8, %v10382_v44, %v9754_v28  ;;  %v10391_v44 = vld [vmem:[#allocation91_spill] sm:$0xff] }
 0x31c   : > { %v5563_v5 = vadd.f32 %v5531_v3, %v5081_v35  ;;  %v5079_v47 = vadd.f32 %v4964_v54, %v4692_v55  ;;  %v9927_v33 = vpop.f32.mrf.mxu0  ;;  %v10379_v35 = vld [vmem:[#allocation37_spill] sm:$0xff]  ;;  %v5534_v16 = vsel %vm5524_vm8, %v10380_v30, %v9722_v4  ;;  %v9953_v0 = vsel %vm5524_vm8, %v5507_v41, %v9773_v19  ;;  %v10387_v41 = vld [vmem:[#allocation48_spill] sm:$0xff] }
 0x31d   : > { %v7373_v3 = vpop.f32.mrf.mxu1  ;;  %v5530_v21 = vsel %vm5524_vm8, %v10379_v35, %v9690_v52  ;;  %v10383_v4 = vld [vmem:[#allocation89_spill] sm:$0xff]  ;;  %v9963_v28 = vsel %vm5524_vm8, %v10384_v22, %v5398_v25 }
 0x31e   : > { %v5561_v55 = vadd.f32 %v5529_v56, %v5079_v47  ;;  %v5082_v24 = vadd.f32 %v7373_v3, %v4695_v40  ;;  %v5601_v49 = vadd.f32 %v9904_v45, %v5563_v5  ;;  %v4698_v56 = vadd.f32 %v9724_v23, %v4311_v48  ;;  %v9941_v54 = vpop.f32.mrf.mxu0  ;;  %v10381_v40 = vld [vmem:[#allocation39_spill] sm:$0xff]  ;;  %v10386_v48 = vld [vmem:[#allocation73_spill] sm:$0xff] }
 0x31f   : > { %v4967_v59 = vpop.f32.mrf.mxu1  ;;  %v5536_v62 = vsel %vm5524_vm8, %v10381_v40, %v9738_v38  ;;  %v4696_v5 = vadd.f32 %v10383_v4, %v4309_v13  ;;  %v10385_v3 = vld [vmem:[#allocation47_spill] sm:$0xff]  ;;  %v10389_v25 = vld [vmem:[#allocation49_spill] sm:$0xff] }
 0x320   : > { %v5564_v39 = vadd.f32 %v5532_v2, %v5082_v24  ;;  %v5080_v52 = vadd.f32 %v4967_v59, %v4693_v53  ;;  %v5599_v47 = vadd.f32 %v9904_v45, %v5561_v55  ;;  %v9959_v7 = vpop.f32.mrf.mxu0  ;;  %v4312_v19 = vadd.f32 %v10386_v48, %v10385_v3  ;;  %v10388_v53 = vld [vmem:[#allocation75_spill] sm:$0xff]  ;;  %v5406_v55 = vpop.permute.xlu1 %5405 }
 0x321   : > { %v7376_v23 = vpop.f32.mrf.mxu1  ;;  %v4310_v24 = vadd.f32 %v10388_v53, %v10387_v41  ;;  %v5633_v35 = vmax.f32 %v5601_v49, 0.0  ;;  %v10396_v53 = vld [vmem:[#allocation50_spill] sm:$0xff] }
 0x322   : > { %v5602_v43 = vadd.f32 %v9904_v45, %v5564_v39  ;;  %v5562_v38 = vadd.f32 %v5530_v21, %v5080_v52  ;;  %v5085_v17 = vadd.f32 %v7376_v23, %v4698_v56  ;;  %v9970_v30 = vpop.f32.mrf.mxu0  ;;  %v9973_v39 = vsel %vm5524_vm8, %v5511_v42, %v5402_v61  ;;  %v10390_v52 = vld [vmem:[#allocation77_spill] sm:$0xff]  ;;  %v10394_v61 = vld [vmem:[#allocation62_spill] sm:$0xff] }
 0x323   : > { %v4980_v2 = vpop.f32.mrf.mxu1  ;;  %v4315_v40 = vadd.f32 %v10390_v52, %v10389_v25  ;;  %v4699_v4 = vadd.f32 %v10391_v44, %v4312_v19  ;;  %v10392_v23 = vld [vmem:[#allocation93_spill] sm:$0xff]  ;;  %v5631_v3 = vmax.f32 %v5599_v47, 0.0  ;;  %v10397_v19 = vld [vmem:[#allocation79_spill] sm:$0xff]  ;;  %v10401_v44 = vld [vmem:[#allocation64_spill] sm:$0xff] }
 0x324   : > { %v5634_v13 = vmax.f32 %v5602_v43, 0.0  ;;  %v5600_v59 = vadd.f32 %v9904_v45, %v5562_v38  ;;  %v5567_v21 = vadd.f32 %v5535_v20, %v5085_v17  ;;  %v5083_v56 = vadd.f32 %v4980_v2, %v4696_v5  ;;  %v9979_v38 = vpop.f32.mrf.mxu0  ;;  %v10393_v5 = vld [vmem:[#allocation44_spill] sm:$0xff]  ;;  %v10398_v47 = vld [vmem:[#allocation51_spill] sm:$0xff] }
 0x325   : > { %v4697_v49 = vadd.f32 %v10392_v23, %v4310_v24  ;;  %v7377_v22 = vpop.f32.mrf.mxu1  ;;  %v9984_v42 = vsel %vm5524_vm8, %v10393_v5, %v5406_v55  ;;  %v10395_v17 = vld [vmem:[#allocation80_spill] sm:$0xff]  ;;  %v4313_v2 = vadd.f32 %v10397_v19, %v10396_v53  ;;  %v10402_v23 = vld [vmem:[#allocation82_spill] sm:$0xff]  ;;  %v10405_v19 = vld [vmem:[#allocation97_spill] sm:$0xff] }
 0x326   : > { %v6595_v43 = vpack.c.bf16 %v5634_v13, %v5633_v35  ;;  %v5632_v48 = vmax.f32 %v5600_v59, 0.0  ;;  %v5565_v20 = vadd.f32 %v9866_v29, %v5083_v56  ;;  %v9988_v41 = vadd.f32 %v10395_v17, %v10394_v61  ;;  %v10399_v35 = vld [vmem:[#allocation81_spill] sm:$0xff]  ;;  %v10400_v59 = vld [vmem:[#allocation95_spill] sm:$0xff]  ;;  %v10000_v55 = vpop.f32.mrf.mxu0 }
 0x327   : > { %v5086_v24 = vadd.f32 %v7377_v22, %v4699_v4  ;;  %v4983_v25 = vpop.f32.mrf.mxu1  ;;  %v4316_v13 = vadd.f32 %v10399_v35, %v10398_v47  ;;  %v4702_v52 = vadd.f32 %v10400_v59, %v4315_v40  ;;  %v10004_v5 = vadd.f32 %v10402_v23, %v10401_v44  ;;  %v10403_v4 = vld [vmem:[#allocation52_spill] sm:$0xff]  ;;  %v10404_v22 = vld [vmem:[#allocation83_spill] sm:$0xff]  ;;  %v10409_v44 = vld [vmem:[#allocation54_spill] sm:$0xff] }
 0x328   : > { %6677 = vst [vmem:[%s9997_s18 + $0x18] sm:$0xff] %v6595_v43   ;;  %v6590_v29 = vpack.c.bf16 %v5632_v48, %v5631_v3  ;;  %v5084_v56 = vadd.f32 %v4983_v25, %v4697_v49  ;;  %v4314_v61 = vadd.f32 %v10404_v22, %v10403_v4  ;;  %v5605_v17 = vadd.f32 %v9904_v45, %v5567_v21  ;;  %v10012_v3 = vpop.f32.mrf.mxu0  ;;  %v10407_v25 = vld [vmem:[#allocation53_spill] sm:$0xff]  ;;  %v10408_v35 = vld [vmem:[#allocation84_spill] sm:$0xff]  ;;  %v10411_v4 = vld [vmem:[#allocation55_spill] sm:$0xff] }
 0x329   : > { %v5568_v40 = vadd.f32 %v5536_v62, %v5086_v24  ;;  %v7380_v53 = vpop.f32.mrf.mxu1  ;;  %v4700_v47 = vadd.f32 %v10405_v19, %v4313_v2  ;;  %v5603_v43 = vadd.f32 %v9904_v45, %v5565_v20  ;;  %10406 = vst [vmem:[#allocation23_spill] sm:$0xff] %v10012_v3  ;;  %v4319_v59 = vadd.f32 %v10408_v35, %v10407_v25  ;;  %v10410_v23 = vld [vmem:[#allocation85_spill] sm:$0xff]  ;;  %v10412_v22 = vld [vmem:[#allocation86_spill] sm:$0xff]  ;;  %v10413_v2 = vld [vmem:[#allocation99_spill] sm:$0xff] }
 0x32a   : > { %6676 = vst [vmem:[%s9997_s18 + $0x10] sm:$0xff] %v6590_v29   ;;  %v5566_v48 = vadd.f32 %v5534_v16, %v5084_v56  ;;  %v5089_v49 = vadd.f32 %v7380_v53, %v4702_v52  ;;  %v4317_v1 = vadd.f32 %v10410_v23, %v10409_v44  ;;  %v4320_v21 = vadd.f32 %v10412_v22, %v10411_v4  ;;  %v10023_v19 = vpop.f32.mrf.mxu0  ;;  %v10415_v56 = vld [vmem:[#allocation57_spill] sm:$0xff]  ;;  %v10416_v53 = vld [vmem:[#allocation87_spill] sm:$0xff]  ;;  %v10417_v35 = vld [vmem:[#allocation58_spill] sm:$0xff] }
 0x32b   : > { %v5606_v62 = vadd.f32 %v9904_v45, %v5568_v40  ;;  %v4996_v24 = vpop.f32.mrf.mxu1  ;;  %v4703_v29 = vadd.f32 %v10413_v2, %v4316_v13  ;;  %10414 = vst [vmem:[#allocation24_spill] sm:$0xff] %v10023_v19  ;;  %v4318_v25 = vadd.f32 %v10416_v53, %v10415_v56  ;;  %v10418_v44 = vld [vmem:[#allocation88_spill] sm:$0xff]  ;;  %v5637_v9 = vmax.f32 %v5605_v17, 0.0  ;;  %v10420_v19 = vld [vmem:[#allocation59_spill] sm:$0xff]  ;;  %v10424_v53 = vld [vmem:[#allocation101_spill] sm:$0xff] }
 0x32c   : > { %v5604_v20 = vadd.f32 %v9904_v45, %v5566_v48  ;;  %v5571_v16 = vadd.f32 %v9885_v51, %v5089_v49  ;;  %v5087_v52 = vadd.f32 %v4996_v24, %v4700_v47  ;;  %v4323_v23 = vadd.f32 %v10418_v44, %v10417_v35  ;;  %v10030_v13 = vpop.f32.mrf.mxu0  ;;  %v10421_v51 = vld [vmem:[#allocation90_spill] sm:$0xff]  ;;  %v10422_v49 = vld [vmem:[#allocation61_spill] sm:$0xff]  ;;  %v10423_v24 = vld [vmem:[#allocation92_spill] sm:$0xff] }
 0x32d   : > { %v5638_v4 = vmax.f32 %v5606_v62, 0.0  ;;  %v7381_v22 = vpop.f32.mrf.mxu1  ;;  %v5635_v40 = vmax.f32 %v5603_v43, 0.0  ;;  %10419 = vst [vmem:[#allocation25_spill] sm:$0xff] %v10030_v13  ;;  %v4321_v47 = vadd.f32 %v10421_v51, %v10420_v19  ;;  %v10037_v56 = vadd.f32 %v10423_v24, %v10422_v49  ;;  %v10425_v43 = vld [vmem:[#allocation103_spill] sm:$0xff]  ;;  %v10429_v51 = vld [vmem:[#allocation96_spill] sm:$0xff] }
 0x32e   : > { %v5636_v3 = vmax.f32 %v5604_v20, 0.0  ;;  %v5569_v48 = vadd.f32 %v9874_v18, %v5087_v52  ;;  %v5090_v2 = vadd.f32 %v7381_v22, %v4703_v29  ;;  %v4701_v35 = vadd.f32 %v10424_v53, %v4314_v61  ;;  %v7368_v46 = vpop.f32.mrf.mxu0  ;;  %v10426_v29 = vld [vmem:[#allocation63_spill] sm:$0xff]  ;;  %v10427_v52 = vld [vmem:[#allocation94_spill] sm:$0xff]  ;;  %v10428_v22 = vld [vmem:[#allocation65_spill] sm:$0xff]  ;;  %v10057_v53 = vpop.permute.xlu0 %5411 }
 0x32f   : > { %v6605_v17 = vpack.c.bf16 %v5638_v4, %v5637_v9  ;;  %v4999_v62 = vpop.f32.mrf.mxu1  ;;  %v4706_v20 = vadd.f32 %v10425_v43, %v4319_v59  ;;  %v5609_v13 = vadd.f32 %v9904_v45, %v5571_v16  ;;  %v10045_v19 = vadd.f32 %v10427_v52, %v10426_v29  ;;  %v10430_v61 = vld [vmem:[#allocation76_spill] sm:$0xff]  ;;  %v10431_v59 = vld [vmem:[#allocation105_spill] sm:$0xff] }
 0x330   : > { %v6600_v44 = vpack.c.bf16 %v5636_v3, %v5635_v40  ;;  %v5572_v18 = vadd.f32 %v9953_v0, %v5090_v2  ;;  %v10049_v49 = vadd.f32 %v10429_v51, %v10428_v22  ;;  %v5077_v9 = vadd.f32 %v7368_v46, %v10430_v61  ;;  %v4948_v40 = vpop.f32.mrf.mxu0 }
 0x331   : > { %6679 = vst [vmem:[%s9997_s18 + $0x28] sm:$0xff] %v6605_v17   ;;  %v5088_v4 = vadd.f32 %v4999_v62, %v4701_v35  ;;  %v7384_v24 = vpop.f32.mrf.mxu1  ;;  %v4704_v3 = vadd.f32 %v10431_v59, %v4317_v1  ;;  %v4707_v16 = vadd.f32 %v9797_v6, %v4320_v21  ;;  %v5607_v43 = vadd.f32 %v9904_v45, %v5569_v48  ;;  %v10432_v17 = vld [vmem:[#allocation78_spill] sm:$0xff]  ;;  %v5410_v62 = vpop.permute.xlu1 %5409 }
 0x332   : > { %6678 = vst [vmem:[%s9997_s18 + $0x20] sm:$0xff] %v6600_v44   ;;  %v5610_v0 = vadd.f32 %v9904_v45, %v5572_v18  ;;  %v5093_v2 = vadd.f32 %v7384_v24, %v4706_v20  ;;  %v5559_v29 = vadd.f32 %v9845_v50, %v5077_v9  ;;  %v5075_v52 = vadd.f32 %v4948_v40, %v10432_v17  ;;  %v7369_v6 = vpop.f32.mrf.mxu0 }
 0x333   : > { %v5570_v46 = vadd.f32 %v9949_v63, %v5088_v4  ;;  %v5012_v35 = vpop.f32.mrf.mxu1  ;;  %v5641_v1 = vmax.f32 %v5609_v13, 0.0  ;;  %v5078_v50 = vadd.f32 %v7369_v6, %v9988_v41  ;;  %v4705_v63 = vadd.f32 %v9826_v36, %v4318_v25 }
 0x334   : > { %v5642_v22 = vmax.f32 %v5610_v0, 0.0  ;;  %v5575_v21 = vadd.f32 %v9894_v11, %v5093_v2  ;;  %v5091_v44 = vadd.f32 %v5012_v35, %v4704_v3  ;;  %v5597_v20 = vadd.f32 %v9904_v45, %v5559_v29  ;;  %v4951_v9 = vpop.f32.mrf.mxu0  ;;  %v5416_v29 = vpop.permute.xlu0 %5415 }
 0x335   : > { %v5557_v18 = vadd.f32 %v9840_v10, %v5075_v52  ;;  %v5608_v48 = vadd.f32 %v9904_v45, %v5570_v46  ;;  %v7385_v51 = vpop.f32.mrf.mxu1  ;;  %v5639_v24 = vmax.f32 %v5607_v43, 0.0  ;;  %v5560_v59 = vadd.f32 %v9914_v57, %v5078_v50  ;;  %v10078_v57 = vpop.permute.xlu1 %5413 }
 0x336   : > { %v6615_v61 = vpack.c.bf16 %v5642_v22, %v5641_v1  ;;  %v5573_v13 = vadd.f32 %v9890_v60, %v5091_v44  ;;  %v5094_v4 = vadd.f32 %v7385_v51, %v4707_v16  ;;  %v5613_v3 = vadd.f32 %v9904_v45, %v5575_v21 }
 0x337   : > { %v5640_v11 = vmax.f32 %v5608_v48, 0.0  ;;  %v5015_v10 = vpop.f32.mrf.mxu1  ;;  %v4710_v0 = vadd.f32 %v9857_v14, %v4323_v23  ;;  %v4708_v41 = vadd.f32 %v9879_v26, %v4321_v47  ;;  %v5076_v36 = vadd.f32 %v4951_v9, %v10004_v5 }
 0x338   : > { %6681 = vst [vmem:[%s9997_s18 + $0x38] sm:$0xff] %v6615_v61   ;;  %v5576_v25 = vadd.f32 %v9973_v39, %v5094_v4  ;;  %v5629_v40 = vmax.f32 %v5597_v20, 0.0  ;;  %v5598_v16 = vadd.f32 %v9904_v45, %v5560_v59  ;;  %v5092_v2 = vadd.f32 %v5015_v10, %v4705_v63  ;;  %v10433_v63 = vld [vmem:[#allocation45_spill] sm:$0xff]  ;;  %v10435_v4 = vld [vmem:[#allocation98_spill] sm:$0xff] }
 0x339   : > { %v6610_v60 = vpack.c.bf16 %v5640_v11, %v5639_v24  ;;  %v7388_v43 = vpop.f32.mrf.mxu1  ;;  %v5595_v17 = vadd.f32 %v9904_v45, %v5557_v18  ;;  %v5558_v14 = vadd.f32 %v9909_v31, %v5076_v36  ;;  %v5645_v47 = vmax.f32 %v5613_v3, 0.0  ;;  %v10437_v3 = vld [vmem:[#allocation100_spill] sm:$0xff] }
 0x33a   : > { %v5614_v26 = vadd.f32 %v9904_v45, %v5576_v25  ;;  %v5097_v23 = vadd.f32 %v7388_v43, %v4710_v0  ;;  %v5630_v5 = vmax.f32 %v5598_v16, 0.0  ;;  %v5611_v39 = vadd.f32 %v9904_v45, %v5573_v13  ;;  %v10434_v13 = vld [vmem:[#allocation67_spill] sm:$0xff]  ;;  %v10439_v43 = vld [vmem:[#allocation32_spill] sm:$0xff] }
 0x33b   : > { %6680 = vst [vmem:[%s9997_s18 + $0x30] sm:$0xff] %v6610_v60   ;;  %v5574_v52 = vadd.f32 %v9963_v28, %v5092_v2  ;;  %v5028_v46 = vpop.f32.mrf.mxu1  ;;  %v5596_v35 = vadd.f32 %v9904_v45, %v5558_v14  ;;  %v4711_v31 = vadd.f32 %v9899_v37, %v10037_v56  ;;  %v4709_v21 = vadd.f32 %v9927_v33, %v10045_v19  ;;  %v5418_v33 = vpop.permute.xlu1 %5417 }
 0x33c   : > { %v5646_v1 = vmax.f32 %v5614_v26, 0.0  ;;  %v5579_v22 = vadd.f32 %v9922_v12, %v5097_v23  ;;  %v5095_v6 = vadd.f32 %v5028_v46, %v4708_v41  ;;  %v6585_v44 = vpack.c.bf16 %v5630_v5, %v5629_v40  ;;  %v10097_v19 = vpop.permute.xlu0 %5419  ;;  %v10442_v46 = vld [vmem:[#allocation70_spill] sm:$0xff] }
 0x33d   : > { %v5612_v20 = vadd.f32 %v9904_v45, %v5574_v52  ;;  %v7389_v18 = vpop.f32.mrf.mxu1  ;;  %v5627_v28 = vmax.f32 %v5595_v17, 0.0  ;;  %v5628_v48 = vmax.f32 %v5596_v35, 0.0  ;;  %v5548_v12 = vsel %vm5524_vm8, %v10433_v63, %v5410_v62  ;;  %v10436_v62 = vld [vmem:[#allocation68_spill] sm:$0xff]  ;;  %v10441_v52 = vld [vmem:[#allocation102_spill] sm:$0xff] }
 0x33e   : > { %v6625_v50 = vpack.c.bf16 %v5646_v1, %v5645_v47  ;;  %v5577_v51 = vadd.f32 %v9918_v34, %v5095_v6  ;;  %6675 = vst [vmem:[%s9997_s18 + $0x8] sm:$0xff] %v6585_v44   ;;  %v5643_v61 = vmax.f32 %v5611_v39, 0.0  ;;  %v5098_v37 = vadd.f32 %v7389_v18, %v4711_v31  ;;  %v10440_v39 = vld [vmem:[#allocation69_spill] sm:$0xff]  ;;  %v10443_v35 = vld [vmem:[#allocation104_spill] sm:$0xff]  ;;  %v10444_v18 = vld [vmem:[#allocation71_spill] sm:$0xff] }
 0x33f   : > { %v5644_v9 = vmax.f32 %v5612_v20, 0.0  ;;  %v5031_v56 = vpop.f32.mrf.mxu1  ;;  %v4325_v24 = vadd.f32 %v10435_v4, %v10434_v13  ;;  %v4714_v11 = vadd.f32 %v9941_v54, %v10049_v49  ;;  %v6580_v59 = vpack.c.bf16 %v5628_v48, %v5627_v28  ;;  %v10438_v49 = vld [vmem:[#allocation56_spill] sm:$0xff] }
 0x340   : > { %6683 = vst [vmem:[%s9997_s18 + $0x48] sm:$0xff] %v6625_v50   ;;  %v5096_v34 = vadd.f32 %v5031_v56, %v4709_v21  ;;  %v4328_v10 = vadd.f32 %v10437_v3, %v10436_v62  ;;  %v5617_v41 = vadd.f32 %v9904_v45, %v5579_v22  ;;  %v5580_v36 = vadd.f32 %v5548_v12, %v5098_v37  ;;  %v10445_v37 = vld [vmem:[#allocation66_spill] sm:$0xff]  ;;  %v10446_v13 = vld [vmem:[#allocation72_spill] sm:$0xff] }
 0x341   : > { %v6620_v0 = vpack.c.bf16 %v5644_v9, %v5643_v61  ;;  %v7392_v25 = vpop.f32.mrf.mxu1  ;;  %v4712_v40 = vadd.f32 %v9959_v7, %v4325_v24  ;;  %6581 = vst [vmem:[%s9997_s18] sm:$0xff] %v6580_v59   ;;  %v5615_v60 = vadd.f32 %v9904_v45, %v5577_v51  ;;  %v5519_v2 = vsel %vm5491_vm7, %v9805_v58, %v10438_v49  ;;  %v10449_v59 = vld [vmem:[#allocation23_spill] sm:$0xff] }
 0x342   : > { %v5578_v16 = vadd.f32 %v9984_v42, %v5096_v34  ;;  %v5101_v54 = vadd.f32 %v7392_v25, %v4714_v11  ;;  %v5549_v17 = vsel %vm5524_vm8, %v10439_v43, %v10057_v53  ;;  %v5551_v14 = vsel %vm5524_vm8, %v9822_v8, %v5416_v29  ;;  %v5422_v8 = vpop.permute.xlu1 %5421  ;;  %v5424_v29 = vpop.permute.xlu0 %5423  ;;  %v10448_v11 = vld [vmem:[#allocation46_spill] sm:$0xff] }
 0x343   : > { %6682 = vst [vmem:[%s9997_s18 + $0x40] sm:$0xff] %v6620_v0   ;;  %v5618_v7 = vadd.f32 %v9904_v45, %v5580_v36  ;;  %v5044_v26 = vpop.f32.mrf.mxu1  ;;  %v4715_v23 = vadd.f32 %v9970_v30, %v4328_v10  ;;  %v4326_v58 = vadd.f32 %v10441_v52, %v10440_v39  ;;  %v4331_v1 = vadd.f32 %v10443_v35, %v10442_v46  ;;  %v10451_v10 = vld [vmem:[#allocation33_spill] sm:$0xff]  ;;  %v10454_v43 = vld [vmem:[#allocation106_spill] sm:$0xff] }
 0x344   : > { %v5616_v42 = vadd.f32 %v9904_v45, %v5578_v16  ;;  %v5583_v5 = vadd.f32 %v5551_v14, %v5101_v54  ;;  %v5099_v47 = vadd.f32 %v5044_v26, %v4712_v40  ;;  %v5649_v53 = vmax.f32 %v5617_v41, 0.0  ;;  %v10455_v14 = vld [vmem:[#allocation34_spill] sm:$0xff] }
 0x345   : > { %v5650_v22 = vmax.f32 %v5618_v7, 0.0  ;;  %v7393_v6 = vpop.f32.mrf.mxu1  ;;  %v5647_v31 = vmax.f32 %v5615_v60, 0.0  ;;  %v5552_v20 = vsel %vm5524_vm8, %v5519_v2, %v5418_v33  ;;  %v4329_v28 = vadd.f32 %v9786_v27, %v10444_v18  ;;  %v10447_v27 = vld [vmem:[#allocation107_spill] sm:$0xff]  ;;  %v10453_v2 = vld [vmem:[#allocation60_spill] sm:$0xff] }
 0x346   : > { %v5648_v21 = vmax.f32 %v5616_v42, 0.0  ;;  %v5581_v44 = vadd.f32 %v5549_v17, %v5099_v47  ;;  %v5102_v30 = vadd.f32 %v7393_v6, %v4715_v23  ;;  %v4713_v48 = vadd.f32 %v9979_v38, %v4326_v58  ;;  %v5426_v60 = vpop.permute.xlu1 %5425  ;;  %v10456_v42 = vld [vmem:[#allocation25_spill] sm:$0xff] }
 0x347   : > { %v6635_v50 = vpack.c.bf16 %v5650_v22, %v5649_v53  ;;  %v5047_v51 = vpop.f32.mrf.mxu1  ;;  %v4718_v63 = vadd.f32 %v10000_v55, %v4331_v1  ;;  %v5621_v61 = vadd.f32 %v9904_v45, %v5583_v5  ;;  %v5523_v56 = vsel %vm5491_vm7, %v9831_v32, %v10445_v37  ;;  %v10450_v32 = vld [vmem:[#allocation74_spill] sm:$0xff] }
 0x348   : > { %v6630_v12 = vpack.c.bf16 %v5648_v21, %v5647_v31  ;;  %v5584_v9 = vadd.f32 %v5552_v20, %v5102_v30  ;;  %v5555_v33 = vsel %vm5524_vm8, %v9835_v15, %v5424_v29  ;;  %v4332_v4 = vadd.f32 %v10447_v27, %v10446_v13  ;;  %v10452_v15 = vld [vmem:[#allocation24_spill] sm:$0xff] }
 0x349   : > { %6685 = vst [vmem:[%s9997_s18 + $0x58] sm:$0xff] %v6635_v50   ;;  %v5100_v38 = vadd.f32 %v5047_v51, %v4713_v48  ;;  %v7396_v24 = vpop.f32.mrf.mxu1  ;;  %v5550_v55 = vsel %vm5524_vm8, %v10448_v11, %v10078_v57  ;;  %v4716_v34 = vadd.f32 %v10449_v59, %v4329_v28  ;;  %v4330_v0 = vadd.f32 %v10451_v10, %v10450_v32 }
 0x34a   : > { %6684 = vst [vmem:[%s9997_s18 + $0x50] sm:$0xff] %v6630_v12   ;;  %v5622_v62 = vadd.f32 %v9904_v45, %v5584_v9  ;;  %v5105_v3 = vadd.f32 %v7396_v24, %v4718_v63  ;;  %v4719_v41 = vadd.f32 %v10452_v15, %v4332_v4  ;;  %v5619_v36 = vadd.f32 %v9904_v45, %v5581_v44 }
 0x34b   : > { %v5582_v25 = vadd.f32 %v5550_v55, %v5100_v38  ;;  %v5060_v40 = vpop.f32.mrf.mxu1  ;;  %v5653_v16 = vmax.f32 %v5621_v61, 0.0  ;;  %v5521_v17 = vsel %vm5491_vm7, %v10454_v43, %v10453_v2  ;;  %v5553_v7 = vsel %vm5524_vm8, %v10455_v14, %v10097_v19 }
 0x34c   : > { %v5654_v54 = vmax.f32 %v5622_v62, 0.0  ;;  %v5587_v57 = vadd.f32 %v5555_v33, %v5105_v3  ;;  %v5103_v49 = vadd.f32 %v5060_v40, %v4716_v34  ;;  %v4717_v5 = vadd.f32 %v10456_v42, %v4330_v0 }
 0x34d   : > { %v5620_v26 = vadd.f32 %v9904_v45, %v5582_v25  ;;  %v7397_v23 = vpop.f32.mrf.mxu1  ;;  %v5556_v58 = vsel %vm5524_vm8, %v5523_v56, %v5426_v60  ;;  %v5651_v46 = vmax.f32 %v5619_v36, 0.0  ;;  %v5554_v6 = vsel %vm5524_vm8, %v5521_v17, %v5422_v8 }
 0x34e   : > { %v6645_v47 = vpack.c.bf16 %v5654_v54, %v5653_v16  ;;  %v5585_v39 = vadd.f32 %v5553_v7, %v5103_v49  ;;  %v5106_v52 = vadd.f32 %v7397_v23, %v4719_v41  ;;  %v5625_v53 = vadd.f32 %v9904_v45, %v5587_v57 }
 0x34f   : > { %v5652_v35 = vmax.f32 %v5620_v26, 0.0  ;;  %v5063_v1 = vpop.f32.mrf.mxu1 }
 0x350   : > { %6687 = vst [vmem:[%s9997_s18 + $0x68] sm:$0xff] %v6645_v47   ;;  %v5588_v19 = vadd.f32 %v5556_v58, %v5106_v52  ;;  %v5104_v22 = vadd.f32 %v5063_v1, %v4717_v5  ;;  %v5623_v31 = vadd.f32 %v9904_v45, %v5585_v39  ;;  %v5657_v30 = vmax.f32 %v5625_v53, 0.0 }
 0x351   : > { %v6640_v29 = vpack.c.bf16 %v5652_v35, %v5651_v46 }
 0x352   : > { %v5626_v21 = vadd.f32 %v9904_v45, %v5588_v19  ;;  %v5586_v44 = vadd.f32 %v5554_v6, %v5104_v22  ;;  %v5655_v28 = vmax.f32 %v5623_v31, 0.0 }
 0x353   : > { %6686 = vst [vmem:[%s9997_s18 + $0x60] sm:$0xff] %v6640_v29  }
 0x354   : > { %v5658_v20 = vmax.f32 %v5626_v21, 0.0  ;;  %v5624_v18 = vadd.f32 %v9904_v45, %v5586_v44 }
 0x356   : > { %v6655_v48 = vpack.c.bf16 %v5658_v20, %v5657_v30  ;;  %v5656_v50 = vmax.f32 %v5624_v18, 0.0 }
 0x358   : > { %6689 = vst [vmem:[%s9997_s18 + $0x78] sm:$0xff] %v6655_v48   ;;  %v6650_v8 = vpack.c.bf16 %v5656_v50, %v5655_v28 }
 0x35a   : > { %6688 = vst [vmem:[%s9997_s18 + $0x70] sm:$0xff] %v6650_v8  }
 0x35b   : > { %7948 = shalt.err (!%p7945_p4)
}
 0x35c   : > { %s7949_s30 = scalar_lea.hbm %s10172_s24, 2048  ;;  %s7953_s23 = scalar_lea.hbm %s10457_s21, 4096 }
 0x35d   : > { %p7950_p10 = scmp.ne.s32.totalorder %s10172_s24, %s7949_s30  ;;  %p7954_p7 = scmp.lt.s32.totalorder %s10172_s24, %s10457_s21 }
 0x35e   : > { %p7955_p12 = scmp.lt.s32.totalorder %s7953_s23, %s7949_s30 }
 0x35f   : > { %p7951_p2 = pnand %p7950_p10, %p8131_p8 }
 0x360   : > { %p7956_p0 = por %p7955_p12, %p7954_p7 }
 0x361   : > { %p7952_p1 = pneg %p7951_p2 }
 0x363   : > { %p7957_p6 = pnand %p7956_p0, %p7952_p1 }
 0x365   : > { %7960 = shalt.err (!%p7957_p6)
}
 0x366   : > { %s8039_s17 = smov 4  }
 0x367   : > { %7428 = dma.vmem_to_hbm [thread:$0]  (%p8131_p8), %s10175_s20, 2048, %s10172_s24, %s5820_s13, %s8036_s28, %s8036_s28, %s8039_s17  }
 0x368 PF: > { %s10458_s22 = sld [smem:[#allocation17_spill]]  ;;  %p10461_p9 = scmp.ge.s32.totalorder %s8023_s29, 2 }
 0x369   : > { %s10459_s26 = sld [smem:[#allocation20_spill]] }
 0x36e   : > { %s5851_s18 = sand.u32 1, %s10458_s22  }
 0x36f   : > { %p10460_p11 = scmp.ne.s32.totalorder %s10459_s26, 0  ;;  %s5852_s19 = scalar_lea.sflag [#allocation5], %s5851_s18 }
 0x371   : > { %p7448_p13 = pnand %p10461_p9, %p10460_p11 }
 0x373   : > { %p7449_p3 = pneg %p7448_p13 }
 0x375   : > { %7998 = dma.done.wait (%p7449_p3), %s5852_s19, 2048  }
 0x376   : > { %8000 = vsyncadd (%p7449_p3), %s5852_s19, 4294965248  ;;  %s27_s29 = sadd.s32 1, %s8023_s29   ;;  %s10462_s11 = sld [smem:[#allocation18_spill]] }
 0x377   : > { %p24_p5 = scmp.ge.s32.totalorder %s27_s29, 4   ;;  %s10463_s26 = sld [smem:[#allocation22_spill]] }
 0x378   : > { %s10464_s27 = sld [smem:[#allocation19_spill]]  ;;  %s10466_s24 = smov %s8007_s25 }
 0x379   : > { %s10465_s28 = sld [smem:[#allocation21_spill]]  ;;  %26 = sbr.rel (!%p24_p5) target bundleno = 13 (0xd), region = 146 }
 0x37c   : > { %s10467_s25 = smov %s10462_s11 }
 0x37e   :  { %5857 = vsyncpa [#allocation4], 1 }
 0x37f   :  { %5859 = vsyncpa [#allocation4 + $0x1], 1 }
 0x380   :  { %5860 = vsyncpa [#allocation7], 1 }
 0x381   :  { %5862 = vsyncpa [#allocation7 + $0x1], 1 }
 0x382   :  { %5863 = vsyncpa [#allocation10], 1 }
 0x383   :  { %5864 = vsyncpa [#allocation5], 1 }
 0x384   :  { %5866 = vsyncpa [#allocation5 + $0x1], 1 }

</bundles_post_ra>
